<compile_context>
chip_gen: v5e
topology: v5e:2x2
jax: 0.10.0
libtpu: 0.0.40
codegen_flags: <defaults>
</compile_context>

<pallas_src>
import jax
import jax.numpy as jnp
from jax.experimental import pallas as pl
from jax.experimental.pallas import tpu as pltpu

C = 240          # channel count (PyTorch module)
H = 14
W = 14
EPS = 1e-5
INV_N = 1.0 / (H * W)


def bn_relu_dwconv_kernel(x_ref, gamma_ref, beta_ref, w_ref, o_ref):
    # x_ref / o_ref: (H, W, C)   gamma/beta: (1, C)   w_ref: (9, W, C)
    # w_ref row k = weight tap (kh, kw) with k = kh*3 + kw, broadcast along W.
    hh, ww, cc = x_ref.shape

    # ---- Pass 1: per-channel batch stats in one streamed read of x. --------
    # Accumulate elementwise over rows (VALU), reduce across W once (XLU).
    s = x_ref[0]
    ss = s * s
    for h in range(1, hh):
        r = x_ref[h]
        s = s + r
        ss = ss + r * r
    s = jnp.sum(s, axis=0, keepdims=True)                    # (1, C)
    ss = jnp.sum(ss, axis=0, keepdims=True)                  # (1, C)
    mean = s * INV_N
    var = jnp.maximum(ss * INV_N - mean * mean, 0.0)         # biased batch var, clamped
    # Fold BN affine into one per-channel scale / bias.
    a = gamma_ref[...] * jax.lax.rsqrt(var + EPS)            # (1, C)
    b = beta_ref[...] - mean * a                             # (1, C)
    # Hoisted: exactly one broadcast each (JAX does not CSE broadcast_in_dim).
    a_b = jnp.broadcast_to(a, (ww, cc))
    b_b = jnp.broadcast_to(b, (ww, cc))

    def bn_row(h):
        # y[h] = relu(x[h] * a + b), computed on the fly (no y scratch).
        return jnp.maximum(x_ref[h] * a_b + b_b, 0.0)

    zrow = jnp.zeros((1, cc), jnp.float32)

    # ---- Pass 2: depthwise 3x3 conv, rolling 3-row window of y. ------------
    y_prev = None
    y_cur = bn_row(0)
    for h in range(hh):
        y_next = bn_row(h + 1) if h + 1 < hh else None

        # Combine the three H-taps first, per output column weight.
        col_l = y_cur * w_ref[3]
        col_c = y_cur * w_ref[4]
        col_r = y_cur * w_ref[5]
        if y_prev is not None:
            col_l = col_l + y_prev * w_ref[0]
            col_c = col_c + y_prev * w_ref[1]
            col_r = col_r + y_prev * w_ref[2]
        if y_next is not None:
            col_l = col_l + y_next * w_ref[6]
            col_c = col_c + y_next * w_ref[7]
            col_r = col_r + y_next * w_ref[8]

        # Column taps: out[w] = col_l[w-1] + col_c[w] + col_r[w+1] (zero OOB).
        row = (col_c
               + jnp.concatenate([zrow, col_l[:ww - 1, :]], axis=0)
               + jnp.concatenate([col_r[1:, :], zrow], axis=0))
        o_ref[h] = row.astype(o_ref.dtype)

        y_prev, y_cur = y_cur, y_next


def forward(x_nchw, gamma, beta, w_oihw):
    """x_nchw: (1, C, H, W); gamma/beta: (C,); w_oihw: (C, 1, 3, 3)."""
    # TODO(synk): the NCHW<->HWC transposes are separate XLA ops that each
    # round-trip ~190 KiB through HBM; keep the surrounding model
    # channels-last (or fuse them into producer/consumer) to drop them.
    x_hwc = jnp.transpose(x_nchw[0], (1, 2, 0))                       # (H, W, C)
    # Depthwise weights: (C,1,3,3) -> (3,3,C) -> (9,1,C) -> broadcast (9,W,C)
    # so every tap arrives in the kernel as a lane-dense (W, C) load.
    w_taps = jnp.broadcast_to(
        jnp.transpose(w_oihw[:, 0, :, :], (1, 2, 0)).reshape(9, 1, C),
        (9, W, C))
    g2 = gamma.reshape(1, C)
    b2 = beta.reshape(1, C)

    cost = pl.CostEstimate(
        flops=(2 * 9 + 5) * H * W * C,
        transcendentals=C,
        bytes_accessed=4 * (2 * H * W * C + 9 * W * C + 2 * C),
    )

    out_hwc = pl.pallas_call(
        bn_relu_dwconv_kernel,
        out_shape=jax.ShapeDtypeStruct((H, W, C), jnp.float32),
        grid=(1,),
        in_specs=[
            pl.BlockSpec((H, W, C), lambda i: (0, 0, 0)),
            pl.BlockSpec((1, C), lambda i: (0, 0)),
            pl.BlockSpec((1, C), lambda i: (0, 0)),
            pl.BlockSpec((9, W, C), lambda i: (0, 0, 0)),
        ],
        out_specs=pl.BlockSpec((H, W, C), lambda i: (0, 0, 0)),
        cost_estimate=cost,
    )(x_hwc, g2, b2, w_taps)

    return jnp.transpose(out_hwc, (2, 0, 1))[None]                    # (1, C, H, W)


def reference_forward(x_nchw, gamma, beta, w_oihw):
    mean = jnp.mean(x_nchw, axis=(0, 2, 3), keepdims=True)
    var = jnp.mean((x_nchw - mean) ** 2, axis=(0, 2, 3), keepdims=True)
    y = (x_nchw - mean) * jax.lax.rsqrt(var + EPS)
    y = y * gamma[None, :, None, None] + beta[None, :, None, None]
    y = jnp.maximum(y, 0.0)
    return jax.lax.conv_general_dilated(
        y, w_oihw, window_strides=(1, 1), padding=((1, 1), (1, 1)),
        dimension_numbers=("NCHW", "OIHW", "NCHW"), feature_group_count=C)


if __name__ == "__main__":
    key = jax.random.PRNGKey(0)
    k_x, k_w, k_g, k_b = jax.random.split(key, 4)

    x = jax.random.normal(k_x, (1, C, H, W), dtype=jnp.float32)
    # Deterministic synthetic parameters (shapes per the PyTorch module).
    w = jax.random.normal(k_w, (C, 1, 3, 3), dtype=jnp.float32) * 0.1
    gamma = 1.0 + 0.1 * jax.random.normal(k_g, (C,), dtype=jnp.float32)
    beta = 0.1 * jax.random.normal(k_b, (C,), dtype=jnp.float32)

    out = jax.block_until_ready(forward(x, gamma, beta, w))
    ref = jax.block_until_ready(reference_forward(x, gamma, beta, w))

    assert out.shape == (1, C, H, W), out.shape
    assert jnp.allclose(out, ref, atol=1e-4, rtol=1e-4), float(
        jnp.max(jnp.abs(out - ref)))

    print("KERNEL_OK")
</pallas_src>

<mosaic_0001>
module attributes {stable_mosaic.version = 11 : i64} {
  func.func @bn_relu_dwconv_kernel(%arg0: i32, %arg1: memref<14x14x240xf32, #tpu.memory_space<vmem>>, %arg2: memref<1x240xf32, #tpu.memory_space<vmem>>, %arg3: memref<1x240xf32, #tpu.memory_space<vmem>>, %arg4: memref<9x14x240xf32, #tpu.memory_space<vmem>>, %arg5: memref<14x14x240xf32, #tpu.memory_space<vmem>>) attributes {dimension_semantics = [#tpu.dimension_semantics<arbitrary>], iteration_bounds = array<i64: 1>, scalar_prefetch = 0 : i64, scratch_operands = 0 : i64, tpu.core_type = #tpu.core_type<tc>, window_params = [{pipeline_mode = #tpu.pipeline_mode<synchronous>, transform_indices = @transform_0, window_bounds = array<i64: 14, 14, 240>}, {pipeline_mode = #tpu.pipeline_mode<synchronous>, transform_indices = @transform_1, window_bounds = array<i64: 1, 240>}, {pipeline_mode = #tpu.pipeline_mode<synchronous>, transform_indices = @transform_2, window_bounds = array<i64: 1, 240>}, {pipeline_mode = #tpu.pipeline_mode<synchronous>, transform_indices = @transform_3, window_bounds = array<i64: 9, 14, 240>}, {pipeline_mode = #tpu.pipeline_mode<synchronous>, transform_indices = @transform_4, window_bounds = array<i64: 14, 14, 240>}]} {
    %c0 = arith.constant 0 : index
    %c0_0 = arith.constant 0 : index
    %c0_1 = arith.constant 0 : index
    %0 = vector.load %arg1[%c0, %c0_0, %c0_1] : memref<14x14x240xf32, #tpu.memory_space<vmem>>, vector<1x14x240xf32>
    %1 = vector.shape_cast %0 : vector<1x14x240xf32> to vector<14x240xf32>
    %2 = arith.mulf %1, %1 : vector<14x240xf32>
    %c1 = arith.constant 1 : index
    %c0_2 = arith.constant 0 : index
    %c0_3 = arith.constant 0 : index
    %3 = vector.load %arg1[%c1, %c0_2, %c0_3] : memref<14x14x240xf32, #tpu.memory_space<vmem>>, vector<1x14x240xf32>
    %4 = vector.shape_cast %3 : vector<1x14x240xf32> to vector<14x240xf32>
    %5 = arith.addf %1, %4 : vector<14x240xf32>
    %6 = arith.mulf %4, %4 : vector<14x240xf32>
    %7 = arith.addf %2, %6 : vector<14x240xf32>
    %c2 = arith.constant 2 : index
    %c0_4 = arith.constant 0 : index
    %c0_5 = arith.constant 0 : index
    %8 = vector.load %arg1[%c2, %c0_4, %c0_5] : memref<14x14x240xf32, #tpu.memory_space<vmem>>, vector<1x14x240xf32>
    %9 = vector.shape_cast %8 : vector<1x14x240xf32> to vector<14x240xf32>
    %10 = arith.addf %5, %9 : vector<14x240xf32>
    %11 = arith.mulf %9, %9 : vector<14x240xf32>
    %12 = arith.addf %7, %11 : vector<14x240xf32>
    %c3 = arith.constant 3 : index
    %c0_6 = arith.constant 0 : index
    %c0_7 = arith.constant 0 : index
    %13 = vector.load %arg1[%c3, %c0_6, %c0_7] : memref<14x14x240xf32, #tpu.memory_space<vmem>>, vector<1x14x240xf32>
    %14 = vector.shape_cast %13 : vector<1x14x240xf32> to vector<14x240xf32>
    %15 = arith.addf %10, %14 : vector<14x240xf32>
    %16 = arith.mulf %14, %14 : vector<14x240xf32>
    %17 = arith.addf %12, %16 : vector<14x240xf32>
    %c4 = arith.constant 4 : index
    %c0_8 = arith.constant 0 : index
    %c0_9 = arith.constant 0 : index
    %18 = vector.load %arg1[%c4, %c0_8, %c0_9] : memref<14x14x240xf32, #tpu.memory_space<vmem>>, vector<1x14x240xf32>
    %19 = vector.shape_cast %18 : vector<1x14x240xf32> to vector<14x240xf32>
    %20 = arith.addf %15, %19 : vector<14x240xf32>
    %21 = arith.mulf %19, %19 : vector<14x240xf32>
    %22 = arith.addf %17, %21 : vector<14x240xf32>
    %c5 = arith.constant 5 : index
    %c0_10 = arith.constant 0 : index
    %c0_11 = arith.constant 0 : index
    %23 = vector.load %arg1[%c5, %c0_10, %c0_11] : memref<14x14x240xf32, #tpu.memory_space<vmem>>, vector<1x14x240xf32>
    %24 = vector.shape_cast %23 : vector<1x14x240xf32> to vector<14x240xf32>
    %25 = arith.addf %20, %24 : vector<14x240xf32>
    %26 = arith.mulf %24, %24 : vector<14x240xf32>
    %27 = arith.addf %22, %26 : vector<14x240xf32>
    %c6 = arith.constant 6 : index
    %c0_12 = arith.constant 0 : index
    %c0_13 = arith.constant 0 : index
    %28 = vector.load %arg1[%c6, %c0_12, %c0_13] : memref<14x14x240xf32, #tpu.memory_space<vmem>>, vector<1x14x240xf32>
    %29 = vector.shape_cast %28 : vector<1x14x240xf32> to vector<14x240xf32>
    %30 = arith.addf %25, %29 : vector<14x240xf32>
    %31 = arith.mulf %29, %29 : vector<14x240xf32>
    %32 = arith.addf %27, %31 : vector<14x240xf32>
    %c7 = arith.constant 7 : index
    %c0_14 = arith.constant 0 : index
    %c0_15 = arith.constant 0 : index
    %33 = vector.load %arg1[%c7, %c0_14, %c0_15] : memref<14x14x240xf32, #tpu.memory_space<vmem>>, vector<1x14x240xf32>
    %34 = vector.shape_cast %33 : vector<1x14x240xf32> to vector<14x240xf32>
    %35 = arith.addf %30, %34 : vector<14x240xf32>
    %36 = arith.mulf %34, %34 : vector<14x240xf32>
    %37 = arith.addf %32, %36 : vector<14x240xf32>
    %c8 = arith.constant 8 : index
    %c0_16 = arith.constant 0 : index
    %c0_17 = arith.constant 0 : index
    %38 = vector.load %arg1[%c8, %c0_16, %c0_17] : memref<14x14x240xf32, #tpu.memory_space<vmem>>, vector<1x14x240xf32>
    %39 = vector.shape_cast %38 : vector<1x14x240xf32> to vector<14x240xf32>
    %40 = arith.addf %35, %39 : vector<14x240xf32>
    %41 = arith.mulf %39, %39 : vector<14x240xf32>
    %42 = arith.addf %37, %41 : vector<14x240xf32>
    %c9 = arith.constant 9 : index
    %c0_18 = arith.constant 0 : index
    %c0_19 = arith.constant 0 : index
    %43 = vector.load %arg1[%c9, %c0_18, %c0_19] : memref<14x14x240xf32, #tpu.memory_space<vmem>>, vector<1x14x240xf32>
    %44 = vector.shape_cast %43 : vector<1x14x240xf32> to vector<14x240xf32>
    %45 = arith.addf %40, %44 : vector<14x240xf32>
    %46 = arith.mulf %44, %44 : vector<14x240xf32>
    %47 = arith.addf %42, %46 : vector<14x240xf32>
    %c10 = arith.constant 10 : index
    %c0_20 = arith.constant 0 : index
    %c0_21 = arith.constant 0 : index
    %48 = vector.load %arg1[%c10, %c0_20, %c0_21] : memref<14x14x240xf32, #tpu.memory_space<vmem>>, vector<1x14x240xf32>
    %49 = vector.shape_cast %48 : vector<1x14x240xf32> to vector<14x240xf32>
    %50 = arith.addf %45, %49 : vector<14x240xf32>
    %51 = arith.mulf %49, %49 : vector<14x240xf32>
    %52 = arith.addf %47, %51 : vector<14x240xf32>
    %c11 = arith.constant 11 : index
    %c0_22 = arith.constant 0 : index
    %c0_23 = arith.constant 0 : index
    %53 = vector.load %arg1[%c11, %c0_22, %c0_23] : memref<14x14x240xf32, #tpu.memory_space<vmem>>, vector<1x14x240xf32>
    %54 = vector.shape_cast %53 : vector<1x14x240xf32> to vector<14x240xf32>
    %55 = arith.addf %50, %54 : vector<14x240xf32>
    %56 = arith.mulf %54, %54 : vector<14x240xf32>
    %57 = arith.addf %52, %56 : vector<14x240xf32>
    %c12 = arith.constant 12 : index
    %c0_24 = arith.constant 0 : index
    %c0_25 = arith.constant 0 : index
    %58 = vector.load %arg1[%c12, %c0_24, %c0_25] : memref<14x14x240xf32, #tpu.memory_space<vmem>>, vector<1x14x240xf32>
    %59 = vector.shape_cast %58 : vector<1x14x240xf32> to vector<14x240xf32>
    %60 = arith.addf %55, %59 : vector<14x240xf32>
    %61 = arith.mulf %59, %59 : vector<14x240xf32>
    %62 = arith.addf %57, %61 : vector<14x240xf32>
    %c13 = arith.constant 13 : index
    %c0_26 = arith.constant 0 : index
    %c0_27 = arith.constant 0 : index
    %63 = vector.load %arg1[%c13, %c0_26, %c0_27] : memref<14x14x240xf32, #tpu.memory_space<vmem>>, vector<1x14x240xf32>
    %64 = vector.shape_cast %63 : vector<1x14x240xf32> to vector<14x240xf32>
    %65 = arith.addf %60, %64 : vector<14x240xf32>
    %66 = arith.mulf %64, %64 : vector<14x240xf32>
    %67 = arith.addf %62, %66 : vector<14x240xf32>
    %cst = arith.constant dense<0.000000e+00> : vector<240xf32>
    %68 = vector.multi_reduction <add>, %65, %cst [0] : vector<14x240xf32> to vector<240xf32>
    %69 = vector.shape_cast %68 : vector<240xf32> to vector<1x240xf32>
    %cst_28 = arith.constant dense<0.000000e+00> : vector<240xf32>
    %70 = vector.multi_reduction <add>, %67, %cst_28 [0] : vector<14x240xf32> to vector<240xf32>
    %71 = vector.shape_cast %70 : vector<240xf32> to vector<1x240xf32>
    %cst_29 = arith.constant 0.00510204071 : f32
    %72 = vector.broadcast %cst_29 : f32 to vector<1x240xf32>
    %73 = arith.mulf %69, %72 : vector<1x240xf32>
    %cst_30 = arith.constant 0.00510204071 : f32
    %74 = vector.broadcast %cst_30 : f32 to vector<1x240xf32>
    %75 = arith.mulf %71, %74 : vector<1x240xf32>
    %76 = arith.mulf %73, %73 : vector<1x240xf32>
    %77 = arith.subf %75, %76 : vector<1x240xf32>
    %cst_31 = arith.constant 0.000000e+00 : f32
    %78 = vector.broadcast %cst_31 : f32 to vector<1x240xf32>
    %79 = arith.maximumf %77, %78 : vector<1x240xf32>
    %c0_32 = arith.constant 0 : index
    %c0_33 = arith.constant 0 : index
    %80 = vector.load %arg2[%c0_32, %c0_33] : memref<1x240xf32, #tpu.memory_space<vmem>>, vector<1x240xf32>
    %cst_34 = arith.constant 9.99999974E-6 : f32
    %81 = vector.broadcast %cst_34 : f32 to vector<1x240xf32>
    %82 = arith.addf %79, %81 : vector<1x240xf32>
    %83 = math.rsqrt %82 : vector<1x240xf32>
    %84 = arith.mulf %80, %83 : vector<1x240xf32>
    %c0_35 = arith.constant 0 : index
    %c0_36 = arith.constant 0 : index
    %85 = vector.load %arg3[%c0_35, %c0_36] : memref<1x240xf32, #tpu.memory_space<vmem>>, vector<1x240xf32>
    %86 = arith.mulf %73, %84 : vector<1x240xf32>
    %87 = arith.subf %85, %86 : vector<1x240xf32>
    %88 = vector.shape_cast %84 : vector<1x240xf32> to vector<1x240xf32>
    %89 = vector.broadcast %88 : vector<1x240xf32> to vector<14x240xf32>
    %90 = vector.shape_cast %87 : vector<1x240xf32> to vector<1x240xf32>
    %91 = vector.broadcast %90 : vector<1x240xf32> to vector<14x240xf32>
    %cst_37 = arith.constant 0.000000e+00 : f32
    %92 = vector.broadcast %cst_37 : f32 to vector<1x240xf32>
    %c0_38 = arith.constant 0 : index
    %c0_39 = arith.constant 0 : index
    %c0_40 = arith.constant 0 : index
    %93 = vector.load %arg1[%c0_38, %c0_39, %c0_40] : memref<14x14x240xf32, #tpu.memory_space<vmem>>, vector<1x14x240xf32>
    %94 = vector.shape_cast %93 : vector<1x14x240xf32> to vector<14x240xf32>
    %95 = arith.mulf %94, %89 : vector<14x240xf32>
    %96 = arith.addf %95, %91 : vector<14x240xf32>
    %cst_41 = arith.constant 0.000000e+00 : f32
    %97 = vector.broadcast %cst_41 : f32 to vector<14x240xf32>
    %98 = arith.maximumf %96, %97 : vector<14x240xf32>
    %c1_42 = arith.constant 1 : index
    %c0_43 = arith.constant 0 : index
    %c0_44 = arith.constant 0 : index
    %99 = vector.load %arg1[%c1_42, %c0_43, %c0_44] : memref<14x14x240xf32, #tpu.memory_space<vmem>>, vector<1x14x240xf32>
    %100 = vector.shape_cast %99 : vector<1x14x240xf32> to vector<14x240xf32>
    %101 = arith.mulf %100, %89 : vector<14x240xf32>
    %102 = arith.addf %101, %91 : vector<14x240xf32>
    %cst_45 = arith.constant 0.000000e+00 : f32
    %103 = vector.broadcast %cst_45 : f32 to vector<14x240xf32>
    %104 = arith.maximumf %102, %103 : vector<14x240xf32>
    %c3_46 = arith.constant 3 : index
    %c0_47 = arith.constant 0 : index
    %c0_48 = arith.constant 0 : index
    %105 = vector.load %arg4[%c3_46, %c0_47, %c0_48] : memref<9x14x240xf32, #tpu.memory_space<vmem>>, vector<1x14x240xf32>
    %106 = vector.shape_cast %105 : vector<1x14x240xf32> to vector<14x240xf32>
    %107 = arith.mulf %98, %106 : vector<14x240xf32>
    %c4_49 = arith.constant 4 : index
    %c0_50 = arith.constant 0 : index
    %c0_51 = arith.constant 0 : index
    %108 = vector.load %arg4[%c4_49, %c0_50, %c0_51] : memref<9x14x240xf32, #tpu.memory_space<vmem>>, vector<1x14x240xf32>
    %109 = vector.shape_cast %108 : vector<1x14x240xf32> to vector<14x240xf32>
    %110 = arith.mulf %98, %109 : vector<14x240xf32>
    %c5_52 = arith.constant 5 : index
    %c0_53 = arith.constant 0 : index
    %c0_54 = arith.constant 0 : index
    %111 = vector.load %arg4[%c5_52, %c0_53, %c0_54] : memref<9x14x240xf32, #tpu.memory_space<vmem>>, vector<1x14x240xf32>
    %112 = vector.shape_cast %111 : vector<1x14x240xf32> to vector<14x240xf32>
    %113 = arith.mulf %98, %112 : vector<14x240xf32>
    %c6_55 = arith.constant 6 : index
    %c0_56 = arith.constant 0 : index
    %c0_57 = arith.constant 0 : index
    %114 = vector.load %arg4[%c6_55, %c0_56, %c0_57] : memref<9x14x240xf32, #tpu.memory_space<vmem>>, vector<1x14x240xf32>
    %115 = vector.shape_cast %114 : vector<1x14x240xf32> to vector<14x240xf32>
    %116 = arith.mulf %104, %115 : vector<14x240xf32>
    %117 = arith.addf %107, %116 : vector<14x240xf32>
    %c7_58 = arith.constant 7 : index
    %c0_59 = arith.constant 0 : index
    %c0_60 = arith.constant 0 : index
    %118 = vector.load %arg4[%c7_58, %c0_59, %c0_60] : memref<9x14x240xf32, #tpu.memory_space<vmem>>, vector<1x14x240xf32>
    %119 = vector.shape_cast %118 : vector<1x14x240xf32> to vector<14x240xf32>
    %120 = arith.mulf %104, %119 : vector<14x240xf32>
    %121 = arith.addf %110, %120 : vector<14x240xf32>
    %c8_61 = arith.constant 8 : index
    %c0_62 = arith.constant 0 : index
    %c0_63 = arith.constant 0 : index
    %122 = vector.load %arg4[%c8_61, %c0_62, %c0_63] : memref<9x14x240xf32, #tpu.memory_space<vmem>>, vector<1x14x240xf32>
    %123 = vector.shape_cast %122 : vector<1x14x240xf32> to vector<14x240xf32>
    %124 = arith.mulf %104, %123 : vector<14x240xf32>
    %125 = arith.addf %113, %124 : vector<14x240xf32>
    %126 = vector.extract_strided_slice %117 {offsets = [0, 0], sizes = [13, 240], strides = [1, 1]} : vector<14x240xf32> to vector<13x240xf32>
    %127 = tpu.concatenate %92, %126 in 0 : vector<1x240xf32>, vector<13x240xf32> -> vector<14x240xf32>
    %128 = arith.addf %121, %127 : vector<14x240xf32>
    %129 = vector.extract_strided_slice %125 {offsets = [1, 0], sizes = [13, 240], strides = [1, 1]} : vector<14x240xf32> to vector<13x240xf32>
    %130 = tpu.concatenate %129, %92 in 0 : vector<13x240xf32>, vector<1x240xf32> -> vector<14x240xf32>
    %131 = arith.addf %128, %130 : vector<14x240xf32>
    %c0_64 = arith.constant 0 : index
    %c0_65 = arith.constant 0 : index
    %c0_66 = arith.constant 0 : index
    %132 = vector.load %arg5[%c0_64, %c0_65, %c0_66] : memref<14x14x240xf32, #tpu.memory_space<vmem>>, vector<1x14x240xf32>
    %133 = vector.shape_cast %132 : vector<1x14x240xf32> to vector<14x240xf32>
    %134 = vector.shape_cast %131 : vector<14x240xf32> to vector<1x14x240xf32>
    tpu.vector_store %arg5[%c0_64, %c0_65, %c0_66], %134 {strides = array<i32>} : memref<14x14x240xf32, #tpu.memory_space<vmem>>, vector<1x14x240xf32>,
    %c2_67 = arith.constant 2 : index
    %c0_68 = arith.constant 0 : index
    %c0_69 = arith.constant 0 : index
    %135 = vector.load %arg1[%c2_67, %c0_68, %c0_69] : memref<14x14x240xf32, #tpu.memory_space<vmem>>, vector<1x14x240xf32>
    %136 = vector.shape_cast %135 : vector<1x14x240xf32> to vector<14x240xf32>
    %137 = arith.mulf %136, %89 : vector<14x240xf32>
    %138 = arith.addf %137, %91 : vector<14x240xf32>
    %cst_70 = arith.constant 0.000000e+00 : f32
    %139 = vector.broadcast %cst_70 : f32 to vector<14x240xf32>
    %140 = arith.maximumf %138, %139 : vector<14x240xf32>
    %c3_71 = arith.constant 3 : index
    %c0_72 = arith.constant 0 : index
    %c0_73 = arith.constant 0 : index
    %141 = vector.load %arg4[%c3_71, %c0_72, %c0_73] : memref<9x14x240xf32, #tpu.memory_space<vmem>>, vector<1x14x240xf32>
    %142 = vector.shape_cast %141 : vector<1x14x240xf32> to vector<14x240xf32>
    %143 = arith.mulf %104, %142 : vector<14x240xf32>
    %c4_74 = arith.constant 4 : index
    %c0_75 = arith.constant 0 : index
    %c0_76 = arith.constant 0 : index
    %144 = vector.load %arg4[%c4_74, %c0_75, %c0_76] : memref<9x14x240xf32, #tpu.memory_space<vmem>>, vector<1x14x240xf32>
    %145 = vector.shape_cast %144 : vector<1x14x240xf32> to vector<14x240xf32>
    %146 = arith.mulf %104, %145 : vector<14x240xf32>
    %c5_77 = arith.constant 5 : index
    %c0_78 = arith.constant 0 : index
    %c0_79 = arith.constant 0 : index
    %147 = vector.load %arg4[%c5_77, %c0_78, %c0_79] : memref<9x14x240xf32, #tpu.memory_space<vmem>>, vector<1x14x240xf32>
    %148 = vector.shape_cast %147 : vector<1x14x240xf32> to vector<14x240xf32>
    %149 = arith.mulf %104, %148 : vector<14x240xf32>
    %c0_80 = arith.constant 0 : index
    %c0_81 = arith.constant 0 : index
    %c0_82 = arith.constant 0 : index
    %150 = vector.load %arg4[%c0_80, %c0_81, %c0_82] : memref<9x14x240xf32, #tpu.memory_space<vmem>>, vector<1x14x240xf32>
    %151 = vector.shape_cast %150 : vector<1x14x240xf32> to vector<14x240xf32>
    %152 = arith.mulf %98, %151 : vector<14x240xf32>
    %153 = arith.addf %143, %152 : vector<14x240xf32>
    %c1_83 = arith.constant 1 : index
    %c0_84 = arith.constant 0 : index
    %c0_85 = arith.constant 0 : index
    %154 = vector.load %arg4[%c1_83, %c0_84, %c0_85] : memref<9x14x240xf32, #tpu.memory_space<vmem>>, vector<1x14x240xf32>
    %155 = vector.shape_cast %154 : vector<1x14x240xf32> to vector<14x240xf32>
    %156 = arith.mulf %98, %155 : vector<14x240xf32>
    %157 = arith.addf %146, %156 : vector<14x240xf32>
    %c2_86 = arith.constant 2 : index
    %c0_87 = arith.constant 0 : index
    %c0_88 = arith.constant 0 : index
    %158 = vector.load %arg4[%c2_86, %c0_87, %c0_88] : memref<9x14x240xf32, #tpu.memory_space<vmem>>, vector<1x14x240xf32>
    %159 = vector.shape_cast %158 : vector<1x14x240xf32> to vector<14x240xf32>
    %160 = arith.mulf %98, %159 : vector<14x240xf32>
    %161 = arith.addf %149, %160 : vector<14x240xf32>
    %c6_89 = arith.constant 6 : index
    %c0_90 = arith.constant 0 : index
    %c0_91 = arith.constant 0 : index
    %162 = vector.load %arg4[%c6_89, %c0_90, %c0_91] : memref<9x14x240xf32, #tpu.memory_space<vmem>>, vector<1x14x240xf32>
    %163 = vector.shape_cast %162 : vector<1x14x240xf32> to vector<14x240xf32>
    %164 = arith.mulf %140, %163 : vector<14x240xf32>
    %165 = arith.addf %153, %164 : vector<14x240xf32>
    %c7_92 = arith.constant 7 : index
    %c0_93 = arith.constant 0 : index
    %c0_94 = arith.constant 0 : index
    %166 = vector.load %arg4[%c7_92, %c0_93, %c0_94] : memref<9x14x240xf32, #tpu.memory_space<vmem>>, vector<1x14x240xf32>
    %167 = vector.shape_cast %166 : vector<1x14x240xf32> to vector<14x240xf32>
    %168 = arith.mulf %140, %167 : vector<14x240xf32>
    %169 = arith.addf %157, %168 : vector<14x240xf32>
    %c8_95 = arith.constant 8 : index
    %c0_96 = arith.constant 0 : index
    %c0_97 = arith.constant 0 : index
    %170 = vector.load %arg4[%c8_95, %c0_96, %c0_97] : memref<9x14x240xf32, #tpu.memory_space<vmem>>, vector<1x14x240xf32>
    %171 = vector.shape_cast %170 : vector<1x14x240xf32> to vector<14x240xf32>
    %172 = arith.mulf %140, %171 : vector<14x240xf32>
    %173 = arith.addf %161, %172 : vector<14x240xf32>
    %174 = vector.extract_strided_slice %165 {offsets = [0, 0], sizes = [13, 240], strides = [1, 1]} : vector<14x240xf32> to vector<13x240xf32>
    %175 = tpu.concatenate %92, %174 in 0 : vector<1x240xf32>, vector<13x240xf32> -> vector<14x240xf32>
    %176 = arith.addf %169, %175 : vector<14x240xf32>
    %177 = vector.extract_strided_slice %173 {offsets = [1, 0], sizes = [13, 240], strides = [1, 1]} : vector<14x240xf32> to vector<13x240xf32>
    %178 = tpu.concatenate %177, %92 in 0 : vector<13x240xf32>, vector<1x240xf32> -> vector<14x240xf32>
    %179 = arith.addf %176, %178 : vector<14x240xf32>
    %c1_98 = arith.constant 1 : index
    %c0_99 = arith.constant 0 : index
    %c0_100 = arith.constant 0 : index
    %180 = vector.load %arg5[%c1_98, %c0_99, %c0_100] : memref<14x14x240xf32, #tpu.memory_space<vmem>>, vector<1x14x240xf32>
    %181 = vector.shape_cast %180 : vector<1x14x240xf32> to vector<14x240xf32>
    %182 = vector.shape_cast %179 : vector<14x240xf32> to vector<1x14x240xf32>
    tpu.vector_store %arg5[%c1_98, %c0_99, %c0_100], %182 {strides = array<i32>} : memref<14x14x240xf32, #tpu.memory_space<vmem>>, vector<1x14x240xf32>,
    %c3_101 = arith.constant 3 : index
    %c0_102 = arith.constant 0 : index
    %c0_103 = arith.constant 0 : index
    %183 = vector.load %arg1[%c3_101, %c0_102, %c0_103] : memref<14x14x240xf32, #tpu.memory_space<vmem>>, vector<1x14x240xf32>
    %184 = vector.shape_cast %183 : vector<1x14x240xf32> to vector<14x240xf32>
    %185 = arith.mulf %184, %89 : vector<14x240xf32>
    %186 = arith.addf %185, %91 : vector<14x240xf32>
    %cst_104 = arith.constant 0.000000e+00 : f32
    %187 = vector.broadcast %cst_104 : f32 to vector<14x240xf32>
    %188 = arith.maximumf %186, %187 : vector<14x240xf32>
    %c3_105 = arith.constant 3 : index
    %c0_106 = arith.constant 0 : index
    %c0_107 = arith.constant 0 : index
    %189 = vector.load %arg4[%c3_105, %c0_106, %c0_107] : memref<9x14x240xf32, #tpu.memory_space<vmem>>, vector<1x14x240xf32>
    %190 = vector.shape_cast %189 : vector<1x14x240xf32> to vector<14x240xf32>
    %191 = arith.mulf %140, %190 : vector<14x240xf32>
    %c4_108 = arith.constant 4 : index
    %c0_109 = arith.constant 0 : index
    %c0_110 = arith.constant 0 : index
    %192 = vector.load %arg4[%c4_108, %c0_109, %c0_110] : memref<9x14x240xf32, #tpu.memory_space<vmem>>, vector<1x14x240xf32>
    %193 = vector.shape_cast %192 : vector<1x14x240xf32> to vector<14x240xf32>
    %194 = arith.mulf %140, %193 : vector<14x240xf32>
    %c5_111 = arith.constant 5 : index
    %c0_112 = arith.constant 0 : index
    %c0_113 = arith.constant 0 : index
    %195 = vector.load %arg4[%c5_111, %c0_112, %c0_113] : memref<9x14x240xf32, #tpu.memory_space<vmem>>, vector<1x14x240xf32>
    %196 = vector.shape_cast %195 : vector<1x14x240xf32> to vector<14x240xf32>
    %197 = arith.mulf %140, %196 : vector<14x240xf32>
    %c0_114 = arith.constant 0 : index
    %c0_115 = arith.constant 0 : index
    %c0_116 = arith.constant 0 : index
    %198 = vector.load %arg4[%c0_114, %c0_115, %c0_116] : memref<9x14x240xf32, #tpu.memory_space<vmem>>, vector<1x14x240xf32>
    %199 = vector.shape_cast %198 : vector<1x14x240xf32> to vector<14x240xf32>
    %200 = arith.mulf %104, %199 : vector<14x240xf32>
    %201 = arith.addf %191, %200 : vector<14x240xf32>
    %c1_117 = arith.constant 1 : index
    %c0_118 = arith.constant 0 : index
    %c0_119 = arith.constant 0 : index
    %202 = vector.load %arg4[%c1_117, %c0_118, %c0_119] : memref<9x14x240xf32, #tpu.memory_space<vmem>>, vector<1x14x240xf32>
    %203 = vector.shape_cast %202 : vector<1x14x240xf32> to vector<14x240xf32>
    %204 = arith.mulf %104, %203 : vector<14x240xf32>
    %205 = arith.addf %194, %204 : vector<14x240xf32>
    %c2_120 = arith.constant 2 : index
    %c0_121 = arith.constant 0 : index
    %c0_122 = arith.constant 0 : index
    %206 = vector.load %arg4[%c2_120, %c0_121, %c0_122] : memref<9x14x240xf32, #tpu.memory_space<vmem>>, vector<1x14x240xf32>
    %207 = vector.shape_cast %206 : vector<1x14x240xf32> to vector<14x240xf32>
    %208 = arith.mulf %104, %207 : vector<14x240xf32>
    %209 = arith.addf %197, %208 : vector<14x240xf32>
    %c6_123 = arith.constant 6 : index
    %c0_124 = arith.constant 0 : index
    %c0_125 = arith.constant 0 : index
    %210 = vector.load %arg4[%c6_123, %c0_124, %c0_125] : memref<9x14x240xf32, #tpu.memory_space<vmem>>, vector<1x14x240xf32>
    %211 = vector.shape_cast %210 : vector<1x14x240xf32> to vector<14x240xf32>
    %212 = arith.mulf %188, %211 : vector<14x240xf32>
    %213 = arith.addf %201, %212 : vector<14x240xf32>
    %c7_126 = arith.constant 7 : index
    %c0_127 = arith.constant 0 : index
    %c0_128 = arith.constant 0 : index
    %214 = vector.load %arg4[%c7_126, %c0_127, %c0_128] : memref<9x14x240xf32, #tpu.memory_space<vmem>>, vector<1x14x240xf32>
    %215 = vector.shape_cast %214 : vector<1x14x240xf32> to vector<14x240xf32>
    %216 = arith.mulf %188, %215 : vector<14x240xf32>
    %217 = arith.addf %205, %216 : vector<14x240xf32>
    %c8_129 = arith.constant 8 : index
    %c0_130 = arith.constant 0 : index
    %c0_131 = arith.constant 0 : index
    %218 = vector.load %arg4[%c8_129, %c0_130, %c0_131] : memref<9x14x240xf32, #tpu.memory_space<vmem>>, vector<1x14x240xf32>
    %219 = vector.shape_cast %218 : vector<1x14x240xf32> to vector<14x240xf32>
    %220 = arith.mulf %188, %219 : vector<14x240xf32>
    %221 = arith.addf %209, %220 : vector<14x240xf32>
    %222 = vector.extract_strided_slice %213 {offsets = [0, 0], sizes = [13, 240], strides = [1, 1]} : vector<14x240xf32> to vector<13x240xf32>
    %223 = tpu.concatenate %92, %222 in 0 : vector<1x240xf32>, vector<13x240xf32> -> vector<14x240xf32>
    %224 = arith.addf %217, %223 : vector<14x240xf32>
    %225 = vector.extract_strided_slice %221 {offsets = [1, 0], sizes = [13, 240], strides = [1, 1]} : vector<14x240xf32> to vector<13x240xf32>
    %226 = tpu.concatenate %225, %92 in 0 : vector<13x240xf32>, vector<1x240xf32> -> vector<14x240xf32>
    %227 = arith.addf %224, %226 : vector<14x240xf32>
    %c2_132 = arith.constant 2 : index
    %c0_133 = arith.constant 0 : index
    %c0_134 = arith.constant 0 : index
    %228 = vector.load %arg5[%c2_132, %c0_133, %c0_134] : memref<14x14x240xf32, #tpu.memory_space<vmem>>, vector<1x14x240xf32>
    %229 = vector.shape_cast %228 : vector<1x14x240xf32> to vector<14x240xf32>
    %230 = vector.shape_cast %227 : vector<14x240xf32> to vector<1x14x240xf32>
    tpu.vector_store %arg5[%c2_132, %c0_133, %c0_134], %230 {strides = array<i32>} : memref<14x14x240xf32, #tpu.memory_space<vmem>>, vector<1x14x240xf32>,
    %c4_135 = arith.constant 4 : index
    %c0_136 = arith.constant 0 : index
    %c0_137 = arith.constant 0 : index
    %231 = vector.load %arg1[%c4_135, %c0_136, %c0_137] : memref<14x14x240xf32, #tpu.memory_space<vmem>>, vector<1x14x240xf32>
    %232 = vector.shape_cast %231 : vector<1x14x240xf32> to vector<14x240xf32>
    %233 = arith.mulf %232, %89 : vector<14x240xf32>
    %234 = arith.addf %233, %91 : vector<14x240xf32>
    %cst_138 = arith.constant 0.000000e+00 : f32
    %235 = vector.broadcast %cst_138 : f32 to vector<14x240xf32>
    %236 = arith.maximumf %234, %235 : vector<14x240xf32>
    %c3_139 = arith.constant 3 : index
    %c0_140 = arith.constant 0 : index
    %c0_141 = arith.constant 0 : index
    %237 = vector.load %arg4[%c3_139, %c0_140, %c0_141] : memref<9x14x240xf32, #tpu.memory_space<vmem>>, vector<1x14x240xf32>
    %238 = vector.shape_cast %237 : vector<1x14x240xf32> to vector<14x240xf32>
    %239 = arith.mulf %188, %238 : vector<14x240xf32>
    %c4_142 = arith.constant 4 : index
    %c0_143 = arith.constant 0 : index
    %c0_144 = arith.constant 0 : index
    %240 = vector.load %arg4[%c4_142, %c0_143, %c0_144] : memref<9x14x240xf32, #tpu.memory_space<vmem>>, vector<1x14x240xf32>
    %241 = vector.shape_cast %240 : vector<1x14x240xf32> to vector<14x240xf32>
    %242 = arith.mulf %188, %241 : vector<14x240xf32>
    %c5_145 = arith.constant 5 : index
    %c0_146 = arith.constant 0 : index
    %c0_147 = arith.constant 0 : index
    %243 = vector.load %arg4[%c5_145, %c0_146, %c0_147] : memref<9x14x240xf32, #tpu.memory_space<vmem>>, vector<1x14x240xf32>
    %244 = vector.shape_cast %243 : vector<1x14x240xf32> to vector<14x240xf32>
    %245 = arith.mulf %188, %244 : vector<14x240xf32>
    %c0_148 = arith.constant 0 : index
    %c0_149 = arith.constant 0 : index
    %c0_150 = arith.constant 0 : index
    %246 = vector.load %arg4[%c0_148, %c0_149, %c0_150] : memref<9x14x240xf32, #tpu.memory_space<vmem>>, vector<1x14x240xf32>
    %247 = vector.shape_cast %246 : vector<1x14x240xf32> to vector<14x240xf32>
    %248 = arith.mulf %140, %247 : vector<14x240xf32>
    %249 = arith.addf %239, %248 : vector<14x240xf32>
    %c1_151 = arith.constant 1 : index
    %c0_152 = arith.constant 0 : index
    %c0_153 = arith.constant 0 : index
    %250 = vector.load %arg4[%c1_151, %c0_152, %c0_153] : memref<9x14x240xf32, #tpu.memory_space<vmem>>, vector<1x14x240xf32>
    %251 = vector.shape_cast %250 : vector<1x14x240xf32> to vector<14x240xf32>
    %252 = arith.mulf %140, %251 : vector<14x240xf32>
    %253 = arith.addf %242, %252 : vector<14x240xf32>
    %c2_154 = arith.constant 2 : index
    %c0_155 = arith.constant 0 : index
    %c0_156 = arith.constant 0 : index
    %254 = vector.load %arg4[%c2_154, %c0_155, %c0_156] : memref<9x14x240xf32, #tpu.memory_space<vmem>>, vector<1x14x240xf32>
    %255 = vector.shape_cast %254 : vector<1x14x240xf32> to vector<14x240xf32>
    %256 = arith.mulf %140, %255 : vector<14x240xf32>
    %257 = arith.addf %245, %256 : vector<14x240xf32>
    %c6_157 = arith.constant 6 : index
    %c0_158 = arith.constant 0 : index
    %c0_159 = arith.constant 0 : index
    %258 = vector.load %arg4[%c6_157, %c0_158, %c0_159] : memref<9x14x240xf32, #tpu.memory_space<vmem>>, vector<1x14x240xf32>
    %259 = vector.shape_cast %258 : vector<1x14x240xf32> to vector<14x240xf32>
    %260 = arith.mulf %236, %259 : vector<14x240xf32>
    %261 = arith.addf %249, %260 : vector<14x240xf32>
    %c7_160 = arith.constant 7 : index
    %c0_161 = arith.constant 0 : index
    %c0_162 = arith.constant 0 : index
    %262 = vector.load %arg4[%c7_160, %c0_161, %c0_162] : memref<9x14x240xf32, #tpu.memory_space<vmem>>, vector<1x14x240xf32>
    %263 = vector.shape_cast %262 : vector<1x14x240xf32> to vector<14x240xf32>
    %264 = arith.mulf %236, %263 : vector<14x240xf32>
    %265 = arith.addf %253, %264 : vector<14x240xf32>
    %c8_163 = arith.constant 8 : index
    %c0_164 = arith.constant 0 : index
    %c0_165 = arith.constant 0 : index
    %266 = vector.load %arg4[%c8_163, %c0_164, %c0_165] : memref<9x14x240xf32, #tpu.memory_space<vmem>>, vector<1x14x240xf32>
    %267 = vector.shape_cast %266 : vector<1x14x240xf32> to vector<14x240xf32>
    %268 = arith.mulf %236, %267 : vector<14x240xf32>
    %269 = arith.addf %257, %268 : vector<14x240xf32>
    %270 = vector.extract_strided_slice %261 {offsets = [0, 0], sizes = [13, 240], strides = [1, 1]} : vector<14x240xf32> to vector<13x240xf32>
    %271 = tpu.concatenate %92, %270 in 0 : vector<1x240xf32>, vector<13x240xf32> -> vector<14x240xf32>
    %272 = arith.addf %265, %271 : vector<14x240xf32>
    %273 = vector.extract_strided_slice %269 {offsets = [1, 0], sizes = [13, 240], strides = [1, 1]} : vector<14x240xf32> to vector<13x240xf32>
    %274 = tpu.concatenate %273, %92 in 0 : vector<13x240xf32>, vector<1x240xf32> -> vector<14x240xf32>
    %275 = arith.addf %272, %274 : vector<14x240xf32>
    %c3_166 = arith.constant 3 : index
    %c0_167 = arith.constant 0 : index
    %c0_168 = arith.constant 0 : index
    %276 = vector.load %arg5[%c3_166, %c0_167, %c0_168] : memref<14x14x240xf32, #tpu.memory_space<vmem>>, vector<1x14x240xf32>
    %277 = vector.shape_cast %276 : vector<1x14x240xf32> to vector<14x240xf32>
    %278 = vector.shape_cast %275 : vector<14x240xf32> to vector<1x14x240xf32>
    tpu.vector_store %arg5[%c3_166, %c0_167, %c0_168], %278 {strides = array<i32>} : memref<14x14x240xf32, #tpu.memory_space<vmem>>, vector<1x14x240xf32>,
    %c5_169 = arith.constant 5 : index
    %c0_170 = arith.constant 0 : index
    %c0_171 = arith.constant 0 : index
    %279 = vector.load %arg1[%c5_169, %c0_170, %c0_171] : memref<14x14x240xf32, #tpu.memory_space<vmem>>, vector<1x14x240xf32>
    %280 = vector.shape_cast %279 : vector<1x14x240xf32> to vector<14x240xf32>
    %281 = arith.mulf %280, %89 : vector<14x240xf32>
    %282 = arith.addf %281, %91 : vector<14x240xf32>
    %cst_172 = arith.constant 0.000000e+00 : f32
    %283 = vector.broadcast %cst_172 : f32 to vector<14x240xf32>
    %284 = arith.maximumf %282, %283 : vector<14x240xf32>
    %c3_173 = arith.constant 3 : index
    %c0_174 = arith.constant 0 : index
    %c0_175 = arith.constant 0 : index
    %285 = vector.load %arg4[%c3_173, %c0_174, %c0_175] : memref<9x14x240xf32, #tpu.memory_space<vmem>>, vector<1x14x240xf32>
    %286 = vector.shape_cast %285 : vector<1x14x240xf32> to vector<14x240xf32>
    %287 = arith.mulf %236, %286 : vector<14x240xf32>
    %c4_176 = arith.constant 4 : index
    %c0_177 = arith.constant 0 : index
    %c0_178 = arith.constant 0 : index
    %288 = vector.load %arg4[%c4_176, %c0_177, %c0_178] : memref<9x14x240xf32, #tpu.memory_space<vmem>>, vector<1x14x240xf32>
    %289 = vector.shape_cast %288 : vector<1x14x240xf32> to vector<14x240xf32>
    %290 = arith.mulf %236, %289 : vector<14x240xf32>
    %c5_179 = arith.constant 5 : index
    %c0_180 = arith.constant 0 : index
    %c0_181 = arith.constant 0 : index
    %291 = vector.load %arg4[%c5_179, %c0_180, %c0_181] : memref<9x14x240xf32, #tpu.memory_space<vmem>>, vector<1x14x240xf32>
    %292 = vector.shape_cast %291 : vector<1x14x240xf32> to vector<14x240xf32>
    %293 = arith.mulf %236, %292 : vector<14x240xf32>
    %c0_182 = arith.constant 0 : index
    %c0_183 = arith.constant 0 : index
    %c0_184 = arith.constant 0 : index
    %294 = vector.load %arg4[%c0_182, %c0_183, %c0_184] : memref<9x14x240xf32, #tpu.memory_space<vmem>>, vector<1x14x240xf32>
    %295 = vector.shape_cast %294 : vector<1x14x240xf32> to vector<14x240xf32>
    %296 = arith.mulf %188, %295 : vector<14x240xf32>
    %297 = arith.addf %287, %296 : vector<14x240xf32>
    %c1_185 = arith.constant 1 : index
    %c0_186 = arith.constant 0 : index
    %c0_187 = arith.constant 0 : index
    %298 = vector.load %arg4[%c1_185, %c0_186, %c0_187] : memref<9x14x240xf32, #tpu.memory_space<vmem>>, vector<1x14x240xf32>
    %299 = vector.shape_cast %298 : vector<1x14x240xf32> to vector<14x240xf32>
    %300 = arith.mulf %188, %299 : vector<14x240xf32>
    %301 = arith.addf %290, %300 : vector<14x240xf32>
    %c2_188 = arith.constant 2 : index
    %c0_189 = arith.constant 0 : index
    %c0_190 = arith.constant 0 : index
    %302 = vector.load %arg4[%c2_188, %c0_189, %c0_190] : memref<9x14x240xf32, #tpu.memory_space<vmem>>, vector<1x14x240xf32>
    %303 = vector.shape_cast %302 : vector<1x14x240xf32> to vector<14x240xf32>
    %304 = arith.mulf %188, %303 : vector<14x240xf32>
    %305 = arith.addf %293, %304 : vector<14x240xf32>
    %c6_191 = arith.constant 6 : index
    %c0_192 = arith.constant 0 : index
    %c0_193 = arith.constant 0 : index
    %306 = vector.load %arg4[%c6_191, %c0_192, %c0_193] : memref<9x14x240xf32, #tpu.memory_space<vmem>>, vector<1x14x240xf32>
    %307 = vector.shape_cast %306 : vector<1x14x240xf32> to vector<14x240xf32>
    %308 = arith.mulf %284, %307 : vector<14x240xf32>
    %309 = arith.addf %297, %308 : vector<14x240xf32>
    %c7_194 = arith.constant 7 : index
    %c0_195 = arith.constant 0 : index
    %c0_196 = arith.constant 0 : index
    %310 = vector.load %arg4[%c7_194, %c0_195, %c0_196] : memref<9x14x240xf32, #tpu.memory_space<vmem>>, vector<1x14x240xf32>
    %311 = vector.shape_cast %310 : vector<1x14x240xf32> to vector<14x240xf32>
    %312 = arith.mulf %284, %311 : vector<14x240xf32>
    %313 = arith.addf %301, %312 : vector<14x240xf32>
    %c8_197 = arith.constant 8 : index
    %c0_198 = arith.constant 0 : index
    %c0_199 = arith.constant 0 : index
    %314 = vector.load %arg4[%c8_197, %c0_198, %c0_199] : memref<9x14x240xf32, #tpu.memory_space<vmem>>, vector<1x14x240xf32>
    %315 = vector.shape_cast %314 : vector<1x14x240xf32> to vector<14x240xf32>
    %316 = arith.mulf %284, %315 : vector<14x240xf32>
    %317 = arith.addf %305, %316 : vector<14x240xf32>
    %318 = vector.extract_strided_slice %309 {offsets = [0, 0], sizes = [13, 240], strides = [1, 1]} : vector<14x240xf32> to vector<13x240xf32>
    %319 = tpu.concatenate %92, %318 in 0 : vector<1x240xf32>, vector<13x240xf32> -> vector<14x240xf32>
    %320 = arith.addf %313, %319 : vector<14x240xf32>
    %321 = vector.extract_strided_slice %317 {offsets = [1, 0], sizes = [13, 240], strides = [1, 1]} : vector<14x240xf32> to vector<13x240xf32>
    %322 = tpu.concatenate %321, %92 in 0 : vector<13x240xf32>, vector<1x240xf32> -> vector<14x240xf32>
    %323 = arith.addf %320, %322 : vector<14x240xf32>
    %c4_200 = arith.constant 4 : index
    %c0_201 = arith.constant 0 : index
    %c0_202 = arith.constant 0 : index
    %324 = vector.load %arg5[%c4_200, %c0_201, %c0_202] : memref<14x14x240xf32, #tpu.memory_space<vmem>>, vector<1x14x240xf32>
    %325 = vector.shape_cast %324 : vector<1x14x240xf32> to vector<14x240xf32>
    %326 = vector.shape_cast %323 : vector<14x240xf32> to vector<1x14x240xf32>
    tpu.vector_store %arg5[%c4_200, %c0_201, %c0_202], %326 {strides = array<i32>} : memref<14x14x240xf32, #tpu.memory_space<vmem>>, vector<1x14x240xf32>,
    %c6_203 = arith.constant 6 : index
    %c0_204 = arith.constant 0 : index
    %c0_205 = arith.constant 0 : index
    %327 = vector.load %arg1[%c6_203, %c0_204, %c0_205] : memref<14x14x240xf32, #tpu.memory_space<vmem>>, vector<1x14x240xf32>
    %328 = vector.shape_cast %327 : vector<1x14x240xf32> to vector<14x240xf32>
    %329 = arith.mulf %328, %89 : vector<14x240xf32>
    %330 = arith.addf %329, %91 : vector<14x240xf32>
    %cst_206 = arith.constant 0.000000e+00 : f32
    %331 = vector.broadcast %cst_206 : f32 to vector<14x240xf32>
    %332 = arith.maximumf %330, %331 : vector<14x240xf32>
    %c3_207 = arith.constant 3 : index
    %c0_208 = arith.constant 0 : index
    %c0_209 = arith.constant 0 : index
    %333 = vector.load %arg4[%c3_207, %c0_208, %c0_209] : memref<9x14x240xf32, #tpu.memory_space<vmem>>, vector<1x14x240xf32>
    %334 = vector.shape_cast %333 : vector<1x14x240xf32> to vector<14x240xf32>
    %335 = arith.mulf %284, %334 : vector<14x240xf32>
    %c4_210 = arith.constant 4 : index
    %c0_211 = arith.constant 0 : index
    %c0_212 = arith.constant 0 : index
    %336 = vector.load %arg4[%c4_210, %c0_211, %c0_212] : memref<9x14x240xf32, #tpu.memory_space<vmem>>, vector<1x14x240xf32>
    %337 = vector.shape_cast %336 : vector<1x14x240xf32> to vector<14x240xf32>
    %338 = arith.mulf %284, %337 : vector<14x240xf32>
    %c5_213 = arith.constant 5 : index
    %c0_214 = arith.constant 0 : index
    %c0_215 = arith.constant 0 : index
    %339 = vector.load %arg4[%c5_213, %c0_214, %c0_215] : memref<9x14x240xf32, #tpu.memory_space<vmem>>, vector<1x14x240xf32>
    %340 = vector.shape_cast %339 : vector<1x14x240xf32> to vector<14x240xf32>
    %341 = arith.mulf %284, %340 : vector<14x240xf32>
    %c0_216 = arith.constant 0 : index
    %c0_217 = arith.constant 0 : index
    %c0_218 = arith.constant 0 : index
    %342 = vector.load %arg4[%c0_216, %c0_217, %c0_218] : memref<9x14x240xf32, #tpu.memory_space<vmem>>, vector<1x14x240xf32>
    %343 = vector.shape_cast %342 : vector<1x14x240xf32> to vector<14x240xf32>
    %344 = arith.mulf %236, %343 : vector<14x240xf32>
    %345 = arith.addf %335, %344 : vector<14x240xf32>
    %c1_219 = arith.constant 1 : index
    %c0_220 = arith.constant 0 : index
    %c0_221 = arith.constant 0 : index
    %346 = vector.load %arg4[%c1_219, %c0_220, %c0_221] : memref<9x14x240xf32, #tpu.memory_space<vmem>>, vector<1x14x240xf32>
    %347 = vector.shape_cast %346 : vector<1x14x240xf32> to vector<14x240xf32>
    %348 = arith.mulf %236, %347 : vector<14x240xf32>
    %349 = arith.addf %338, %348 : vector<14x240xf32>
    %c2_222 = arith.constant 2 : index
    %c0_223 = arith.constant 0 : index
    %c0_224 = arith.constant 0 : index
    %350 = vector.load %arg4[%c2_222, %c0_223, %c0_224] : memref<9x14x240xf32, #tpu.memory_space<vmem>>, vector<1x14x240xf32>
    %351 = vector.shape_cast %350 : vector<1x14x240xf32> to vector<14x240xf32>
    %352 = arith.mulf %236, %351 : vector<14x240xf32>
    %353 = arith.addf %341, %352 : vector<14x240xf32>
    %c6_225 = arith.constant 6 : index
    %c0_226 = arith.constant 0 : index
    %c0_227 = arith.constant 0 : index
    %354 = vector.load %arg4[%c6_225, %c0_226, %c0_227] : memref<9x14x240xf32, #tpu.memory_space<vmem>>, vector<1x14x240xf32>
    %355 = vector.shape_cast %354 : vector<1x14x240xf32> to vector<14x240xf32>
    %356 = arith.mulf %332, %355 : vector<14x240xf32>
    %357 = arith.addf %345, %356 : vector<14x240xf32>
    %c7_228 = arith.constant 7 : index
    %c0_229 = arith.constant 0 : index
    %c0_230 = arith.constant 0 : index
    %358 = vector.load %arg4[%c7_228, %c0_229, %c0_230] : memref<9x14x240xf32, #tpu.memory_space<vmem>>, vector<1x14x240xf32>
    %359 = vector.shape_cast %358 : vector<1x14x240xf32> to vector<14x240xf32>
    %360 = arith.mulf %332, %359 : vector<14x240xf32>
    %361 = arith.addf %349, %360 : vector<14x240xf32>
    %c8_231 = arith.constant 8 : index
    %c0_232 = arith.constant 0 : index
    %c0_233 = arith.constant 0 : index
    %362 = vector.load %arg4[%c8_231, %c0_232, %c0_233] : memref<9x14x240xf32, #tpu.memory_space<vmem>>, vector<1x14x240xf32>
    %363 = vector.shape_cast %362 : vector<1x14x240xf32> to vector<14x240xf32>
    %364 = arith.mulf %332, %363 : vector<14x240xf32>
    %365 = arith.addf %353, %364 : vector<14x240xf32>
    %366 = vector.extract_strided_slice %357 {offsets = [0, 0], sizes = [13, 240], strides = [1, 1]} : vector<14x240xf32> to vector<13x240xf32>
    %367 = tpu.concatenate %92, %366 in 0 : vector<1x240xf32>, vector<13x240xf32> -> vector<14x240xf32>
    %368 = arith.addf %361, %367 : vector<14x240xf32>
    %369 = vector.extract_strided_slice %365 {offsets = [1, 0], sizes = [13, 240], strides = [1, 1]} : vector<14x240xf32> to vector<13x240xf32>
    %370 = tpu.concatenate %369, %92 in 0 : vector<13x240xf32>, vector<1x240xf32> -> vector<14x240xf32>
    %371 = arith.addf %368, %370 : vector<14x240xf32>
    %c5_234 = arith.constant 5 : index
    %c0_235 = arith.constant 0 : index
    %c0_236 = arith.constant 0 : index
    %372 = vector.load %arg5[%c5_234, %c0_235, %c0_236] : memref<14x14x240xf32, #tpu.memory_space<vmem>>, vector<1x14x240xf32>
    %373 = vector.shape_cast %372 : vector<1x14x240xf32> to vector<14x240xf32>
    %374 = vector.shape_cast %371 : vector<14x240xf32> to vector<1x14x240xf32>
    tpu.vector_store %arg5[%c5_234, %c0_235, %c0_236], %374 {strides = array<i32>} : memref<14x14x240xf32, #tpu.memory_space<vmem>>, vector<1x14x240xf32>,
    %c7_237 = arith.constant 7 : index
    %c0_238 = arith.constant 0 : index
    %c0_239 = arith.constant 0 : index
    %375 = vector.load %arg1[%c7_237, %c0_238, %c0_239] : memref<14x14x240xf32, #tpu.memory_space<vmem>>, vector<1x14x240xf32>
    %376 = vector.shape_cast %375 : vector<1x14x240xf32> to vector<14x240xf32>
    %377 = arith.mulf %376, %89 : vector<14x240xf32>
    %378 = arith.addf %377, %91 : vector<14x240xf32>
    %cst_240 = arith.constant 0.000000e+00 : f32
    %379 = vector.broadcast %cst_240 : f32 to vector<14x240xf32>
    %380 = arith.maximumf %378, %379 : vector<14x240xf32>
    %c3_241 = arith.constant 3 : index
    %c0_242 = arith.constant 0 : index
    %c0_243 = arith.constant 0 : index
    %381 = vector.load %arg4[%c3_241, %c0_242, %c0_243] : memref<9x14x240xf32, #tpu.memory_space<vmem>>, vector<1x14x240xf32>
    %382 = vector.shape_cast %381 : vector<1x14x240xf32> to vector<14x240xf32>
    %383 = arith.mulf %332, %382 : vector<14x240xf32>
    %c4_244 = arith.constant 4 : index
    %c0_245 = arith.constant 0 : index
    %c0_246 = arith.constant 0 : index
    %384 = vector.load %arg4[%c4_244, %c0_245, %c0_246] : memref<9x14x240xf32, #tpu.memory_space<vmem>>, vector<1x14x240xf32>
    %385 = vector.shape_cast %384 : vector<1x14x240xf32> to vector<14x240xf32>
    %386 = arith.mulf %332, %385 : vector<14x240xf32>
    %c5_247 = arith.constant 5 : index
    %c0_248 = arith.constant 0 : index
    %c0_249 = arith.constant 0 : index
    %387 = vector.load %arg4[%c5_247, %c0_248, %c0_249] : memref<9x14x240xf32, #tpu.memory_space<vmem>>, vector<1x14x240xf32>
    %388 = vector.shape_cast %387 : vector<1x14x240xf32> to vector<14x240xf32>
    %389 = arith.mulf %332, %388 : vector<14x240xf32>
    %c0_250 = arith.constant 0 : index
    %c0_251 = arith.constant 0 : index
    %c0_252 = arith.constant 0 : index
    %390 = vector.load %arg4[%c0_250, %c0_251, %c0_252] : memref<9x14x240xf32, #tpu.memory_space<vmem>>, vector<1x14x240xf32>
    %391 = vector.shape_cast %390 : vector<1x14x240xf32> to vector<14x240xf32>
    %392 = arith.mulf %284, %391 : vector<14x240xf32>
    %393 = arith.addf %383, %392 : vector<14x240xf32>
    %c1_253 = arith.constant 1 : index
    %c0_254 = arith.constant 0 : index
    %c0_255 = arith.constant 0 : index
    %394 = vector.load %arg4[%c1_253, %c0_254, %c0_255] : memref<9x14x240xf32, #tpu.memory_space<vmem>>, vector<1x14x240xf32>
    %395 = vector.shape_cast %394 : vector<1x14x240xf32> to vector<14x240xf32>
    %396 = arith.mulf %284, %395 : vector<14x240xf32>
    %397 = arith.addf %386, %396 : vector<14x240xf32>
    %c2_256 = arith.constant 2 : index
    %c0_257 = arith.constant 0 : index
    %c0_258 = arith.constant 0 : index
    %398 = vector.load %arg4[%c2_256, %c0_257, %c0_258] : memref<9x14x240xf32, #tpu.memory_space<vmem>>, vector<1x14x240xf32>
    %399 = vector.shape_cast %398 : vector<1x14x240xf32> to vector<14x240xf32>
    %400 = arith.mulf %284, %399 : vector<14x240xf32>
    %401 = arith.addf %389, %400 : vector<14x240xf32>
    %c6_259 = arith.constant 6 : index
    %c0_260 = arith.constant 0 : index
    %c0_261 = arith.constant 0 : index
    %402 = vector.load %arg4[%c6_259, %c0_260, %c0_261] : memref<9x14x240xf32, #tpu.memory_space<vmem>>, vector<1x14x240xf32>
    %403 = vector.shape_cast %402 : vector<1x14x240xf32> to vector<14x240xf32>
    %404 = arith.mulf %380, %403 : vector<14x240xf32>
    %405 = arith.addf %393, %404 : vector<14x240xf32>
    %c7_262 = arith.constant 7 : index
    %c0_263 = arith.constant 0 : index
    %c0_264 = arith.constant 0 : index
    %406 = vector.load %arg4[%c7_262, %c0_263, %c0_264] : memref<9x14x240xf32, #tpu.memory_space<vmem>>, vector<1x14x240xf32>
    %407 = vector.shape_cast %406 : vector<1x14x240xf32> to vector<14x240xf32>
    %408 = arith.mulf %380, %407 : vector<14x240xf32>
    %409 = arith.addf %397, %408 : vector<14x240xf32>
    %c8_265 = arith.constant 8 : index
    %c0_266 = arith.constant 0 : index
    %c0_267 = arith.constant 0 : index
    %410 = vector.load %arg4[%c8_265, %c0_266, %c0_267] : memref<9x14x240xf32, #tpu.memory_space<vmem>>, vector<1x14x240xf32>
    %411 = vector.shape_cast %410 : vector<1x14x240xf32> to vector<14x240xf32>
    %412 = arith.mulf %380, %411 : vector<14x240xf32>
    %413 = arith.addf %401, %412 : vector<14x240xf32>
    %414 = vector.extract_strided_slice %405 {offsets = [0, 0], sizes = [13, 240], strides = [1, 1]} : vector<14x240xf32> to vector<13x240xf32>
    %415 = tpu.concatenate %92, %414 in 0 : vector<1x240xf32>, vector<13x240xf32> -> vector<14x240xf32>
    %416 = arith.addf %409, %415 : vector<14x240xf32>
    %417 = vector.extract_strided_slice %413 {offsets = [1, 0], sizes = [13, 240], strides = [1, 1]} : vector<14x240xf32> to vector<13x240xf32>
    %418 = tpu.concatenate %417, %92 in 0 : vector<13x240xf32>, vector<1x240xf32> -> vector<14x240xf32>
    %419 = arith.addf %416, %418 : vector<14x240xf32>
    %c6_268 = arith.constant 6 : index
    %c0_269 = arith.constant 0 : index
    %c0_270 = arith.constant 0 : index
    %420 = vector.load %arg5[%c6_268, %c0_269, %c0_270] : memref<14x14x240xf32, #tpu.memory_space<vmem>>, vector<1x14x240xf32>
    %421 = vector.shape_cast %420 : vector<1x14x240xf32> to vector<14x240xf32>
    %422 = vector.shape_cast %419 : vector<14x240xf32> to vector<1x14x240xf32>
    tpu.vector_store %arg5[%c6_268, %c0_269, %c0_270], %422 {strides = array<i32>} : memref<14x14x240xf32, #tpu.memory_space<vmem>>, vector<1x14x240xf32>,
    %c8_271 = arith.constant 8 : index
    %c0_272 = arith.constant 0 : index
    %c0_273 = arith.constant 0 : index
    %423 = vector.load %arg1[%c8_271, %c0_272, %c0_273] : memref<14x14x240xf32, #tpu.memory_space<vmem>>, vector<1x14x240xf32>
    %424 = vector.shape_cast %423 : vector<1x14x240xf32> to vector<14x240xf32>
    %425 = arith.mulf %424, %89 : vector<14x240xf32>
    %426 = arith.addf %425, %91 : vector<14x240xf32>
    %cst_274 = arith.constant 0.000000e+00 : f32
    %427 = vector.broadcast %cst_274 : f32 to vector<14x240xf32>
    %428 = arith.maximumf %426, %427 : vector<14x240xf32>
    %c3_275 = arith.constant 3 : index
    %c0_276 = arith.constant 0 : index
    %c0_277 = arith.constant 0 : index
    %429 = vector.load %arg4[%c3_275, %c0_276, %c0_277] : memref<9x14x240xf32, #tpu.memory_space<vmem>>, vector<1x14x240xf32>
    %430 = vector.shape_cast %429 : vector<1x14x240xf32> to vector<14x240xf32>
    %431 = arith.mulf %380, %430 : vector<14x240xf32>
    %c4_278 = arith.constant 4 : index
    %c0_279 = arith.constant 0 : index
    %c0_280 = arith.constant 0 : index
    %432 = vector.load %arg4[%c4_278, %c0_279, %c0_280] : memref<9x14x240xf32, #tpu.memory_space<vmem>>, vector<1x14x240xf32>
    %433 = vector.shape_cast %432 : vector<1x14x240xf32> to vector<14x240xf32>
    %434 = arith.mulf %380, %433 : vector<14x240xf32>
    %c5_281 = arith.constant 5 : index
    %c0_282 = arith.constant 0 : index
    %c0_283 = arith.constant 0 : index
    %435 = vector.load %arg4[%c5_281, %c0_282, %c0_283] : memref<9x14x240xf32, #tpu.memory_space<vmem>>, vector<1x14x240xf32>
    %436 = vector.shape_cast %435 : vector<1x14x240xf32> to vector<14x240xf32>
    %437 = arith.mulf %380, %436 : vector<14x240xf32>
    %c0_284 = arith.constant 0 : index
    %c0_285 = arith.constant 0 : index
    %c0_286 = arith.constant 0 : index
    %438 = vector.load %arg4[%c0_284, %c0_285, %c0_286] : memref<9x14x240xf32, #tpu.memory_space<vmem>>, vector<1x14x240xf32>
    %439 = vector.shape_cast %438 : vector<1x14x240xf32> to vector<14x240xf32>
    %440 = arith.mulf %332, %439 : vector<14x240xf32>
    %441 = arith.addf %431, %440 : vector<14x240xf32>
    %c1_287 = arith.constant 1 : index
    %c0_288 = arith.constant 0 : index
    %c0_289 = arith.constant 0 : index
    %442 = vector.load %arg4[%c1_287, %c0_288, %c0_289] : memref<9x14x240xf32, #tpu.memory_space<vmem>>, vector<1x14x240xf32>
    %443 = vector.shape_cast %442 : vector<1x14x240xf32> to vector<14x240xf32>
    %444 = arith.mulf %332, %443 : vector<14x240xf32>
    %445 = arith.addf %434, %444 : vector<14x240xf32>
    %c2_290 = arith.constant 2 : index
    %c0_291 = arith.constant 0 : index
    %c0_292 = arith.constant 0 : index
    %446 = vector.load %arg4[%c2_290, %c0_291, %c0_292] : memref<9x14x240xf32, #tpu.memory_space<vmem>>, vector<1x14x240xf32>
    %447 = vector.shape_cast %446 : vector<1x14x240xf32> to vector<14x240xf32>
    %448 = arith.mulf %332, %447 : vector<14x240xf32>
    %449 = arith.addf %437, %448 : vector<14x240xf32>
    %c6_293 = arith.constant 6 : index
    %c0_294 = arith.constant 0 : index
    %c0_295 = arith.constant 0 : index
    %450 = vector.load %arg4[%c6_293, %c0_294, %c0_295] : memref<9x14x240xf32, #tpu.memory_space<vmem>>, vector<1x14x240xf32>
    %451 = vector.shape_cast %450 : vector<1x14x240xf32> to vector<14x240xf32>
    %452 = arith.mulf %428, %451 : vector<14x240xf32>
    %453 = arith.addf %441, %452 : vector<14x240xf32>
    %c7_296 = arith.constant 7 : index
    %c0_297 = arith.constant 0 : index
    %c0_298 = arith.constant 0 : index
    %454 = vector.load %arg4[%c7_296, %c0_297, %c0_298] : memref<9x14x240xf32, #tpu.memory_space<vmem>>, vector<1x14x240xf32>
    %455 = vector.shape_cast %454 : vector<1x14x240xf32> to vector<14x240xf32>
    %456 = arith.mulf %428, %455 : vector<14x240xf32>
    %457 = arith.addf %445, %456 : vector<14x240xf32>
    %c8_299 = arith.constant 8 : index
    %c0_300 = arith.constant 0 : index
    %c0_301 = arith.constant 0 : index
    %458 = vector.load %arg4[%c8_299, %c0_300, %c0_301] : memref<9x14x240xf32, #tpu.memory_space<vmem>>, vector<1x14x240xf32>
    %459 = vector.shape_cast %458 : vector<1x14x240xf32> to vector<14x240xf32>
    %460 = arith.mulf %428, %459 : vector<14x240xf32>
    %461 = arith.addf %449, %460 : vector<14x240xf32>
    %462 = vector.extract_strided_slice %453 {offsets = [0, 0], sizes = [13, 240], strides = [1, 1]} : vector<14x240xf32> to vector<13x240xf32>
    %463 = tpu.concatenate %92, %462 in 0 : vector<1x240xf32>, vector<13x240xf32> -> vector<14x240xf32>
    %464 = arith.addf %457, %463 : vector<14x240xf32>
    %465 = vector.extract_strided_slice %461 {offsets = [1, 0], sizes = [13, 240], strides = [1, 1]} : vector<14x240xf32> to vector<13x240xf32>
    %466 = tpu.concatenate %465, %92 in 0 : vector<13x240xf32>, vector<1x240xf32> -> vector<14x240xf32>
    %467 = arith.addf %464, %466 : vector<14x240xf32>
    %c7_302 = arith.constant 7 : index
    %c0_303 = arith.constant 0 : index
    %c0_304 = arith.constant 0 : index
    %468 = vector.load %arg5[%c7_302, %c0_303, %c0_304] : memref<14x14x240xf32, #tpu.memory_space<vmem>>, vector<1x14x240xf32>
    %469 = vector.shape_cast %468 : vector<1x14x240xf32> to vector<14x240xf32>
    %470 = vector.shape_cast %467 : vector<14x240xf32> to vector<1x14x240xf32>
    tpu.vector_store %arg5[%c7_302, %c0_303, %c0_304], %470 {strides = array<i32>} : memref<14x14x240xf32, #tpu.memory_space<vmem>>, vector<1x14x240xf32>,
    %c9_305 = arith.constant 9 : index
    %c0_306 = arith.constant 0 : index
    %c0_307 = arith.constant 0 : index
    %471 = vector.load %arg1[%c9_305, %c0_306, %c0_307] : memref<14x14x240xf32, #tpu.memory_space<vmem>>, vector<1x14x240xf32>
    %472 = vector.shape_cast %471 : vector<1x14x240xf32> to vector<14x240xf32>
    %473 = arith.mulf %472, %89 : vector<14x240xf32>
    %474 = arith.addf %473, %91 : vector<14x240xf32>
    %cst_308 = arith.constant 0.000000e+00 : f32
    %475 = vector.broadcast %cst_308 : f32 to vector<14x240xf32>
    %476 = arith.maximumf %474, %475 : vector<14x240xf32>
    %c3_309 = arith.constant 3 : index
    %c0_310 = arith.constant 0 : index
    %c0_311 = arith.constant 0 : index
    %477 = vector.load %arg4[%c3_309, %c0_310, %c0_311] : memref<9x14x240xf32, #tpu.memory_space<vmem>>, vector<1x14x240xf32>
    %478 = vector.shape_cast %477 : vector<1x14x240xf32> to vector<14x240xf32>
    %479 = arith.mulf %428, %478 : vector<14x240xf32>
    %c4_312 = arith.constant 4 : index
    %c0_313 = arith.constant 0 : index
    %c0_314 = arith.constant 0 : index
    %480 = vector.load %arg4[%c4_312, %c0_313, %c0_314] : memref<9x14x240xf32, #tpu.memory_space<vmem>>, vector<1x14x240xf32>
    %481 = vector.shape_cast %480 : vector<1x14x240xf32> to vector<14x240xf32>
    %482 = arith.mulf %428, %481 : vector<14x240xf32>
    %c5_315 = arith.constant 5 : index
    %c0_316 = arith.constant 0 : index
    %c0_317 = arith.constant 0 : index
    %483 = vector.load %arg4[%c5_315, %c0_316, %c0_317] : memref<9x14x240xf32, #tpu.memory_space<vmem>>, vector<1x14x240xf32>
    %484 = vector.shape_cast %483 : vector<1x14x240xf32> to vector<14x240xf32>
    %485 = arith.mulf %428, %484 : vector<14x240xf32>
    %c0_318 = arith.constant 0 : index
    %c0_319 = arith.constant 0 : index
    %c0_320 = arith.constant 0 : index
    %486 = vector.load %arg4[%c0_318, %c0_319, %c0_320] : memref<9x14x240xf32, #tpu.memory_space<vmem>>, vector<1x14x240xf32>
    %487 = vector.shape_cast %486 : vector<1x14x240xf32> to vector<14x240xf32>
    %488 = arith.mulf %380, %487 : vector<14x240xf32>
    %489 = arith.addf %479, %488 : vector<14x240xf32>
    %c1_321 = arith.constant 1 : index
    %c0_322 = arith.constant 0 : index
    %c0_323 = arith.constant 0 : index
    %490 = vector.load %arg4[%c1_321, %c0_322, %c0_323] : memref<9x14x240xf32, #tpu.memory_space<vmem>>, vector<1x14x240xf32>
    %491 = vector.shape_cast %490 : vector<1x14x240xf32> to vector<14x240xf32>
    %492 = arith.mulf %380, %491 : vector<14x240xf32>
    %493 = arith.addf %482, %492 : vector<14x240xf32>
    %c2_324 = arith.constant 2 : index
    %c0_325 = arith.constant 0 : index
    %c0_326 = arith.constant 0 : index
    %494 = vector.load %arg4[%c2_324, %c0_325, %c0_326] : memref<9x14x240xf32, #tpu.memory_space<vmem>>, vector<1x14x240xf32>
    %495 = vector.shape_cast %494 : vector<1x14x240xf32> to vector<14x240xf32>
    %496 = arith.mulf %380, %495 : vector<14x240xf32>
    %497 = arith.addf %485, %496 : vector<14x240xf32>
    %c6_327 = arith.constant 6 : index
    %c0_328 = arith.constant 0 : index
    %c0_329 = arith.constant 0 : index
    %498 = vector.load %arg4[%c6_327, %c0_328, %c0_329] : memref<9x14x240xf32, #tpu.memory_space<vmem>>, vector<1x14x240xf32>
    %499 = vector.shape_cast %498 : vector<1x14x240xf32> to vector<14x240xf32>
    %500 = arith.mulf %476, %499 : vector<14x240xf32>
    %501 = arith.addf %489, %500 : vector<14x240xf32>
    %c7_330 = arith.constant 7 : index
    %c0_331 = arith.constant 0 : index
    %c0_332 = arith.constant 0 : index
    %502 = vector.load %arg4[%c7_330, %c0_331, %c0_332] : memref<9x14x240xf32, #tpu.memory_space<vmem>>, vector<1x14x240xf32>
    %503 = vector.shape_cast %502 : vector<1x14x240xf32> to vector<14x240xf32>
    %504 = arith.mulf %476, %503 : vector<14x240xf32>
    %505 = arith.addf %493, %504 : vector<14x240xf32>
    %c8_333 = arith.constant 8 : index
    %c0_334 = arith.constant 0 : index
    %c0_335 = arith.constant 0 : index
    %506 = vector.load %arg4[%c8_333, %c0_334, %c0_335] : memref<9x14x240xf32, #tpu.memory_space<vmem>>, vector<1x14x240xf32>
    %507 = vector.shape_cast %506 : vector<1x14x240xf32> to vector<14x240xf32>
    %508 = arith.mulf %476, %507 : vector<14x240xf32>
    %509 = arith.addf %497, %508 : vector<14x240xf32>
    %510 = vector.extract_strided_slice %501 {offsets = [0, 0], sizes = [13, 240], strides = [1, 1]} : vector<14x240xf32> to vector<13x240xf32>
    %511 = tpu.concatenate %92, %510 in 0 : vector<1x240xf32>, vector<13x240xf32> -> vector<14x240xf32>
    %512 = arith.addf %505, %511 : vector<14x240xf32>
    %513 = vector.extract_strided_slice %509 {offsets = [1, 0], sizes = [13, 240], strides = [1, 1]} : vector<14x240xf32> to vector<13x240xf32>
    %514 = tpu.concatenate %513, %92 in 0 : vector<13x240xf32>, vector<1x240xf32> -> vector<14x240xf32>
    %515 = arith.addf %512, %514 : vector<14x240xf32>
    %c8_336 = arith.constant 8 : index
    %c0_337 = arith.constant 0 : index
    %c0_338 = arith.constant 0 : index
    %516 = vector.load %arg5[%c8_336, %c0_337, %c0_338] : memref<14x14x240xf32, #tpu.memory_space<vmem>>, vector<1x14x240xf32>
    %517 = vector.shape_cast %516 : vector<1x14x240xf32> to vector<14x240xf32>
    %518 = vector.shape_cast %515 : vector<14x240xf32> to vector<1x14x240xf32>
    tpu.vector_store %arg5[%c8_336, %c0_337, %c0_338], %518 {strides = array<i32>} : memref<14x14x240xf32, #tpu.memory_space<vmem>>, vector<1x14x240xf32>,
    %c10_339 = arith.constant 10 : index
    %c0_340 = arith.constant 0 : index
    %c0_341 = arith.constant 0 : index
    %519 = vector.load %arg1[%c10_339, %c0_340, %c0_341] : memref<14x14x240xf32, #tpu.memory_space<vmem>>, vector<1x14x240xf32>
    %520 = vector.shape_cast %519 : vector<1x14x240xf32> to vector<14x240xf32>
    %521 = arith.mulf %520, %89 : vector<14x240xf32>
    %522 = arith.addf %521, %91 : vector<14x240xf32>
    %cst_342 = arith.constant 0.000000e+00 : f32
    %523 = vector.broadcast %cst_342 : f32 to vector<14x240xf32>
    %524 = arith.maximumf %522, %523 : vector<14x240xf32>
    %c3_343 = arith.constant 3 : index
    %c0_344 = arith.constant 0 : index
    %c0_345 = arith.constant 0 : index
    %525 = vector.load %arg4[%c3_343, %c0_344, %c0_345] : memref<9x14x240xf32, #tpu.memory_space<vmem>>, vector<1x14x240xf32>
    %526 = vector.shape_cast %525 : vector<1x14x240xf32> to vector<14x240xf32>
    %527 = arith.mulf %476, %526 : vector<14x240xf32>
    %c4_346 = arith.constant 4 : index
    %c0_347 = arith.constant 0 : index
    %c0_348 = arith.constant 0 : index
    %528 = vector.load %arg4[%c4_346, %c0_347, %c0_348] : memref<9x14x240xf32, #tpu.memory_space<vmem>>, vector<1x14x240xf32>
    %529 = vector.shape_cast %528 : vector<1x14x240xf32> to vector<14x240xf32>
    %530 = arith.mulf %476, %529 : vector<14x240xf32>
    %c5_349 = arith.constant 5 : index
    %c0_350 = arith.constant 0 : index
    %c0_351 = arith.constant 0 : index
    %531 = vector.load %arg4[%c5_349, %c0_350, %c0_351] : memref<9x14x240xf32, #tpu.memory_space<vmem>>, vector<1x14x240xf32>
    %532 = vector.shape_cast %531 : vector<1x14x240xf32> to vector<14x240xf32>
    %533 = arith.mulf %476, %532 : vector<14x240xf32>
    %c0_352 = arith.constant 0 : index
    %c0_353 = arith.constant 0 : index
    %c0_354 = arith.constant 0 : index
    %534 = vector.load %arg4[%c0_352, %c0_353, %c0_354] : memref<9x14x240xf32, #tpu.memory_space<vmem>>, vector<1x14x240xf32>
    %535 = vector.shape_cast %534 : vector<1x14x240xf32> to vector<14x240xf32>
    %536 = arith.mulf %428, %535 : vector<14x240xf32>
    %537 = arith.addf %527, %536 : vector<14x240xf32>
    %c1_355 = arith.constant 1 : index
    %c0_356 = arith.constant 0 : index
    %c0_357 = arith.constant 0 : index
    %538 = vector.load %arg4[%c1_355, %c0_356, %c0_357] : memref<9x14x240xf32, #tpu.memory_space<vmem>>, vector<1x14x240xf32>
    %539 = vector.shape_cast %538 : vector<1x14x240xf32> to vector<14x240xf32>
    %540 = arith.mulf %428, %539 : vector<14x240xf32>
    %541 = arith.addf %530, %540 : vector<14x240xf32>
    %c2_358 = arith.constant 2 : index
    %c0_359 = arith.constant 0 : index
    %c0_360 = arith.constant 0 : index
    %542 = vector.load %arg4[%c2_358, %c0_359, %c0_360] : memref<9x14x240xf32, #tpu.memory_space<vmem>>, vector<1x14x240xf32>
    %543 = vector.shape_cast %542 : vector<1x14x240xf32> to vector<14x240xf32>
    %544 = arith.mulf %428, %543 : vector<14x240xf32>
    %545 = arith.addf %533, %544 : vector<14x240xf32>
    %c6_361 = arith.constant 6 : index
    %c0_362 = arith.constant 0 : index
    %c0_363 = arith.constant 0 : index
    %546 = vector.load %arg4[%c6_361, %c0_362, %c0_363] : memref<9x14x240xf32, #tpu.memory_space<vmem>>, vector<1x14x240xf32>
    %547 = vector.shape_cast %546 : vector<1x14x240xf32> to vector<14x240xf32>
    %548 = arith.mulf %524, %547 : vector<14x240xf32>
    %549 = arith.addf %537, %548 : vector<14x240xf32>
    %c7_364 = arith.constant 7 : index
    %c0_365 = arith.constant 0 : index
    %c0_366 = arith.constant 0 : index
    %550 = vector.load %arg4[%c7_364, %c0_365, %c0_366] : memref<9x14x240xf32, #tpu.memory_space<vmem>>, vector<1x14x240xf32>
    %551 = vector.shape_cast %550 : vector<1x14x240xf32> to vector<14x240xf32>
    %552 = arith.mulf %524, %551 : vector<14x240xf32>
    %553 = arith.addf %541, %552 : vector<14x240xf32>
    %c8_367 = arith.constant 8 : index
    %c0_368 = arith.constant 0 : index
    %c0_369 = arith.constant 0 : index
    %554 = vector.load %arg4[%c8_367, %c0_368, %c0_369] : memref<9x14x240xf32, #tpu.memory_space<vmem>>, vector<1x14x240xf32>
    %555 = vector.shape_cast %554 : vector<1x14x240xf32> to vector<14x240xf32>
    %556 = arith.mulf %524, %555 : vector<14x240xf32>
    %557 = arith.addf %545, %556 : vector<14x240xf32>
    %558 = vector.extract_strided_slice %549 {offsets = [0, 0], sizes = [13, 240], strides = [1, 1]} : vector<14x240xf32> to vector<13x240xf32>
    %559 = tpu.concatenate %92, %558 in 0 : vector<1x240xf32>, vector<13x240xf32> -> vector<14x240xf32>
    %560 = arith.addf %553, %559 : vector<14x240xf32>
    %561 = vector.extract_strided_slice %557 {offsets = [1, 0], sizes = [13, 240], strides = [1, 1]} : vector<14x240xf32> to vector<13x240xf32>
    %562 = tpu.concatenate %561, %92 in 0 : vector<13x240xf32>, vector<1x240xf32> -> vector<14x240xf32>
    %563 = arith.addf %560, %562 : vector<14x240xf32>
    %c9_370 = arith.constant 9 : index
    %c0_371 = arith.constant 0 : index
    %c0_372 = arith.constant 0 : index
    %564 = vector.load %arg5[%c9_370, %c0_371, %c0_372] : memref<14x14x240xf32, #tpu.memory_space<vmem>>, vector<1x14x240xf32>
    %565 = vector.shape_cast %564 : vector<1x14x240xf32> to vector<14x240xf32>
    %566 = vector.shape_cast %563 : vector<14x240xf32> to vector<1x14x240xf32>
    tpu.vector_store %arg5[%c9_370, %c0_371, %c0_372], %566 {strides = array<i32>} : memref<14x14x240xf32, #tpu.memory_space<vmem>>, vector<1x14x240xf32>,
    %c11_373 = arith.constant 11 : index
    %c0_374 = arith.constant 0 : index
    %c0_375 = arith.constant 0 : index
    %567 = vector.load %arg1[%c11_373, %c0_374, %c0_375] : memref<14x14x240xf32, #tpu.memory_space<vmem>>, vector<1x14x240xf32>
    %568 = vector.shape_cast %567 : vector<1x14x240xf32> to vector<14x240xf32>
    %569 = arith.mulf %568, %89 : vector<14x240xf32>
    %570 = arith.addf %569, %91 : vector<14x240xf32>
    %cst_376 = arith.constant 0.000000e+00 : f32
    %571 = vector.broadcast %cst_376 : f32 to vector<14x240xf32>
    %572 = arith.maximumf %570, %571 : vector<14x240xf32>
    %c3_377 = arith.constant 3 : index
    %c0_378 = arith.constant 0 : index
    %c0_379 = arith.constant 0 : index
    %573 = vector.load %arg4[%c3_377, %c0_378, %c0_379] : memref<9x14x240xf32, #tpu.memory_space<vmem>>, vector<1x14x240xf32>
    %574 = vector.shape_cast %573 : vector<1x14x240xf32> to vector<14x240xf32>
    %575 = arith.mulf %524, %574 : vector<14x240xf32>
    %c4_380 = arith.constant 4 : index
    %c0_381 = arith.constant 0 : index
    %c0_382 = arith.constant 0 : index
    %576 = vector.load %arg4[%c4_380, %c0_381, %c0_382] : memref<9x14x240xf32, #tpu.memory_space<vmem>>, vector<1x14x240xf32>
    %577 = vector.shape_cast %576 : vector<1x14x240xf32> to vector<14x240xf32>
    %578 = arith.mulf %524, %577 : vector<14x240xf32>
    %c5_383 = arith.constant 5 : index
    %c0_384 = arith.constant 0 : index
    %c0_385 = arith.constant 0 : index
    %579 = vector.load %arg4[%c5_383, %c0_384, %c0_385] : memref<9x14x240xf32, #tpu.memory_space<vmem>>, vector<1x14x240xf32>
    %580 = vector.shape_cast %579 : vector<1x14x240xf32> to vector<14x240xf32>
    %581 = arith.mulf %524, %580 : vector<14x240xf32>
    %c0_386 = arith.constant 0 : index
    %c0_387 = arith.constant 0 : index
    %c0_388 = arith.constant 0 : index
    %582 = vector.load %arg4[%c0_386, %c0_387, %c0_388] : memref<9x14x240xf32, #tpu.memory_space<vmem>>, vector<1x14x240xf32>
    %583 = vector.shape_cast %582 : vector<1x14x240xf32> to vector<14x240xf32>
    %584 = arith.mulf %476, %583 : vector<14x240xf32>
    %585 = arith.addf %575, %584 : vector<14x240xf32>
    %c1_389 = arith.constant 1 : index
    %c0_390 = arith.constant 0 : index
    %c0_391 = arith.constant 0 : index
    %586 = vector.load %arg4[%c1_389, %c0_390, %c0_391] : memref<9x14x240xf32, #tpu.memory_space<vmem>>, vector<1x14x240xf32>
    %587 = vector.shape_cast %586 : vector<1x14x240xf32> to vector<14x240xf32>
    %588 = arith.mulf %476, %587 : vector<14x240xf32>
    %589 = arith.addf %578, %588 : vector<14x240xf32>
    %c2_392 = arith.constant 2 : index
    %c0_393 = arith.constant 0 : index
    %c0_394 = arith.constant 0 : index
    %590 = vector.load %arg4[%c2_392, %c0_393, %c0_394] : memref<9x14x240xf32, #tpu.memory_space<vmem>>, vector<1x14x240xf32>
    %591 = vector.shape_cast %590 : vector<1x14x240xf32> to vector<14x240xf32>
    %592 = arith.mulf %476, %591 : vector<14x240xf32>
    %593 = arith.addf %581, %592 : vector<14x240xf32>
    %c6_395 = arith.constant 6 : index
    %c0_396 = arith.constant 0 : index
    %c0_397 = arith.constant 0 : index
    %594 = vector.load %arg4[%c6_395, %c0_396, %c0_397] : memref<9x14x240xf32, #tpu.memory_space<vmem>>, vector<1x14x240xf32>
    %595 = vector.shape_cast %594 : vector<1x14x240xf32> to vector<14x240xf32>
    %596 = arith.mulf %572, %595 : vector<14x240xf32>
    %597 = arith.addf %585, %596 : vector<14x240xf32>
    %c7_398 = arith.constant 7 : index
    %c0_399 = arith.constant 0 : index
    %c0_400 = arith.constant 0 : index
    %598 = vector.load %arg4[%c7_398, %c0_399, %c0_400] : memref<9x14x240xf32, #tpu.memory_space<vmem>>, vector<1x14x240xf32>
    %599 = vector.shape_cast %598 : vector<1x14x240xf32> to vector<14x240xf32>
    %600 = arith.mulf %572, %599 : vector<14x240xf32>
    %601 = arith.addf %589, %600 : vector<14x240xf32>
    %c8_401 = arith.constant 8 : index
    %c0_402 = arith.constant 0 : index
    %c0_403 = arith.constant 0 : index
    %602 = vector.load %arg4[%c8_401, %c0_402, %c0_403] : memref<9x14x240xf32, #tpu.memory_space<vmem>>, vector<1x14x240xf32>
    %603 = vector.shape_cast %602 : vector<1x14x240xf32> to vector<14x240xf32>
    %604 = arith.mulf %572, %603 : vector<14x240xf32>
    %605 = arith.addf %593, %604 : vector<14x240xf32>
    %606 = vector.extract_strided_slice %597 {offsets = [0, 0], sizes = [13, 240], strides = [1, 1]} : vector<14x240xf32> to vector<13x240xf32>
    %607 = tpu.concatenate %92, %606 in 0 : vector<1x240xf32>, vector<13x240xf32> -> vector<14x240xf32>
    %608 = arith.addf %601, %607 : vector<14x240xf32>
    %609 = vector.extract_strided_slice %605 {offsets = [1, 0], sizes = [13, 240], strides = [1, 1]} : vector<14x240xf32> to vector<13x240xf32>
    %610 = tpu.concatenate %609, %92 in 0 : vector<13x240xf32>, vector<1x240xf32> -> vector<14x240xf32>
    %611 = arith.addf %608, %610 : vector<14x240xf32>
    %c10_404 = arith.constant 10 : index
    %c0_405 = arith.constant 0 : index
    %c0_406 = arith.constant 0 : index
    %612 = vector.load %arg5[%c10_404, %c0_405, %c0_406] : memref<14x14x240xf32, #tpu.memory_space<vmem>>, vector<1x14x240xf32>
    %613 = vector.shape_cast %612 : vector<1x14x240xf32> to vector<14x240xf32>
    %614 = vector.shape_cast %611 : vector<14x240xf32> to vector<1x14x240xf32>
    tpu.vector_store %arg5[%c10_404, %c0_405, %c0_406], %614 {strides = array<i32>} : memref<14x14x240xf32, #tpu.memory_space<vmem>>, vector<1x14x240xf32>,
    %c12_407 = arith.constant 12 : index
    %c0_408 = arith.constant 0 : index
    %c0_409 = arith.constant 0 : index
    %615 = vector.load %arg1[%c12_407, %c0_408, %c0_409] : memref<14x14x240xf32, #tpu.memory_space<vmem>>, vector<1x14x240xf32>
    %616 = vector.shape_cast %615 : vector<1x14x240xf32> to vector<14x240xf32>
    %617 = arith.mulf %616, %89 : vector<14x240xf32>
    %618 = arith.addf %617, %91 : vector<14x240xf32>
    %cst_410 = arith.constant 0.000000e+00 : f32
    %619 = vector.broadcast %cst_410 : f32 to vector<14x240xf32>
    %620 = arith.maximumf %618, %619 : vector<14x240xf32>
    %c3_411 = arith.constant 3 : index
    %c0_412 = arith.constant 0 : index
    %c0_413 = arith.constant 0 : index
    %621 = vector.load %arg4[%c3_411, %c0_412, %c0_413] : memref<9x14x240xf32, #tpu.memory_space<vmem>>, vector<1x14x240xf32>
    %622 = vector.shape_cast %621 : vector<1x14x240xf32> to vector<14x240xf32>
    %623 = arith.mulf %572, %622 : vector<14x240xf32>
    %c4_414 = arith.constant 4 : index
    %c0_415 = arith.constant 0 : index
    %c0_416 = arith.constant 0 : index
    %624 = vector.load %arg4[%c4_414, %c0_415, %c0_416] : memref<9x14x240xf32, #tpu.memory_space<vmem>>, vector<1x14x240xf32>
    %625 = vector.shape_cast %624 : vector<1x14x240xf32> to vector<14x240xf32>
    %626 = arith.mulf %572, %625 : vector<14x240xf32>
    %c5_417 = arith.constant 5 : index
    %c0_418 = arith.constant 0 : index
    %c0_419 = arith.constant 0 : index
    %627 = vector.load %arg4[%c5_417, %c0_418, %c0_419] : memref<9x14x240xf32, #tpu.memory_space<vmem>>, vector<1x14x240xf32>
    %628 = vector.shape_cast %627 : vector<1x14x240xf32> to vector<14x240xf32>
    %629 = arith.mulf %572, %628 : vector<14x240xf32>
    %c0_420 = arith.constant 0 : index
    %c0_421 = arith.constant 0 : index
    %c0_422 = arith.constant 0 : index
    %630 = vector.load %arg4[%c0_420, %c0_421, %c0_422] : memref<9x14x240xf32, #tpu.memory_space<vmem>>, vector<1x14x240xf32>
    %631 = vector.shape_cast %630 : vector<1x14x240xf32> to vector<14x240xf32>
    %632 = arith.mulf %524, %631 : vector<14x240xf32>
    %633 = arith.addf %623, %632 : vector<14x240xf32>
    %c1_423 = arith.constant 1 : index
    %c0_424 = arith.constant 0 : index
    %c0_425 = arith.constant 0 : index
    %634 = vector.load %arg4[%c1_423, %c0_424, %c0_425] : memref<9x14x240xf32, #tpu.memory_space<vmem>>, vector<1x14x240xf32>
    %635 = vector.shape_cast %634 : vector<1x14x240xf32> to vector<14x240xf32>
    %636 = arith.mulf %524, %635 : vector<14x240xf32>
    %637 = arith.addf %626, %636 : vector<14x240xf32>
    %c2_426 = arith.constant 2 : index
    %c0_427 = arith.constant 0 : index
    %c0_428 = arith.constant 0 : index
    %638 = vector.load %arg4[%c2_426, %c0_427, %c0_428] : memref<9x14x240xf32, #tpu.memory_space<vmem>>, vector<1x14x240xf32>
    %639 = vector.shape_cast %638 : vector<1x14x240xf32> to vector<14x240xf32>
    %640 = arith.mulf %524, %639 : vector<14x240xf32>
    %641 = arith.addf %629, %640 : vector<14x240xf32>
    %c6_429 = arith.constant 6 : index
    %c0_430 = arith.constant 0 : index
    %c0_431 = arith.constant 0 : index
    %642 = vector.load %arg4[%c6_429, %c0_430, %c0_431] : memref<9x14x240xf32, #tpu.memory_space<vmem>>, vector<1x14x240xf32>
    %643 = vector.shape_cast %642 : vector<1x14x240xf32> to vector<14x240xf32>
    %644 = arith.mulf %620, %643 : vector<14x240xf32>
    %645 = arith.addf %633, %644 : vector<14x240xf32>
    %c7_432 = arith.constant 7 : index
    %c0_433 = arith.constant 0 : index
    %c0_434 = arith.constant 0 : index
    %646 = vector.load %arg4[%c7_432, %c0_433, %c0_434] : memref<9x14x240xf32, #tpu.memory_space<vmem>>, vector<1x14x240xf32>
    %647 = vector.shape_cast %646 : vector<1x14x240xf32> to vector<14x240xf32>
    %648 = arith.mulf %620, %647 : vector<14x240xf32>
    %649 = arith.addf %637, %648 : vector<14x240xf32>
    %c8_435 = arith.constant 8 : index
    %c0_436 = arith.constant 0 : index
    %c0_437 = arith.constant 0 : index
    %650 = vector.load %arg4[%c8_435, %c0_436, %c0_437] : memref<9x14x240xf32, #tpu.memory_space<vmem>>, vector<1x14x240xf32>
    %651 = vector.shape_cast %650 : vector<1x14x240xf32> to vector<14x240xf32>
    %652 = arith.mulf %620, %651 : vector<14x240xf32>
    %653 = arith.addf %641, %652 : vector<14x240xf32>
    %654 = vector.extract_strided_slice %645 {offsets = [0, 0], sizes = [13, 240], strides = [1, 1]} : vector<14x240xf32> to vector<13x240xf32>
    %655 = tpu.concatenate %92, %654 in 0 : vector<1x240xf32>, vector<13x240xf32> -> vector<14x240xf32>
    %656 = arith.addf %649, %655 : vector<14x240xf32>
    %657 = vector.extract_strided_slice %653 {offsets = [1, 0], sizes = [13, 240], strides = [1, 1]} : vector<14x240xf32> to vector<13x240xf32>
    %658 = tpu.concatenate %657, %92 in 0 : vector<13x240xf32>, vector<1x240xf32> -> vector<14x240xf32>
    %659 = arith.addf %656, %658 : vector<14x240xf32>
    %c11_438 = arith.constant 11 : index
    %c0_439 = arith.constant 0 : index
    %c0_440 = arith.constant 0 : index
    %660 = vector.load %arg5[%c11_438, %c0_439, %c0_440] : memref<14x14x240xf32, #tpu.memory_space<vmem>>, vector<1x14x240xf32>
    %661 = vector.shape_cast %660 : vector<1x14x240xf32> to vector<14x240xf32>
    %662 = vector.shape_cast %659 : vector<14x240xf32> to vector<1x14x240xf32>
    tpu.vector_store %arg5[%c11_438, %c0_439, %c0_440], %662 {strides = array<i32>} : memref<14x14x240xf32, #tpu.memory_space<vmem>>, vector<1x14x240xf32>,
    %c13_441 = arith.constant 13 : index
    %c0_442 = arith.constant 0 : index
    %c0_443 = arith.constant 0 : index
    %663 = vector.load %arg1[%c13_441, %c0_442, %c0_443] : memref<14x14x240xf32, #tpu.memory_space<vmem>>, vector<1x14x240xf32>
    %664 = vector.shape_cast %663 : vector<1x14x240xf32> to vector<14x240xf32>
    %665 = arith.mulf %664, %89 : vector<14x240xf32>
    %666 = arith.addf %665, %91 : vector<14x240xf32>
    %cst_444 = arith.constant 0.000000e+00 : f32
    %667 = vector.broadcast %cst_444 : f32 to vector<14x240xf32>
    %668 = arith.maximumf %666, %667 : vector<14x240xf32>
    %c3_445 = arith.constant 3 : index
    %c0_446 = arith.constant 0 : index
    %c0_447 = arith.constant 0 : index
    %669 = vector.load %arg4[%c3_445, %c0_446, %c0_447] : memref<9x14x240xf32, #tpu.memory_space<vmem>>, vector<1x14x240xf32>
    %670 = vector.shape_cast %669 : vector<1x14x240xf32> to vector<14x240xf32>
    %671 = arith.mulf %620, %670 : vector<14x240xf32>
    %c4_448 = arith.constant 4 : index
    %c0_449 = arith.constant 0 : index
    %c0_450 = arith.constant 0 : index
    %672 = vector.load %arg4[%c4_448, %c0_449, %c0_450] : memref<9x14x240xf32, #tpu.memory_space<vmem>>, vector<1x14x240xf32>
    %673 = vector.shape_cast %672 : vector<1x14x240xf32> to vector<14x240xf32>
    %674 = arith.mulf %620, %673 : vector<14x240xf32>
    %c5_451 = arith.constant 5 : index
    %c0_452 = arith.constant 0 : index
    %c0_453 = arith.constant 0 : index
    %675 = vector.load %arg4[%c5_451, %c0_452, %c0_453] : memref<9x14x240xf32, #tpu.memory_space<vmem>>, vector<1x14x240xf32>
    %676 = vector.shape_cast %675 : vector<1x14x240xf32> to vector<14x240xf32>
    %677 = arith.mulf %620, %676 : vector<14x240xf32>
    %c0_454 = arith.constant 0 : index
    %c0_455 = arith.constant 0 : index
    %c0_456 = arith.constant 0 : index
    %678 = vector.load %arg4[%c0_454, %c0_455, %c0_456] : memref<9x14x240xf32, #tpu.memory_space<vmem>>, vector<1x14x240xf32>
    %679 = vector.shape_cast %678 : vector<1x14x240xf32> to vector<14x240xf32>
    %680 = arith.mulf %572, %679 : vector<14x240xf32>
    %681 = arith.addf %671, %680 : vector<14x240xf32>
    %c1_457 = arith.constant 1 : index
    %c0_458 = arith.constant 0 : index
    %c0_459 = arith.constant 0 : index
    %682 = vector.load %arg4[%c1_457, %c0_458, %c0_459] : memref<9x14x240xf32, #tpu.memory_space<vmem>>, vector<1x14x240xf32>
    %683 = vector.shape_cast %682 : vector<1x14x240xf32> to vector<14x240xf32>
    %684 = arith.mulf %572, %683 : vector<14x240xf32>
    %685 = arith.addf %674, %684 : vector<14x240xf32>
    %c2_460 = arith.constant 2 : index
    %c0_461 = arith.constant 0 : index
    %c0_462 = arith.constant 0 : index
    %686 = vector.load %arg4[%c2_460, %c0_461, %c0_462] : memref<9x14x240xf32, #tpu.memory_space<vmem>>, vector<1x14x240xf32>
    %687 = vector.shape_cast %686 : vector<1x14x240xf32> to vector<14x240xf32>
    %688 = arith.mulf %572, %687 : vector<14x240xf32>
    %689 = arith.addf %677, %688 : vector<14x240xf32>
    %c6_463 = arith.constant 6 : index
    %c0_464 = arith.constant 0 : index
    %c0_465 = arith.constant 0 : index
    %690 = vector.load %arg4[%c6_463, %c0_464, %c0_465] : memref<9x14x240xf32, #tpu.memory_space<vmem>>, vector<1x14x240xf32>
    %691 = vector.shape_cast %690 : vector<1x14x240xf32> to vector<14x240xf32>
    %692 = arith.mulf %668, %691 : vector<14x240xf32>
    %693 = arith.addf %681, %692 : vector<14x240xf32>
    %c7_466 = arith.constant 7 : index
    %c0_467 = arith.constant 0 : index
    %c0_468 = arith.constant 0 : index
    %694 = vector.load %arg4[%c7_466, %c0_467, %c0_468] : memref<9x14x240xf32, #tpu.memory_space<vmem>>, vector<1x14x240xf32>
    %695 = vector.shape_cast %694 : vector<1x14x240xf32> to vector<14x240xf32>
    %696 = arith.mulf %668, %695 : vector<14x240xf32>
    %697 = arith.addf %685, %696 : vector<14x240xf32>
    %c8_469 = arith.constant 8 : index
    %c0_470 = arith.constant 0 : index
    %c0_471 = arith.constant 0 : index
    %698 = vector.load %arg4[%c8_469, %c0_470, %c0_471] : memref<9x14x240xf32, #tpu.memory_space<vmem>>, vector<1x14x240xf32>
    %699 = vector.shape_cast %698 : vector<1x14x240xf32> to vector<14x240xf32>
    %700 = arith.mulf %668, %699 : vector<14x240xf32>
    %701 = arith.addf %689, %700 : vector<14x240xf32>
    %702 = vector.extract_strided_slice %693 {offsets = [0, 0], sizes = [13, 240], strides = [1, 1]} : vector<14x240xf32> to vector<13x240xf32>
    %703 = tpu.concatenate %92, %702 in 0 : vector<1x240xf32>, vector<13x240xf32> -> vector<14x240xf32>
    %704 = arith.addf %697, %703 : vector<14x240xf32>
    %705 = vector.extract_strided_slice %701 {offsets = [1, 0], sizes = [13, 240], strides = [1, 1]} : vector<14x240xf32> to vector<13x240xf32>
    %706 = tpu.concatenate %705, %92 in 0 : vector<13x240xf32>, vector<1x240xf32> -> vector<14x240xf32>
    %707 = arith.addf %704, %706 : vector<14x240xf32>
    %c12_472 = arith.constant 12 : index
    %c0_473 = arith.constant 0 : index
    %c0_474 = arith.constant 0 : index
    %708 = vector.load %arg5[%c12_472, %c0_473, %c0_474] : memref<14x14x240xf32, #tpu.memory_space<vmem>>, vector<1x14x240xf32>
    %709 = vector.shape_cast %708 : vector<1x14x240xf32> to vector<14x240xf32>
    %710 = vector.shape_cast %707 : vector<14x240xf32> to vector<1x14x240xf32>
    tpu.vector_store %arg5[%c12_472, %c0_473, %c0_474], %710 {strides = array<i32>} : memref<14x14x240xf32, #tpu.memory_space<vmem>>, vector<1x14x240xf32>,
    %c3_475 = arith.constant 3 : index
    %c0_476 = arith.constant 0 : index
    %c0_477 = arith.constant 0 : index
    %711 = vector.load %arg4[%c3_475, %c0_476, %c0_477] : memref<9x14x240xf32, #tpu.memory_space<vmem>>, vector<1x14x240xf32>
    %712 = vector.shape_cast %711 : vector<1x14x240xf32> to vector<14x240xf32>
    %713 = arith.mulf %668, %712 : vector<14x240xf32>
    %c4_478 = arith.constant 4 : index
    %c0_479 = arith.constant 0 : index
    %c0_480 = arith.constant 0 : index
    %714 = vector.load %arg4[%c4_478, %c0_479, %c0_480] : memref<9x14x240xf32, #tpu.memory_space<vmem>>, vector<1x14x240xf32>
    %715 = vector.shape_cast %714 : vector<1x14x240xf32> to vector<14x240xf32>
    %716 = arith.mulf %668, %715 : vector<14x240xf32>
    %c5_481 = arith.constant 5 : index
    %c0_482 = arith.constant 0 : index
    %c0_483 = arith.constant 0 : index
    %717 = vector.load %arg4[%c5_481, %c0_482, %c0_483] : memref<9x14x240xf32, #tpu.memory_space<vmem>>, vector<1x14x240xf32>
    %718 = vector.shape_cast %717 : vector<1x14x240xf32> to vector<14x240xf32>
    %719 = arith.mulf %668, %718 : vector<14x240xf32>
    %c0_484 = arith.constant 0 : index
    %c0_485 = arith.constant 0 : index
    %c0_486 = arith.constant 0 : index
    %720 = vector.load %arg4[%c0_484, %c0_485, %c0_486] : memref<9x14x240xf32, #tpu.memory_space<vmem>>, vector<1x14x240xf32>
    %721 = vector.shape_cast %720 : vector<1x14x240xf32> to vector<14x240xf32>
    %722 = arith.mulf %620, %721 : vector<14x240xf32>
    %723 = arith.addf %713, %722 : vector<14x240xf32>
    %c1_487 = arith.constant 1 : index
    %c0_488 = arith.constant 0 : index
    %c0_489 = arith.constant 0 : index
    %724 = vector.load %arg4[%c1_487, %c0_488, %c0_489] : memref<9x14x240xf32, #tpu.memory_space<vmem>>, vector<1x14x240xf32>
    %725 = vector.shape_cast %724 : vector<1x14x240xf32> to vector<14x240xf32>
    %726 = arith.mulf %620, %725 : vector<14x240xf32>
    %727 = arith.addf %716, %726 : vector<14x240xf32>
    %c2_490 = arith.constant 2 : index
    %c0_491 = arith.constant 0 : index
    %c0_492 = arith.constant 0 : index
    %728 = vector.load %arg4[%c2_490, %c0_491, %c0_492] : memref<9x14x240xf32, #tpu.memory_space<vmem>>, vector<1x14x240xf32>
    %729 = vector.shape_cast %728 : vector<1x14x240xf32> to vector<14x240xf32>
    %730 = arith.mulf %620, %729 : vector<14x240xf32>
    %731 = arith.addf %719, %730 : vector<14x240xf32>
    %732 = vector.extract_strided_slice %723 {offsets = [0, 0], sizes = [13, 240], strides = [1, 1]} : vector<14x240xf32> to vector<13x240xf32>
    %733 = tpu.concatenate %92, %732 in 0 : vector<1x240xf32>, vector<13x240xf32> -> vector<14x240xf32>
    %734 = arith.addf %727, %733 : vector<14x240xf32>
    %735 = vector.extract_strided_slice %731 {offsets = [1, 0], sizes = [13, 240], strides = [1, 1]} : vector<14x240xf32> to vector<13x240xf32>
    %736 = tpu.concatenate %735, %92 in 0 : vector<13x240xf32>, vector<1x240xf32> -> vector<14x240xf32>
    %737 = arith.addf %734, %736 : vector<14x240xf32>
    %c13_493 = arith.constant 13 : index
    %c0_494 = arith.constant 0 : index
    %c0_495 = arith.constant 0 : index
    %738 = vector.load %arg5[%c13_493, %c0_494, %c0_495] : memref<14x14x240xf32, #tpu.memory_space<vmem>>, vector<1x14x240xf32>
    %739 = vector.shape_cast %738 : vector<1x14x240xf32> to vector<14x240xf32>
    %740 = vector.shape_cast %737 : vector<14x240xf32> to vector<1x14x240xf32>
    tpu.vector_store %arg5[%c13_493, %c0_494, %c0_495], %740 {strides = array<i32>} : memref<14x14x240xf32, #tpu.memory_space<vmem>>, vector<1x14x240xf32>,
    return
  }
  func.func @transform_0(%arg0: i32) -> (i32, i32, i32) {
    %c0_i32 = arith.constant 0 : i32
    %c0_i32_0 = arith.constant 0 : i32
    %c0_i32_1 = arith.constant 0 : i32
    %c0_i32_2 = arith.constant 0 : i32
    return %c0_i32, %c0_i32_0, %c0_i32_1 : i32, i32, i32
  }
  func.func @transform_1(%arg0: i32) -> (i32, i32) {
    %c0_i32 = arith.constant 0 : i32
    %c0_i32_0 = arith.constant 0 : i32
    %c0_i32_1 = arith.constant 0 : i32
    return %c0_i32, %c0_i32_0 : i32, i32
  }
  func.func @transform_2(%arg0: i32) -> (i32, i32) {
    %c0_i32 = arith.constant 0 : i32
    %c0_i32_0 = arith.constant 0 : i32
    %c0_i32_1 = arith.constant 0 : i32
    return %c0_i32, %c0_i32_0 : i32, i32
  }
  func.func @transform_3(%arg0: i32) -> (i32, i32, i32) {
    %c0_i32 = arith.constant 0 : i32
    %c0_i32_0 = arith.constant 0 : i32
    %c0_i32_1 = arith.constant 0 : i32
    %c0_i32_2 = arith.constant 0 : i32
    return %c0_i32, %c0_i32_0, %c0_i32_1 : i32, i32, i32
  }
  func.func @transform_4(%arg0: i32) -> (i32, i32, i32) {
    %c0_i32 = arith.constant 0 : i32
    %c0_i32_0 = arith.constant 0 : i32
    %c0_i32_1 = arith.constant 0 : i32
    %c0_i32_2 = arith.constant 0 : i32
    return %c0_i32, %c0_i32_0, %c0_i32_1 : i32, i32, i32
  }
}

</mosaic_0001>

<bundles_post_ra>
// kernel: tpu_custom_call.1
= control target key start
LH: loop header
LB: loop body
LE: loop exit
PB: predicated region body
PF: predicated region fallthrough
CT: control target
= control target key end

     0   :  { %9 = vsyncpa [#allocation3], 0  ;;  %s4154_s0 = inlined_call_operand.hbm [shape: f32[14,14,240], index: 0, kind: input, shape index: {}]   ;;  %s4155_s1 = inlined_call_operand.hbm [shape: f32[1,240], index: 1, kind: input, shape index: {}]   ;;  %s4156_s2 = inlined_call_operand.hbm [shape: f32[1,240], index: 2, kind: input, shape index: {}]   ;;  %s4157_s3 = inlined_call_operand.hbm [shape: f32[9,14,240], index: 3, kind: input, shape index: {}]   ;;  %s4158_s4 = inlined_call_operand.hbm [shape: f32[14,14,240], index: 4, kind: output, shape index: {}]  }
   0x1   :  { %10 = vsyncpa [#allocation6], 0 }
   0x2   :  { %11 = vsyncpa [#allocation9], 0  ;;  %s31_s17 = sshll.u32 %s4155_s1, 4  ;;  %s32_s17 = int_to_ptr.hbm [resolvable:$true] %s31_s17 }
   0x3   :  { %12 = vsyncpa [#allocation4], 0  ;;  %s2689_s18 = smov [#allocation5]   ;;  %s17_s22 = sshll.u32 %s4154_s0, 4  ;;  %s18_s22 = int_to_ptr.hbm [resolvable:$true] %s17_s22 }
   0x4   :  { %s33_s19 = sshll.u32 %s2689_s18, 4  ;;  %s2690_s23 = smov [#allocation2]   ;;  %s34_s19 = int_to_ptr.vmem [resolvable:$true] %s33_s19 }
   0x5   :  { %36 = dma.hbm_to_vmem [thread:$0]  %s32_s17, 32, %s34_s19, [#allocation6]  }
   0x6   :  { %s19_s24 = sshll.u32 %s2690_s23, 4  ;;  %s2691_s25 = smov 256   ;;  %s20_s24 = int_to_ptr.vmem [resolvable:$true] %s19_s24 }
   0x7   :  { %s2692_s26 = smov 16   ;;  %s42_s28 = sshll.u32 %s4156_s2, 4  ;;  %s43_s28 = int_to_ptr.hbm [resolvable:$true] %s42_s28 }
   0x8   :  { %25 = dma.hbm_to_vmem [thread:$0]  %s18_s22, 7168, %s20_s24, [#allocation3], %s2691_s25, %s2691_s25, %s2692_s26  }
   0x9   :  { %s2693_s29 = smov [#allocation7]   ;;  %s52_s6 = sshll.u32 %s4157_s3, 4  ;;  %s53_s6 = int_to_ptr.hbm [resolvable:$true] %s52_s6 }
   0xa   :  { %s44_s30 = sshll.u32 %s2693_s29, 4  ;;  %s2694_s7 = smov [#allocation8]   ;;  %s45_s30 = int_to_ptr.vmem [resolvable:$true] %s44_s30 }
   0xb   :  { %47 = dma.hbm_to_vmem [thread:$0]  %s43_s28, 32, %s45_s30, [#allocation6]  }
   0xc   :  { %s54_s8 = sshll.u32 %s2694_s7, 4  ;;  %s55_s8 = int_to_ptr.vmem [resolvable:$true] %s54_s8 }
   0xd   :  { %60 = dma.hbm_to_vmem [thread:$0]  %s53_s6, 4608, %s55_s8, [#allocation9], %s2691_s25, %s2691_s25, %s2692_s26  }
   0xe   :  { %2681 = dma.done.wait [#allocation3], 7168  }
   0xf   :  { %2682 = vsyncadd [#allocation3], 4294960128 }
  0x10   :  { %2683 = dma.done.wait [#allocation6], 64  }
  0x11   :  { %2684 = vsyncadd [#allocation6], 4294967232 }
  0x12   :  { %2685 = dma.done.wait [#allocation9], 4608  }
  0x13   :  { %2686 = vsyncadd [#allocation9], 4294962688  ;;  %v2739_v0 = vld [vmem:[#allocation2] sm:$0xff]  ;;  %v2741_v1 = vld [vmem:[#allocation2 + $0x8] sm:$0xff]  ;;  %vm306_vm0 = vcmask 1045504   ;;  %vm315_vm1 = vcmask 916480  }
  0x14   :  { %v2743_v2 = vld [vmem:[#allocation2 + $0x10] sm:$0x3f]  ;;  %v2745_v3 = vld [vmem:[#allocation2 + $0x18] sm:$0x3f]  ;;  %v81_v4 = vmul.f32 %v2739_v0, %v2739_v0  ;;  %v82_v5 = vmul.f32 %v2741_v1, %v2741_v1  ;;  %v2753_v7 = vld [vmem:[#allocation2 + $0x20] sm:$0xff]  ;;  %vm317_vm2 = vcmask 914432  }
  0x15   :  { %v83_v6 = vmul.f32 %v2743_v2, %v2743_v2  ;;  %v2755_v8 = vld [vmem:[#allocation2 + $0x28] sm:$0xff]  ;;  %v84_v9 = vmul.f32 %v2745_v3, %v2745_v3  ;;  %v2759_v10 = vld [vmem:[#allocation2 + $0x30] sm:$0x3f]  ;;  %v2761_v11 = vld [vmem:[#allocation2 + $0x38] sm:$0x3f]  ;;  %v90_v12 = vadd.f32 %v2753_v7, %v2739_v0  ;;  %v94_v14 = vmul.f32 %v2753_v7, %v2753_v7  ;;  %s2695_s2 = smov [#allocation10]  }
  0x16   :  { %v91_v13 = vadd.f32 %v2755_v8, %v2741_v1  ;;  %v2769_v15 = vld [vmem:[#allocation2 + $0x40] sm:$0xff]  ;;  %v92_v16 = vadd.f32 %v2759_v10, %v2743_v2  ;;  %v93_v17 = vadd.f32 %v2761_v11, %v2745_v3  ;;  %v95_v18 = vmul.f32 %v2755_v8, %v2755_v8  ;;  %v2779_v20 = vld [vmem:[#allocation2 + $0x48] sm:$0xff]  ;;  %v105_v21 = vld [vmem:[#allocation2 + $0x50] sm:$0x3f]  ;;  %s2533_s3 = sshll.u32 %s2695_s2, 4  ;;  %s2535_s11 = sshll.u32 %s4158_s4, 4  ;;  %s2534_s3 = int_to_ptr.vmem [resolvable:$true] %s2533_s3  ;;  %s2536_s11 = int_to_ptr.hbm [resolvable:$true] %s2535_s11 }
  0x17   :  { %v96_v19 = vmul.f32 %v2759_v10, %v2759_v10  ;;  %v106_v22 = vld [vmem:[#allocation2 + $0x58] sm:$0x3f]  ;;  %v97_v23 = vmul.f32 %v2761_v11, %v2761_v11  ;;  %v98_v24 = vadd.f32 %v94_v14, %v81_v4  ;;  %v107_v25 = vadd.f32 %v2769_v15, %v90_v12  ;;  %v120_v27 = vld [vmem:[#allocation2 + $0x60] sm:$0xff]  ;;  %v121_v28 = vld [vmem:[#allocation2 + $0x68] sm:$0xff] }
  0x18   :  { %v108_v26 = vadd.f32 %v2779_v20, %v91_v13  ;;  %v122_v29 = vld [vmem:[#allocation2 + $0x70] sm:$0x3f]  ;;  %v99_v30 = vadd.f32 %v95_v18, %v82_v5  ;;  %v109_v32 = vadd.f32 %v105_v21, %v92_v16  ;;  %v110_v33 = vadd.f32 %v106_v22, %v93_v17  ;;  %v123_v34 = vld [vmem:[#allocation2 + $0x78] sm:$0x3f]  ;;  %v137_v43 = vld [vmem:[#allocation2 + $0x80] sm:$0xff] }
  0x19   :  { %v100_v31 = vadd.f32 %v96_v19, %v83_v6  ;;  %v101_v35 = vadd.f32 %v97_v23, %v84_v9  ;;  %v111_v36 = vmul.f32 %v2769_v15, %v2769_v15  ;;  %v112_v37 = vmul.f32 %v2779_v20, %v2779_v20  ;;  %v138_v44 = vld [vmem:[#allocation2 + $0x88] sm:$0xff]  ;;  %v139_v45 = vld [vmem:[#allocation2 + $0x90] sm:$0x3f]  ;;  %v140_v50 = vld [vmem:[#allocation2 + $0x98] sm:$0x3f] }
  0x1a   :  { %v113_v38 = vmul.f32 %v105_v21, %v105_v21  ;;  %v114_v39 = vmul.f32 %v106_v22, %v106_v22  ;;  %v124_v40 = vadd.f32 %v120_v27, %v107_v25  ;;  %v125_v41 = vadd.f32 %v121_v28, %v108_v26  ;;  %v154_v59 = vld [vmem:[#allocation2 + $0xa0] sm:$0xff]  ;;  %v155_v60 = vld [vmem:[#allocation2 + $0xa8] sm:$0xff]  ;;  %v156_v61 = vld [vmem:[#allocation2 + $0xb0] sm:$0x3f] }
  0x1b   :  { %v126_v42 = vadd.f32 %v122_v29, %v109_v32  ;;  %v115_v46 = vadd.f32 %v111_v36, %v98_v24  ;;  %v116_v47 = vadd.f32 %v112_v37, %v99_v30  ;;  %v127_v49 = vadd.f32 %v123_v34, %v110_v33  ;;  %v157_v6 = vld [vmem:[#allocation2 + $0xb8] sm:$0x3f]  ;;  %v171_v21 = vld [vmem:[#allocation2 + $0xc0] sm:$0xff]  ;;  %v172_v22 = vld [vmem:[#allocation2 + $0xc8] sm:$0xff] }
  0x1c   :  { %v117_v48 = vadd.f32 %v113_v38, %v100_v31  ;;  %v118_v51 = vadd.f32 %v114_v39, %v101_v35  ;;  %v128_v52 = vmul.f32 %v120_v27, %v120_v27  ;;  %v129_v53 = vmul.f32 %v121_v28, %v121_v28  ;;  %v173_v23 = vld [vmem:[#allocation2 + $0xd0] sm:$0x3f]  ;;  %v174_v28 = vld [vmem:[#allocation2 + $0xd8] sm:$0x3f]  ;;  %v188_v37 = vld [vmem:[#allocation2 + $0xe0] sm:$0xff] }
  0x1d   :  { %v130_v54 = vmul.f32 %v122_v29, %v122_v29  ;;  %v131_v55 = vmul.f32 %v123_v34, %v123_v34  ;;  %v141_v56 = vadd.f32 %v137_v43, %v124_v40  ;;  %v142_v57 = vadd.f32 %v138_v44, %v125_v41  ;;  %v189_v38 = vld [vmem:[#allocation2 + $0xe8] sm:$0xff]  ;;  %v190_v39 = vld [vmem:[#allocation2 + $0xf0] sm:$0x3f] }
  0x1e   :  { %v143_v58 = vadd.f32 %v139_v45, %v126_v42  ;;  %v132_v62 = vadd.f32 %v128_v52, %v115_v46  ;;  %v133_v63 = vadd.f32 %v129_v53, %v116_v47  ;;  %v144_v5 = vadd.f32 %v140_v50, %v127_v49  ;;  %v205_v53 = vld [vmem:[#allocation2 + $0x100] sm:$0xff] }
  0x1f   :  { %v134_v4 = vadd.f32 %v130_v54, %v117_v48  ;;  %v135_v9 = vadd.f32 %v131_v55, %v118_v51  ;;  %v145_v12 = vmul.f32 %v137_v43, %v137_v43  ;;  %v146_v13 = vmul.f32 %v138_v44, %v138_v44  ;;  %v191_v44 = vld [vmem:[#allocation2 + $0xf8] sm:$0x3f]  ;;  %v206_v54 = vld [vmem:[#allocation2 + $0x108] sm:$0xff]  ;;  %v207_v55 = vld [vmem:[#allocation2 + $0x110] sm:$0x3f] }
  0x20   :  { %v147_v14 = vmul.f32 %v139_v45, %v139_v45  ;;  %v148_v16 = vmul.f32 %v140_v50, %v140_v50  ;;  %v158_v17 = vadd.f32 %v154_v59, %v141_v56  ;;  %v159_v18 = vadd.f32 %v155_v60, %v142_v57 }
  0x21   :  { %v160_v19 = vadd.f32 %v156_v61, %v143_v58  ;;  %v149_v24 = vadd.f32 %v145_v12, %v132_v62  ;;  %v150_v25 = vadd.f32 %v146_v13, %v133_v63  ;;  %v161_v27 = vadd.f32 %v157_v6, %v144_v5  ;;  %v222_v13 = vld [vmem:[#allocation2 + $0x120] sm:$0xff] }
  0x22   :  { %v151_v26 = vadd.f32 %v147_v14, %v134_v4  ;;  %v152_v29 = vadd.f32 %v148_v16, %v135_v9  ;;  %v162_v30 = vmul.f32 %v154_v59, %v154_v59  ;;  %v163_v31 = vmul.f32 %v155_v60, %v155_v60  ;;  %v208_v60 = vld [vmem:[#allocation2 + $0x118] sm:$0x3f]  ;;  %v223_v14 = vld [vmem:[#allocation2 + $0x128] sm:$0xff]  ;;  %v224_v16 = vld [vmem:[#allocation2 + $0x130] sm:$0x3f] }
  0x23   :  { %v164_v32 = vmul.f32 %v156_v61, %v156_v61  ;;  %v165_v33 = vmul.f32 %v157_v6, %v157_v6  ;;  %v175_v34 = vadd.f32 %v171_v21, %v158_v17  ;;  %v176_v35 = vadd.f32 %v172_v22, %v159_v18 }
  0x24   :  { %v177_v36 = vadd.f32 %v173_v23, %v160_v19  ;;  %v166_v40 = vadd.f32 %v162_v30, %v149_v24  ;;  %v167_v41 = vadd.f32 %v163_v31, %v150_v25  ;;  %v178_v43 = vadd.f32 %v174_v28, %v161_v27  ;;  %v239_v31 = vld [vmem:[#allocation2 + $0x140] sm:$0xff] }
  0x25   :  { %v168_v42 = vadd.f32 %v164_v32, %v151_v26  ;;  %v169_v45 = vadd.f32 %v165_v33, %v152_v29  ;;  %v179_v46 = vmul.f32 %v171_v21, %v171_v21  ;;  %v180_v47 = vmul.f32 %v172_v22, %v172_v22  ;;  %v225_v22 = vld [vmem:[#allocation2 + $0x138] sm:$0x3f]  ;;  %v240_v32 = vld [vmem:[#allocation2 + $0x148] sm:$0xff]  ;;  %v241_v33 = vld [vmem:[#allocation2 + $0x150] sm:$0x3f] }
  0x26   :  { %v181_v48 = vmul.f32 %v173_v23, %v173_v23  ;;  %v182_v49 = vmul.f32 %v174_v28, %v174_v28  ;;  %v192_v50 = vadd.f32 %v188_v37, %v175_v34  ;;  %v193_v51 = vadd.f32 %v189_v38, %v176_v35 }
  0x27   :  { %v194_v52 = vadd.f32 %v190_v39, %v177_v36  ;;  %v183_v56 = vadd.f32 %v179_v46, %v166_v40  ;;  %v184_v57 = vadd.f32 %v180_v47, %v167_v41  ;;  %v195_v59 = vadd.f32 %v191_v44, %v178_v43  ;;  %v256_v47 = vld [vmem:[#allocation2 + $0x160] sm:$0xff] }
  0x28   :  { %v185_v58 = vadd.f32 %v181_v48, %v168_v42  ;;  %v186_v61 = vadd.f32 %v182_v49, %v169_v45  ;;  %v196_v62 = vmul.f32 %v188_v37, %v188_v37  ;;  %v197_v63 = vmul.f32 %v189_v38, %v189_v38  ;;  %v242_v38 = vld [vmem:[#allocation2 + $0x158] sm:$0x3f]  ;;  %v257_v48 = vld [vmem:[#allocation2 + $0x168] sm:$0xff]  ;;  %v258_v49 = vld [vmem:[#allocation2 + $0x170] sm:$0x3f] }
  0x29   :  { %v198_v4 = vmul.f32 %v190_v39, %v190_v39  ;;  %v199_v5 = vmul.f32 %v191_v44, %v191_v44  ;;  %v209_v6 = vadd.f32 %v205_v53, %v192_v50  ;;  %v210_v9 = vadd.f32 %v206_v54, %v193_v51 }
  0x2a   :  { %v211_v12 = vadd.f32 %v207_v55, %v194_v52  ;;  %v200_v17 = vadd.f32 %v196_v62, %v183_v56  ;;  %v201_v18 = vadd.f32 %v197_v63, %v184_v57  ;;  %v212_v21 = vadd.f32 %v208_v60, %v195_v59  ;;  %v273_v63 = vld [vmem:[#allocation2 + $0x180] sm:$0xff] }
  0x2b   :  { %v202_v19 = vadd.f32 %v198_v4, %v185_v58  ;;  %v203_v23 = vadd.f32 %v199_v5, %v186_v61  ;;  %v213_v24 = vmul.f32 %v205_v53, %v205_v53  ;;  %v214_v25 = vmul.f32 %v206_v54, %v206_v54  ;;  %v259_v54 = vld [vmem:[#allocation2 + $0x178] sm:$0x3f]  ;;  %v274_v4 = vld [vmem:[#allocation2 + $0x188] sm:$0xff]  ;;  %v275_v5 = vld [vmem:[#allocation2 + $0x190] sm:$0x3f] }
  0x2c   :  { %v215_v26 = vmul.f32 %v207_v55, %v207_v55  ;;  %v216_v27 = vmul.f32 %v208_v60, %v208_v60  ;;  %v226_v28 = vadd.f32 %v222_v13, %v209_v6  ;;  %v227_v29 = vadd.f32 %v223_v14, %v210_v9 }
  0x2d   :  { %v228_v30 = vadd.f32 %v224_v16, %v211_v12  ;;  %v217_v34 = vadd.f32 %v213_v24, %v200_v17  ;;  %v218_v35 = vadd.f32 %v214_v25, %v201_v18  ;;  %v229_v37 = vadd.f32 %v225_v22, %v212_v21  ;;  %v290_v25 = vld [vmem:[#allocation2 + $0x1a0] sm:$0xff] }
  0x2e   :  { %v219_v36 = vadd.f32 %v215_v26, %v202_v19  ;;  %v220_v39 = vadd.f32 %v216_v27, %v203_v23  ;;  %v230_v40 = vmul.f32 %v222_v13, %v222_v13  ;;  %v231_v41 = vmul.f32 %v223_v14, %v223_v14  ;;  %v276_v14 = vld [vmem:[#allocation2 + $0x198] sm:$0x3f]  ;;  %v291_v26 = vld [vmem:[#allocation2 + $0x1a8] sm:$0xff]  ;;  %v292_v27 = vld [vmem:[#allocation2 + $0x1b0] sm:$0x3f] }
  0x2f   :  { %v232_v42 = vmul.f32 %v224_v16, %v224_v16  ;;  %v233_v43 = vmul.f32 %v225_v22, %v225_v22  ;;  %v243_v44 = vadd.f32 %v239_v31, %v226_v28  ;;  %v244_v45 = vadd.f32 %v240_v32, %v227_v29 }
  0x30   :  { %v245_v46 = vadd.f32 %v241_v33, %v228_v30  ;;  %v234_v50 = vadd.f32 %v230_v40, %v217_v34  ;;  %v235_v51 = vadd.f32 %v231_v41, %v218_v35  ;;  %v246_v53 = vadd.f32 %v242_v38, %v229_v37 }
  0x31   :  { %v236_v52 = vadd.f32 %v232_v42, %v219_v36  ;;  %v237_v55 = vadd.f32 %v233_v43, %v220_v39  ;;  %v247_v56 = vmul.f32 %v239_v31, %v239_v31  ;;  %v248_v57 = vmul.f32 %v240_v32, %v240_v32  ;;  %v293_v32 = vld [vmem:[#allocation2 + $0x1b8] sm:$0x3f] }
  0x32   :  { %v249_v58 = vmul.f32 %v241_v33, %v241_v33  ;;  %v250_v59 = vmul.f32 %v242_v38, %v242_v38  ;;  %v260_v60 = vadd.f32 %v256_v47, %v243_v44  ;;  %v261_v61 = vadd.f32 %v257_v48, %v244_v45 }
  0x33   :  { %v262_v62 = vadd.f32 %v258_v49, %v245_v46  ;;  %v251_v6 = vadd.f32 %v247_v56, %v234_v50  ;;  %v252_v9 = vadd.f32 %v248_v57, %v235_v51  ;;  %v263_v13 = vadd.f32 %v259_v54, %v246_v53 }
  0x34   :  { %v253_v12 = vadd.f32 %v249_v58, %v236_v52  ;;  %v254_v16 = vadd.f32 %v250_v59, %v237_v55  ;;  %v264_v17 = vmul.f32 %v256_v47, %v256_v47  ;;  %v265_v18 = vmul.f32 %v257_v48, %v257_v48 }
  0x35   :  { %v266_v19 = vmul.f32 %v258_v49, %v258_v49  ;;  %v267_v21 = vmul.f32 %v259_v54, %v259_v54  ;;  %v277_v22 = vadd.f32 %v273_v63, %v260_v60  ;;  %v278_v23 = vadd.f32 %v274_v4, %v261_v61 }
  0x36   :  { %v279_v24 = vadd.f32 %v275_v5, %v262_v62  ;;  %v268_v28 = vadd.f32 %v264_v17, %v251_v6  ;;  %v269_v29 = vadd.f32 %v265_v18, %v252_v9  ;;  %v280_v31 = vadd.f32 %v276_v14, %v263_v13 }
  0x37   :  { %v270_v30 = vadd.f32 %v266_v19, %v253_v12  ;;  %v271_v33 = vadd.f32 %v267_v21, %v254_v16  ;;  %v281_v34 = vmul.f32 %v273_v63, %v273_v63  ;;  %v282_v35 = vmul.f32 %v274_v4, %v274_v4 }
  0x38   :  { %v283_v36 = vmul.f32 %v275_v5, %v275_v5  ;;  %v284_v37 = vmul.f32 %v276_v14, %v276_v14  ;;  %v294_v38 = vadd.f32 %v290_v25, %v277_v22  ;;  %v295_v39 = vadd.f32 %v291_v26, %v278_v23 }
  0x39   :  { %v296_v40 = vadd.f32 %v292_v27, %v279_v24  ;;  %v285_v41 = vadd.f32 %v281_v34, %v268_v28  ;;  %v286_v42 = vadd.f32 %v282_v35, %v269_v29  ;;  %v297_v44 = vadd.f32 %v293_v32, %v280_v31 }
  0x3a   :  { %v287_v43 = vadd.f32 %v283_v36, %v270_v30  ;;  %v288_v45 = vadd.f32 %v284_v37, %v271_v33  ;;  %v298_v46 = vmul.f32 %v290_v25, %v290_v25  ;;  %v299_v47 = vmul.f32 %v291_v26, %v291_v26 }
  0x3b   :  { %v300_v48 = vmul.f32 %v292_v27, %v292_v27  ;;  %v301_v49 = vmul.f32 %v293_v32, %v293_v32  ;;  %v307_v53 = vsel %vm306_vm0, %v296_v40, 0.0  ;;  %v316_v56 = vsel %vm315_vm1, %v295_v39, 0.0 }
  0x3c   :  { %v302_v50 = vadd.f32 %v298_v46, %v285_v41  ;;  %v303_v51 = vadd.f32 %v299_v47, %v286_v42  ;;  %v308_v55 = vadd.f32 %v307_v53, %v294_v38  ;;  %v318_v57 = vsel %vm317_vm2, %v297_v44, 0.0 }
  0x3d   :  { %v304_v52 = vadd.f32 %v300_v48, %v287_v43  ;;  %v305_v54 = vadd.f32 %v301_v49, %v288_v45  ;;  %v319_v58 = vadd.f32 %v318_v57, %v316_v56  ;;  %vm379_vm9 = vcmask 1040384  }
  0x3e   :  { %v334_v60 = vsel %vm315_vm1, %v303_v51, 0.0  ;;  %v309_v61 = vrot.slane %v308_v55, 4  ;;  %vm516_vm10 = vcmask 1046528   ;;  %vm527_vm11 = vcmask 1044480  }
  0x3f   :  { %v326_v59 = vsel %vm306_vm0, %v304_v52, 0.0  ;;  %v335_v63 = vsel %vm317_vm2, %v305_v54, 0.0  ;;  %v320_v4 = vrot.slane %v319_v58, 4 }
  0x40   :  { %v327_v62 = vadd.f32 %v326_v59, %v302_v50  ;;  %v336_v5 = vadd.f32 %v335_v63, %v334_v60  ;;  %v310_v6 = vadd.f32 %v309_v61, %v308_v55  ;;  %v353_v60 = vld [vmem:[#allocation5] sm:$0x3] }
  0x41   :  { %v321_v12 = vadd.f32 %v320_v4, %v319_v58 }
  0x42   :  { %v328_v9 = vrot.slane %v327_v62, 4  ;;  %v337_v13 = vrot.slane %v336_v5, 4  ;;  %v311_v14 = vrot.slane %v310_v6, 2 }
  0x43   :  { %v322_v17 = vrot.slane %v321_v12, 2 }
  0x44   :  { %v329_v16 = vadd.f32 %v328_v9, %v327_v62  ;;  %v338_v18 = vadd.f32 %v337_v13, %v336_v5  ;;  %v312_v19 = vadd.f32 %v311_v14, %v310_v6 }
  0x45   :  { %v323_v22 = vadd.f32 %v322_v17, %v321_v12  ;;  %v383_v12 = vld [vmem:[#allocation7] sm:$0x3]  ;;  %v540_v17 = vld [vmem:[#allocation2 + $0x50] sm:$0x3f] }
  0x46   :  { %v330_v21 = vrot.slane %v329_v16, 2  ;;  %v339_v23 = vrot.slane %v338_v18, 2  ;;  %v313_v24 = vrot.slane %v312_v19, 1 }
  0x47   :  { %v324_v26 = vrot.slane %v323_v22, 1 }
  0x48   :  { %v331_v25 = vadd.f32 %v330_v21, %v329_v16  ;;  %v340_v27 = vadd.f32 %v339_v23, %v338_v18  ;;  %v314_v28 = vadd.f32 %v313_v24, %v312_v19  ;;  %v541_v23 = vld [vmem:[#allocation2 + $0x58] sm:$0x3f] }
  0x49   :  { %v325_v30 = vadd.f32 %v324_v26, %v323_v22 }
  0x4a   :  { %v332_v29 = vrot.slane %v331_v25, 1  ;;  %v341_v31 = vrot.slane %v340_v27, 1  ;;  %v343_v33 = vmul.f32 0.0051020407, %v314_v28  ;;  %v699_v28 = vld [vmem:[#allocation2 + $0x70] sm:$0x3f] }
  0x4b   :  { %v344_v35 = vmul.f32 0.0051020407, %v325_v30 }
  0x4c   :  { %v333_v32 = vadd.f32 %v332_v29, %v331_v25  ;;  %v342_v34 = vadd.f32 %v341_v31, %v340_v27  ;;  %v347_v37 = vmul.f32 %v343_v33, %v343_v33 }
  0x4d   :  { %v348_v39 = vmul.f32 %v344_v35, %v344_v35 }
  0x4e   :  { %v345_v36 = vmul.f32 0.0051020407, %v333_v32  ;;  %v346_v38 = vmul.f32 0.0051020407, %v342_v34  ;;  %v2847_v34 = vld [vmem:[#allocation8 + $0x80] sm:$0xff] }
  0x50   :  { %v349_v40 = vsub.f32 %v345_v36, %v347_v37  ;;  %v350_v41 = vsub.f32 %v346_v38, %v348_v39  ;;  %v2851_v36 = vld [vmem:[#allocation8 + $0xc0] sm:$0xff] }
  0x51   :  { %v2853_v37 = vld [vmem:[#allocation8 + $0xe0] sm:$0xff] }
  0x52   :  { %v351_v42 = vmax.f32 %v349_v40, 0.0  ;;  %v352_v43 = vmax.f32 %v350_v41, 0.0  ;;  %v2855_v38 = vld [vmem:[#allocation8 + $0x100] sm:$0xff] }
  0x54   :  { %v354_v44 = vadd.f32 1e-05, %v351_v42  ;;  %v355_v45 = vadd.f32 1e-05, %v352_v43 }
  0x56   :  { %2557 = vrsqrt.f32 %v354_v44  ;;  %vm362_vm3 = vweird.f32 %v354_v44  ;;  %vm372_vm5 = vweird.f32 %v355_v45 }
  0x57   :  { %2559 = vrsqrt.f32 %v355_v45 }
  0x5c   :  { %v2558_v46 = vpop.eup %2557 }
  0x5d   :  { %v2560_v47 = vpop.eup %2559  ;;  %v357_v48 = vmul.f32 %v2558_v46, %v354_v44  ;;  %vm363_vm4 = vweird.f32 %v2558_v46 }
  0x5e   :  { %v367_v49 = vmul.f32 %v2560_v47, %v355_v45  ;;  %vm373_vm6 = vweird.f32 %v2560_v47  ;;  %vm364_vm7 = vmor %vm362_vm3, %vm363_vm4 }
  0x5f   :  { %v358_v50 = vmul.f32 %v2558_v46, %v357_v48  ;;  %vm374_vm8 = vmor %vm372_vm5, %vm373_vm6 }
  0x60   :  { %v368_v51 = vmul.f32 %v2560_v47, %v367_v49 }
  0x61   :  { %v359_v52 = vmul.f32 0.5, %v358_v50 }
  0x62   :  { %v369_v53 = vmul.f32 0.5, %v368_v51 }
  0x63   :  { %v360_v54 = vsub.f32 1.5, %v359_v52  ;;  %v2877_v52 = vld [vmem:[#allocation8 + $0x68] sm:$0xff] }
  0x64   :  { %v370_v55 = vsub.f32 1.5, %v369_v53  ;;  %v448_v53 = vld [vmem:[#allocation8 + $0xb8] sm:$0x3f] }
  0x65   :  { %v361_v56 = vmul.f32 %v2558_v46, %v360_v54 }
  0x66   :  { %v371_v57 = vmul.f32 %v2560_v47, %v370_v55 }
  0x67   :  { %v365_v58 = vsel %vm364_vm7, %v2558_v46, %v361_v56 }
  0x68   :  { %v375_v59 = vsel %vm374_vm8, %v2560_v47, %v371_v57  ;;  %v482_v47 = vld [vmem:[#allocation8 + $0x110] sm:$0x3f] }
  0x69   :  { %v378_v61 = vrot.slane %v375_v59, 7  ;;  %v2888_v59 = vld [vmem:[#allocation8 + $0xa8] sm:$0xff] }
  0x6b   :  { %v380_v62 = vsel %vm379_vm9, %v365_v58, %v378_v61  ;;  %v2886_v58 = vld [vmem:[#allocation8 + $0x88] sm:$0xff] }
  0x6c   :  { %v382_v63 = vmul.f32 %v380_v62, %v353_v60  ;;  %v2890_v60 = vld [vmem:[#allocation8 + $0xc8] sm:$0xff] }
  0x6e   :  { %v2794_v4 = vperm.slane %v382_v63, 0  ;;  %v2796_v5 = vperm.slane %v382_v63, 1 }
  0x70   :  { %v389_v6 = vmul.f32 %v2794_v4, %v343_v33  ;;  %v390_v9 = vmul.f32 %v2796_v5, %v344_v35  ;;  %v402_v16 = vmul.f32 %v2794_v4, %v2739_v0  ;;  %v404_v19 = vmul.f32 %v2794_v4, %v2743_v2  ;;  %v447_v33 = vld [vmem:[#allocation8 + $0xb0] sm:$0x3f]  ;;  %v2849_v35 = vld [vmem:[#allocation8 + $0xa0] sm:$0xff] }
  0x71   :  { %v414_v21 = vmul.f32 %v2794_v4, %v2753_v7  ;;  %v416_v22 = vmul.f32 %v2794_v4, %v2759_v10  ;;  %v403_v24 = vmul.f32 %v2796_v5, %v2741_v1  ;;  %v405_v25 = vmul.f32 %v2796_v5, %v2745_v3  ;;  %v697_v1 = vld [vmem:[#allocation2 + $0x60] sm:$0xff] }
  0x72   :  { %v393_v13 = vrot.slane %v390_v9, 7  ;;  %v415_v0 = vmul.f32 %v2796_v5, %v2755_v8  ;;  %v417_v26 = vmul.f32 %v2796_v5, %v2761_v11  ;;  %v2823_v7 = vmul.f32 %v2794_v4, %v2769_v15  ;;  %v2899_v9 = vld [vmem:[#allocation8 + $0xe8] sm:$0xff] }
  0x73   :  { %v2826_v10 = vmul.f32 %v540_v17, %v2794_v4  ;;  %v2830_v3 = vmul.f32 %v2796_v5, %v2779_v20  ;;  %v2833_v8 = vmul.f32 %v541_v23, %v2796_v5  ;;  %v2836_v11 = vmul.f32 %v697_v1, %v2794_v4  ;;  %v2845_v20 = vld [vmem:[#allocation8 + $0x60] sm:$0xff] }
  0x74   :  { %v394_v14 = vsel %vm379_vm9, %v389_v6, %v393_v13  ;;  %v2839_v29 = vmul.f32 %v699_v28, %v2794_v4  ;;  %v483_v13 = vld [vmem:[#allocation8 + $0x118] sm:$0x3f]  ;;  %v438_v28 = vld [vmem:[#allocation8 + $0x90] sm:$0x3f] }
  0x75   :  { %v396_v18 = vsub.f32 %v383_v12, %v394_v14  ;;  %v2901_v12 = vld [vmem:[#allocation8 + $0x108] sm:$0xff] }
  0x77   :  { %v2817_v2 = vperm.slane %v396_v18, 0  ;;  %v2819_v27 = vperm.slane %v396_v18, 1 }
  0x79   :  { %v406_v15 = vadd.f32 %v402_v16, %v2817_v2  ;;  %v408_v30 = vadd.f32 %v404_v19, %v2817_v2  ;;  %v418_v31 = vadd.f32 %v414_v21, %v2817_v2  ;;  %v420_v32 = vadd.f32 %v416_v22, %v2817_v2  ;;  %v429_v19 = vld [vmem:[#allocation8 + $0x70] sm:$0x3f] }
  0x7a   :  { %v407_v39 = vadd.f32 %v403_v24, %v2819_v27  ;;  %v409_v40 = vadd.f32 %v405_v25, %v2819_v27  ;;  %v419_v41 = vadd.f32 %v415_v0, %v2819_v27  ;;  %v421_v42 = vadd.f32 %v417_v26, %v2819_v27 }
  0x7b   :  { %v2861_v43 = vmax.f32 %v406_v15, 0.0  ;;  %v2863_v44 = vmax.f32 %v408_v30, 0.0  ;;  %v2865_v45 = vmax.f32 %v418_v31, 0.0  ;;  %v2867_v46 = vmax.f32 %v420_v32, 0.0  ;;  %v456_v15 = vld [vmem:[#allocation8 + $0xd0] sm:$0x3f] }
  0x7c   :  { %v2869_v48 = vmax.f32 %v407_v39, 0.0  ;;  %v2871_v49 = vmax.f32 %v409_v40, 0.0  ;;  %v2873_v50 = vmax.f32 %v419_v41, 0.0  ;;  %v2875_v51 = vmax.f32 %v421_v42, 0.0 }
  0x7d   :  { %v431_v54 = vmul.f32 %v2845_v20, %v2861_v43  ;;  %v440_v55 = vmul.f32 %v2847_v34, %v2861_v43  ;;  %v449_v56 = vmul.f32 %v2849_v35, %v2861_v43  ;;  %v451_v57 = vmul.f32 %v447_v33, %v2863_v44 }
  0x7e   :  { %v458_v61 = vmul.f32 %v2851_v36, %v2865_v45  ;;  %v471_v62 = vmul.f32 %v2853_v37, %v2865_v45  ;;  %v484_v63 = vmul.f32 %v2855_v38, %v2865_v45  ;;  %v486_v6 = vmul.f32 %v482_v47, %v2867_v46  ;;  %v469_v47 = vld [vmem:[#allocation8 + $0xf0] sm:$0x3f] }
  0x7f   :  { %v432_v14 = vmul.f32 %v2877_v52, %v2869_v48  ;;  %v441_v16 = vmul.f32 %v2886_v58, %v2869_v48  ;;  %v450_v17 = vmul.f32 %v2888_v59, %v2869_v48  ;;  %v452_v18 = vmul.f32 %v448_v53, %v2871_v49  ;;  %v430_v53 = vld [vmem:[#allocation8 + $0x78] sm:$0x3f] }
  0x80   :  { %v462_v21 = vadd.f32 %v458_v61, %v431_v54  ;;  %v475_v22 = vadd.f32 %v471_v62, %v440_v55  ;;  %v488_v23 = vadd.f32 %v484_v63, %v449_v56  ;;  %v490_v24 = vadd.f32 %v486_v6, %v451_v57  ;;  %v439_v61 = vld [vmem:[#allocation8 + $0x98] sm:$0x3f] }
  0x81   :  { %v459_v25 = vmul.f32 %v2890_v60, %v2873_v50  ;;  %v472_v0 = vmul.f32 %v2899_v9, %v2873_v50  ;;  %v485_v26 = vmul.f32 %v2901_v12, %v2873_v50  ;;  %v487_v1 = vmul.f32 %v483_v13, %v2875_v51 }
  0x82   :  { %v496_v30 = vrot.slane %v462_v21, 7  ;;  %v517_v31 = vrot.slane %v488_v23, 1  ;;  %v518_v32 = vrot.slane %v490_v24, 1  ;;  %v433_v33 = vmul.f32 %v429_v19, %v2863_v44  ;;  %v457_v19 = vld [vmem:[#allocation8 + $0xd8] sm:$0x3f] }
  0x83   :  { %v463_v39 = vadd.f32 %v459_v25, %v432_v14  ;;  %v476_v40 = vadd.f32 %v472_v0, %v441_v16  ;;  %v489_v41 = vadd.f32 %v485_v26, %v450_v17  ;;  %v491_v42 = vadd.f32 %v487_v1, %v452_v18  ;;  %v470_v21 = vld [vmem:[#allocation8 + $0xf8] sm:$0x3f] }
  0x84   :  { %v506_v54 = vsel %vm379_vm9, 0.0, %v496_v30  ;;  %v519_v55 = vsel %vm516_vm10, %v517_v31, %v518_v32  ;;  %v442_v56 = vmul.f32 %v438_v28, %v2863_v44  ;;  %v460_v57 = vmul.f32 %v456_v15, %v2867_v46 }
  0x85   :  { %v508_v62 = vadd.f32 %v506_v54, %v475_v22  ;;  %v497_v63 = vrot.slane %v463_v39, 7  ;;  %v520_v6 = vrot.slane %v489_v41, 1  ;;  %v521_v13 = vrot.slane %v491_v42, 1  ;;  %v572_v39 = vld [vmem:[#allocation8 + $0xb0] sm:$0x3f]  ;;  %v2940_v54 = vld [vmem:[#allocation8 + $0x20] sm:$0xff] }
  0x86   :  { %v464_v14 = vadd.f32 %v460_v57, %v433_v33  ;;  %v473_v16 = vmul.f32 %v469_v47, %v2867_v46  ;;  %v528_v17 = vsel %vm527_vm11, %v518_v32, 0.0  ;;  %v434_v18 = vmul.f32 %v430_v53, %v2871_v49  ;;  %v2938_v53 = vld [vmem:[#allocation8] sm:$0xff] }
  0x87   :  { %v530_v23 = vadd.f32 %v519_v55, %v508_v62  ;;  %v507_v24 = vsel %vm379_vm9, 0.0, %v497_v63  ;;  %v522_v25 = vsel %vm516_vm10, %v520_v6, %v521_v13  ;;  %v443_v0 = vmul.f32 %v439_v61, %v2871_v49  ;;  %v2942_v55 = vld [vmem:[#allocation8 + $0x40] sm:$0xff] }
  0x88   :  { %v509_v22 = vadd.f32 %v507_v24, %v476_v40  ;;  %v477_v26 = vadd.f32 %v473_v16, %v442_v56  ;;  %v498_v1 = vrot.slane %v464_v14, 7  ;;  %v461_v28 = vmul.f32 %v457_v19, %v2875_v51 }
  0x89   :  { %534 = vst [vmem:[#allocation10] sm:$0xff] %v530_v23  ;;  %v474_v15 = vmul.f32 %v470_v21, %v2875_v51  ;;  %v529_v31 = vsel %vm527_vm11, %v521_v13, 0.0  ;;  %v546_v32 = vadd.f32 %v2823_v7, %v2817_v2  ;;  %v548_v33 = vadd.f32 %v2826_v10, %v2817_v2  ;;  %v606_v10 = vld [vmem:[#allocation8 + $0x50] sm:$0x3f] }
  0x8a   :  { %v531_v41 = vadd.f32 %v522_v25, %v509_v22  ;;  %v499_v42 = vsel %vm379_vm9, %v496_v30, %v498_v1  ;;  %v465_v40 = vadd.f32 %v461_v28, %v434_v18  ;;  %v558_v47 = vmul.f32 %v2845_v20, %v2865_v45  ;;  %v642_v21 = vld [vmem:[#allocation8 + $0x110] sm:$0x3f] }
  0x8b   :  { %v510_v56 = vadd.f32 %v499_v42, %v477_v26  ;;  %v478_v57 = vadd.f32 %v474_v15, %v443_v0  ;;  %v2944_v7 = vmax.f32 %v546_v32, 0.0  ;;  %v2946_v61 = vmax.f32 %v548_v33, 0.0  ;;  %v573_v42 = vld [vmem:[#allocation8 + $0xb8] sm:$0x3f] }
  0x8c   :  { %535 = vst.msk [vmem:[#allocation10 + $0x8] sm:$0xff] %vm315_vm1, %v531_v41  ;;  %v500_v30 = vrot.slane %v465_v40, 7  ;;  %v566_v62 = vmul.f32 %v2847_v34, %v2865_v45  ;;  %v574_v6 = vmul.f32 %v2849_v35, %v2865_v45  ;;  %v576_v13 = vmul.f32 %v572_v39, %v2867_v46  ;;  %v2975_v40 = vld [vmem:[#allocation8 + $0x8] sm:$0xff] }
  0x8d   :  { %v532_v19 = vadd.f32 %v528_v17, %v510_v56  ;;  %v582_v14 = vmul.f32 %v2938_v53, %v2861_v43  ;;  %v595_v16 = vmul.f32 %v2940_v54, %v2861_v43  ;;  %v608_v18 = vmul.f32 %v2942_v55, %v2861_v43 }
  0x8e   :  { %v501_v23 = vsel %vm379_vm9, %v497_v63, %v500_v30  ;;  %v610_v24 = vmul.f32 %v606_v10, %v2863_v44  ;;  %v620_v25 = vmul.f32 %v2944_v7, %v2851_v36  ;;  %v632_v17 = vmul.f32 %v2944_v7, %v2853_v37  ;;  %v2981_v30 = vld [vmem:[#allocation8 + $0x28] sm:$0xff] }
  0x8f   :  { %536 = vst [vmem:[#allocation10 + $0x10] sm:$0x3f] %v532_v19  ;;  %v511_v0 = vadd.f32 %v501_v23, %v478_v57  ;;  %v586_v22 = vadd.f32 %v582_v14, %v558_v47  ;;  %v599_v26 = vadd.f32 %v595_v16, %v566_v62  ;;  %v612_v1 = vadd.f32 %v608_v18, %v574_v6 }
  0x90   :  { %v614_v28 = vadd.f32 %v610_v24, %v576_v13  ;;  %v644_v43 = vmul.f32 %v2944_v7, %v2855_v38  ;;  %v646_v15 = vmul.f32 %v642_v21, %v2946_v61  ;;  %v547_v63 = vadd.f32 %v2830_v3, %v2819_v27  ;;  %v2983_v3 = vld [vmem:[#allocation8 + $0x48] sm:$0xff] }
  0x91   :  { %v533_v32 = vadd.f32 %v529_v31, %v511_v0  ;;  %v2971_v33 = vadd.f32 %v620_v25, %v586_v22  ;;  %v636_v39 = vadd.f32 %v632_v17, %v599_v26  ;;  %v549_v41 = vadd.f32 %v2833_v8, %v2819_v27  ;;  %v607_v31 = vld [vmem:[#allocation8 + $0x58] sm:$0x3f] }
  0x92   :  { %v648_v47 = vadd.f32 %v644_v43, %v612_v1  ;;  %v650_v56 = vadd.f32 %v646_v15, %v614_v28  ;;  %v2977_v57 = vmax.f32 %v547_v63, 0.0  ;;  %v559_v10 = vmul.f32 %v2877_v52, %v2873_v50  ;;  %v643_v17 = vld [vmem:[#allocation8 + $0x118] sm:$0x3f]  ;;  %v556_v28 = vld [vmem:[#allocation8 + $0x70] sm:$0x3f] }
  0x93   :  { %537 = vst.msk [vmem:[#allocation10 + $0x18] sm:$0x3f] %vm317_vm2, %v533_v32  ;;  %v4159_v62 = vrot.slane %v2971_v33, 7  ;;  %v2987_v8 = vmax.f32 %v549_v41, 0.0  ;;  %v567_v6 = vmul.f32 %v2886_v58, %v2873_v50  ;;  %v575_v13 = vmul.f32 %v2888_v59, %v2873_v50  ;;  %v564_v43 = vld [vmem:[#allocation8 + $0x90] sm:$0x3f] }
  0x94   :  { %v676_v19 = vrot.slane %v648_v47, 1  ;;  %v677_v14 = vrot.slane %v650_v56, 1  ;;  %v577_v16 = vmul.f32 %v573_v42, %v2875_v51  ;;  %v583_v18 = vmul.f32 %v2975_v40, %v2869_v48  ;;  %v580_v15 = vld [vmem:[#allocation8 + $0x10] sm:$0x3f] }
  0x95   :  { %v666_v21 = vsel %vm379_vm9, 0.0, %v4159_v62  ;;  %v596_v23 = vmul.f32 %v2981_v30, %v2869_v48  ;;  %v609_v24 = vmul.f32 %v2983_v3, %v2869_v48  ;;  %v611_v25 = vmul.f32 %v607_v31, %v2871_v49  ;;  %v593_v48 = vld [vmem:[#allocation8 + $0x30] sm:$0x3f] }
  0x96   :  { %v668_v0 = vadd.f32 %v666_v21, %v636_v39  ;;  %v678_v22 = vsel %vm516_vm10, %v676_v19, %v677_v14  ;;  %v587_v26 = vadd.f32 %v583_v18, %v559_v10  ;;  %v621_v1 = vmul.f32 %v2977_v57, %v2890_v60  ;;  %v618_v31 = vld [vmem:[#allocation8 + $0xd0] sm:$0x3f] }
  0x97   :  { %v600_v63 = vadd.f32 %v596_v23, %v567_v6  ;;  %v613_v32 = vadd.f32 %v609_v24, %v575_v13  ;;  %v615_v41 = vadd.f32 %v611_v25, %v577_v16  ;;  %v633_v42 = vmul.f32 %v2977_v57, %v2899_v9  ;;  %v630_v19 = vld [vmem:[#allocation8 + $0xf0] sm:$0x3f]  ;;  %v557_v16 = vld [vmem:[#allocation8 + $0x78] sm:$0x3f] }
  0x98   :  { %v688_v47 = vadd.f32 %v678_v22, %v668_v0  ;;  %v3009_v56 = vadd.f32 %v621_v1, %v587_v26  ;;  %v645_v39 = vmul.f32 %v2977_v57, %v2901_v12  ;;  %v647_v10 = vmul.f32 %v643_v17, %v2987_v8  ;;  %v565_v22 = vld [vmem:[#allocation8 + $0x98] sm:$0x3f] }
  0x99   :  { %v637_v18 = vadd.f32 %v633_v42, %v600_v63  ;;  %v560_v21 = vmul.f32 %v556_v28, %v2867_v46  ;;  %v568_v6 = vmul.f32 %v564_v43, %v2867_v46  ;;  %v584_v13 = vmul.f32 %v580_v15, %v2863_v44  ;;  %v581_v26 = vld [vmem:[#allocation8 + $0x18] sm:$0x3f] }
  0x9a   :  { %693 = vst [vmem:[#allocation10 + $0x20] sm:$0xff] %v688_v47  ;;  %v649_v23 = vadd.f32 %v645_v39, %v613_v32  ;;  %v651_v24 = vadd.f32 %v647_v10, %v615_v41  ;;  %v657_v25 = vrot.slane %v3009_v56, 7  ;;  %v597_v0 = vmul.f32 %v593_v48, %v2863_v44  ;;  %v594_v43 = vld [vmem:[#allocation8 + $0x38] sm:$0x3f] }
  0x9b   :  { %v588_v17 = vadd.f32 %v584_v13, %v560_v21  ;;  %v622_v1 = vmul.f32 %v618_v31, %v2946_v61  ;;  %v634_v63 = vmul.f32 %v630_v19, %v2946_v61  ;;  %v686_v28 = vsel %vm527_vm11, %v677_v14, 0.0  ;;  %v619_v42 = vld [vmem:[#allocation8 + $0xd8] sm:$0x3f] }
  0x9c   :  { %v667_v15 = vsel %vm379_vm9, 0.0, %v657_v25  ;;  %v679_v47 = vrot.slane %v649_v23, 1  ;;  %v680_v32 = vrot.slane %v651_v24, 1  ;;  %v601_v41 = vadd.f32 %v597_v0, %v568_v6  ;;  %v631_v39 = vld [vmem:[#allocation8 + $0xf8] sm:$0x3f] }
  0x9d   :  { %v669_v56 = vadd.f32 %v667_v15, %v637_v18  ;;  %v626_v10 = vadd.f32 %v622_v1, %v588_v17  ;;  %v561_v44 = vmul.f32 %v557_v16, %v2875_v51  ;;  %v569_v48 = vmul.f32 %v565_v22, %v2875_v51  ;;  %v731_v22 = vld [vmem:[#allocation8 + $0xb0] sm:$0x3f] }
  0x9e   :  { %v681_v31 = vsel %vm516_vm10, %v679_v47, %v680_v32  ;;  %v638_v21 = vadd.f32 %v634_v63, %v601_v41  ;;  %v585_v19 = vmul.f32 %v581_v26, %v2871_v49  ;;  %v598_v14 = vmul.f32 %v594_v43, %v2871_v49  ;;  %v763_v47 = vld [vmem:[#allocation8 + $0x50] sm:$0x3f] }
  0x9f   :  { %v689_v13 = vadd.f32 %v681_v31, %v669_v56  ;;  %v658_v62 = vrot.slane %v626_v10, 7  ;;  %v623_v23 = vmul.f32 %v619_v42, %v2987_v8  ;;  %v635_v6 = vmul.f32 %v631_v39, %v2987_v8 }
  0xa0   :  { %v589_v24 = vadd.f32 %v585_v19, %v561_v44  ;;  %v602_v18 = vadd.f32 %v598_v14, %v569_v48  ;;  %v687_v0 = vsel %vm527_vm11, %v680_v32, 0.0  ;;  %v705_v16 = vadd.f32 %v2836_v11, %v2817_v2  ;;  %v799_v44 = vld [vmem:[#allocation8 + $0x110] sm:$0x3f]  ;;  %v698_v14 = vld [vmem:[#allocation2 + $0x68] sm:$0xff] }
  0xa1   :  { %694 = vst.msk [vmem:[#allocation10 + $0x28] sm:$0xff] %vm315_vm1, %v689_v13  ;;  %v4160_v26 = vrot.slane %v2971_v33, 7  ;;  %v707_v17 = vadd.f32 %v2839_v29, %v2817_v2  ;;  %v717_v1 = vmul.f32 %v2944_v7, %v2845_v20  ;;  %v725_v63 = vmul.f32 %v2944_v7, %v2847_v34  ;;  %v700_v13 = vld [vmem:[#allocation2 + $0x78] sm:$0x3f] }
  0xa2   :  { %v627_v42 = vadd.f32 %v623_v23, %v589_v24  ;;  %v639_v15 = vadd.f32 %v635_v6, %v602_v18  ;;  %v3043_v11 = vmax.f32 %v705_v16, 0.0  ;;  %v733_v33 = vmul.f32 %v2944_v7, %v2849_v35 }
  0xa3   :  { %v659_v49 = vsel %vm379_vm9, %v4160_v26, %v658_v62  ;;  %v3045_v32 = vmax.f32 %v707_v17, 0.0  ;;  %v735_v62 = vmul.f32 %v731_v22, %v2946_v61  ;;  %v741_v29 = vmul.f32 %v2938_v53, %v2865_v45 }
  0xa4   :  { %v670_v43 = vadd.f32 %v659_v49, %v638_v21  ;;  %v660_v39 = vrot.slane %v627_v42, 7  ;;  %v753_v56 = vmul.f32 %v2940_v54, %v2865_v45  ;;  %v765_v10 = vmul.f32 %v2942_v55, %v2865_v45 }
  0xa5   :  { %v745_v48 = vadd.f32 %v741_v29, %v717_v1  ;;  %v767_v31 = vmul.f32 %v763_v47, %v2867_v46  ;;  %v777_v21 = vmul.f32 %v3043_v11, %v2851_v36  ;;  %v789_v19 = vmul.f32 %v3043_v11, %v2853_v37 }
  0xa6   :  { %v690_v41 = vadd.f32 %v686_v28, %v670_v43  ;;  %v661_v28 = vsel %vm379_vm9, %v657_v25, %v660_v39  ;;  %v757_v23 = vadd.f32 %v753_v56, %v725_v63  ;;  %v769_v6 = vadd.f32 %v765_v10, %v733_v33  ;;  %v732_v43 = vld [vmem:[#allocation8 + $0xb8] sm:$0x3f] }
  0xa7   :  { %v801_v45 = vmul.f32 %v3043_v11, %v2855_v38  ;;  %v671_v24 = vadd.f32 %v661_v28, %v639_v15  ;;  %v771_v18 = vadd.f32 %v767_v31, %v735_v62  ;;  %v3064_v16 = vadd.f32 %v777_v21, %v745_v48 }
  0xa8   :  { %695 = vst [vmem:[#allocation10 + $0x30] sm:$0x3f] %v690_v41  ;;  %v803_v22 = vmul.f32 %v799_v44, %v3045_v32  ;;  %v793_v26 = vadd.f32 %v789_v19, %v757_v23  ;;  %v702_v17 = vmul.f32 %v698_v14, %v2796_v5  ;;  %v704_v1 = vmul.f32 %v700_v13, %v2796_v5  ;;  %v764_v41 = vld [vmem:[#allocation8 + $0x58] sm:$0x3f] }
  0xa9   :  { %v805_v49 = vadd.f32 %v801_v45, %v769_v6  ;;  %v691_v42 = vadd.f32 %v687_v0, %v671_v24  ;;  %v813_v63 = vrot.slane %v3064_v16, 7  ;;  %v718_v47 = vmul.f32 %v2977_v57, %v2877_v52  ;;  %v800_v23 = vld [vmem:[#allocation8 + $0x118] sm:$0x3f]  ;;  %v715_v6 = vld [vmem:[#allocation8 + $0x70] sm:$0x3f] }
  0xaa   :  { %v807_v25 = vadd.f32 %v803_v22, %v771_v18  ;;  %v706_v33 = vadd.f32 %v702_v17, %v2819_v27  ;;  %v708_v62 = vadd.f32 %v704_v1, %v2819_v27  ;;  %v726_v29 = vmul.f32 %v2977_v57, %v2886_v58  ;;  %v723_v45 = vld [vmem:[#allocation8 + $0x90] sm:$0x3f] }
  0xab   :  { %v833_v15 = vrot.slane %v805_v49, 1  ;;  %696 = vst.msk [vmem:[#allocation10 + $0x38] sm:$0x3f] %vm317_vm2, %v691_v42  ;;  %v823_v0 = vsel %vm379_vm9, 0.0, %v813_v63  ;;  %v734_v56 = vmul.f32 %v2977_v57, %v2888_v59  ;;  %v736_v10 = vmul.f32 %v732_v43, %v2987_v8  ;;  %v739_v49 = vld [vmem:[#allocation8 + $0x10] sm:$0x3f] }
  0xac   :  { %v834_v39 = vrot.slane %v807_v25, 1  ;;  %v825_v44 = vadd.f32 %v823_v0, %v793_v26  ;;  %v3083_v48 = vmax.f32 %v706_v33, 0.0  ;;  %v3085_v31 = vmax.f32 %v708_v62, 0.0  ;;  %v751_v17 = vld [vmem:[#allocation8 + $0x30] sm:$0x3f] }
  0xad   :  { %v742_v21 = vmul.f32 %v2975_v40, %v2873_v50  ;;  %v754_v14 = vmul.f32 %v2981_v30, %v2873_v50  ;;  %v766_v13 = vmul.f32 %v2983_v3, %v2873_v50  ;;  %v768_v28 = vmul.f32 %v764_v41, %v2875_v51  ;;  %v775_v25 = vld [vmem:[#allocation8 + $0xd0] sm:$0x3f] }
  0xae   :  { %v835_v19 = vsel %vm516_vm10, %v833_v15, %v834_v39  ;;  %v778_v22 = vmul.f32 %v3083_v48, %v2890_v60  ;;  %v790_v26 = vmul.f32 %v3083_v48, %v2899_v9  ;;  %v802_v50 = vmul.f32 %v3083_v48, %v2901_v12  ;;  %v787_v15 = vld [vmem:[#allocation8 + $0xf0] sm:$0x3f] }
  0xaf   :  { %v845_v24 = vadd.f32 %v835_v19, %v825_v44  ;;  %v746_v18 = vadd.f32 %v742_v21, %v718_v47  ;;  %v758_v1 = vadd.f32 %v754_v14, %v726_v29  ;;  %v770_v43 = vadd.f32 %v766_v13, %v734_v56  ;;  %v724_v21 = vld [vmem:[#allocation8 + $0x98] sm:$0x3f] }
  0xb0   :  { %v772_v42 = vadd.f32 %v768_v28, %v736_v10  ;;  %v804_v47 = vmul.f32 %v800_v23, %v3085_v31  ;;  %v719_v62 = vmul.f32 %v715_v6, %v2946_v61  ;;  %v727_v41 = vmul.f32 %v723_v45, %v2946_v61  ;;  %v716_v10 = vld [vmem:[#allocation8 + $0x78] sm:$0x3f] }
  0xb1   :  { %850 = vst [vmem:[#allocation10 + $0x40] sm:$0xff] %v845_v24  ;;  %v3101_v33 = vadd.f32 %v778_v22, %v746_v18  ;;  %v794_v0 = vadd.f32 %v790_v26, %v758_v1  ;;  %v806_v44 = vadd.f32 %v802_v50, %v770_v43  ;;  %v743_v29 = vmul.f32 %v739_v49, %v2867_v46  ;;  %v740_v23 = vld [vmem:[#allocation8 + $0x18] sm:$0x3f] }
  0xb2   :  { %v755_v56 = vmul.f32 %v751_v17, %v2867_v46  ;;  %v808_v19 = vadd.f32 %v804_v47, %v772_v42  ;;  %v779_v13 = vmul.f32 %v775_v25, %v3045_v32  ;;  %v791_v28 = vmul.f32 %v787_v15, %v3045_v32  ;;  %v776_v24 = vld [vmem:[#allocation8 + $0xd8] sm:$0x3f]  ;;  %v856_v47 = vld [vmem:[#allocation2 + $0x90] sm:$0x3f] }
  0xb3   :  { %v814_v14 = vrot.slane %v3101_v33, 7  ;;  %v836_v6 = vrot.slane %v806_v44, 1  ;;  %v747_v18 = vadd.f32 %v743_v29, %v719_v62  ;;  %v843_v22 = vsel %vm527_vm11, %v834_v39, 0.0  ;;  %v752_v26 = vld [vmem:[#allocation8 + $0x38] sm:$0x3f] }
  0xb4   :  { %v759_v45 = vadd.f32 %v755_v56, %v727_v41  ;;  %v788_v49 = vld [vmem:[#allocation8 + $0xf8] sm:$0x3f]  ;;  %v837_v17 = vrot.slane %v808_v19, 1  ;;  %v720_v1 = vmul.f32 %v716_v10, %v2987_v8  ;;  %v728_v43 = vmul.f32 %v724_v21, %v2987_v8 }
  0xb5   :  { %v824_v46 = vsel %vm379_vm9, 0.0, %v814_v14  ;;  %v783_v50 = vadd.f32 %v779_v13, %v747_v18  ;;  %v744_v15 = vmul.f32 %v740_v23, %v2875_v51  ;;  %v854_v33 = vld [vmem:[#allocation2 + $0x80] sm:$0xff]  ;;  %v756_v39 = vmul.f32 %v752_v26, %v2875_v51  ;;  %v888_v23 = vld [vmem:[#allocation8 + $0xb0] sm:$0x3f] }
  0xb6   :  { %v826_v42 = vadd.f32 %v824_v46, %v794_v0  ;;  %v795_v25 = vadd.f32 %v791_v28, %v759_v45  ;;  %v838_v62 = vsel %vm516_vm10, %v836_v6, %v837_v17  ;;  %v780_v41 = vmul.f32 %v776_v24, %v3085_v31  ;;  %v920_v46 = vld [vmem:[#allocation8 + $0x50] sm:$0x3f] }
  0xb7   :  { %v792_v44 = vmul.f32 %v788_v49, %v3085_v31  ;;  %v815_v56 = vrot.slane %v783_v50, 7  ;;  %v748_v10 = vadd.f32 %v744_v15, %v720_v1  ;;  %v844_v21 = vsel %vm527_vm11, %v837_v17, 0.0  ;;  %v956_v50 = vld [vmem:[#allocation8 + $0x110] sm:$0x3f] }
  0xb8   :  { %v846_v29 = vadd.f32 %v838_v62, %v826_v42  ;;  %v760_v0 = vadd.f32 %v756_v39, %v728_v43  ;;  %v858_v19 = vmul.f32 %v854_v33, %v2794_v4  ;;  %v860_v13 = vmul.f32 %v856_v47, %v2794_v4  ;;  %v857_v39 = vld [vmem:[#allocation2 + $0x98] sm:$0x3f] }
  0xb9   :  { %v874_v28 = vmul.f32 %v3043_v11, %v2845_v20  ;;  %v816_v51 = vsel %vm379_vm9, %v813_v63, %v815_v56  ;;  %v784_v24 = vadd.f32 %v780_v41, %v748_v10  ;;  %v882_v6 = vmul.f32 %v3043_v11, %v2847_v34 }
  0xba   :  { %851 = vst.msk [vmem:[#allocation10 + $0x48] sm:$0xff] %vm315_vm1, %v846_v29  ;;  %v890_v18 = vmul.f32 %v3043_v11, %v2849_v35  ;;  %v827_v45 = vadd.f32 %v816_v51, %v795_v25  ;;  %v796_v26 = vadd.f32 %v792_v44, %v760_v0  ;;  %v862_v49 = vadd.f32 %v858_v19, %v2817_v2  ;;  %v855_v25 = vld [vmem:[#allocation2 + $0x88] sm:$0xff] }
  0xbb   :  { %v864_v20 = vadd.f32 %v860_v13, %v2817_v2  ;;  %v817_v17 = vrot.slane %v784_v24, 7  ;;  %v892_v1 = vmul.f32 %v888_v23, %v3045_v32  ;;  %v898_v16 = vmul.f32 %v2938_v53, %v2944_v7  ;;  %v889_v23 = vld [vmem:[#allocation8 + $0xb8] sm:$0x3f] }
  0xbc   :  { %v910_v63 = vmul.f32 %v2940_v54, %v2944_v7  ;;  %v847_v34 = vadd.f32 %v843_v22, %v827_v45  ;;  %v3140_v43 = vmax.f32 %v862_v49, 0.0  ;;  %v922_v42 = vmul.f32 %v2942_v55, %v2944_v7  ;;  %v921_v45 = vld [vmem:[#allocation8 + $0x58] sm:$0x3f] }
  0xbd   :  { %v3142_v35 = vmax.f32 %v864_v20, 0.0  ;;  %v818_v15 = vsel %vm379_vm9, %v814_v14, %v817_v17  ;;  %v902_v33 = vadd.f32 %v898_v16, %v874_v28  ;;  %v924_v62 = vmul.f32 %v920_v46, %v2946_v61 }
  0xbe   :  { %v914_v47 = vadd.f32 %v910_v63, %v882_v6  ;;  %852 = vst [vmem:[#allocation10 + $0x50] sm:$0x3f] %v847_v34  ;;  %v828_v41 = vadd.f32 %v818_v15, %v796_v26  ;;  %v926_v44 = vadd.f32 %v922_v42, %v890_v18  ;;  %v934_v22 = vmul.f32 %v3140_v43, %v2851_v36  ;;  %v957_v42 = vld [vmem:[#allocation8 + $0x118] sm:$0x3f] }
  0xbf   :  { %v946_v29 = vmul.f32 %v3140_v43, %v2853_v37  ;;  %v928_v56 = vadd.f32 %v924_v62, %v892_v1  ;;  %v958_v7 = vmul.f32 %v3140_v43, %v2855_v38  ;;  %v960_v14 = vmul.f32 %v956_v50, %v3142_v35  ;;  %v872_v50 = vld [vmem:[#allocation8 + $0x70] sm:$0x3f] }
  0xc0   :  { %v859_v10 = vmul.f32 %v855_v25, %v2796_v5  ;;  %v848_v0 = vadd.f32 %v844_v21, %v828_v41  ;;  %v3156_v19 = vadd.f32 %v934_v22, %v902_v33  ;;  %v861_v28 = vmul.f32 %v857_v39, %v2796_v5  ;;  %v880_v62 = vld [vmem:[#allocation8 + $0x90] sm:$0x3f] }
  0xc1   :  { %v950_v13 = vadd.f32 %v946_v29, %v914_v47  ;;  %v962_v51 = vadd.f32 %v958_v7, %v926_v44  ;;  %v964_v36 = vadd.f32 %v960_v14, %v928_v56  ;;  %v875_v37 = vmul.f32 %v3083_v48, %v2877_v52  ;;  %v896_v39 = vld [vmem:[#allocation8 + $0x10] sm:$0x3f] }
  0xc2   :  { %v863_v24 = vadd.f32 %v859_v10, %v2819_v27  ;;  %853 = vst.msk [vmem:[#allocation10 + $0x58] sm:$0x3f] %vm317_vm2, %v848_v0  ;;  %v970_v38 = vrot.slane %v3156_v19, 7  ;;  %v865_v6 = vadd.f32 %v861_v28, %v2819_v27  ;;  %v883_v21 = vmul.f32 %v3083_v48, %v2886_v58  ;;  %v908_v41 = vld [vmem:[#allocation8 + $0x30] sm:$0x3f] }
  0xc3   :  { %v891_v18 = vmul.f32 %v3083_v48, %v2888_v59  ;;  %v990_v26 = vrot.slane %v962_v51, 1  ;;  %v991_v49 = vrot.slane %v964_v36, 1  ;;  %v893_v46 = vmul.f32 %v889_v23, %v3085_v31  ;;  %v932_v56 = vld [vmem:[#allocation8 + $0xd0] sm:$0x3f]  ;;  %v873_v51 = vld [vmem:[#allocation8 + $0x78] sm:$0x3f] }
  0xc4   :  { %v3169_v20 = vmax.f32 %v863_v24, 0.0  ;;  %v980_v52 = vsel %vm379_vm9, 0.0, %v970_v38  ;;  %v3175_v17 = vmax.f32 %v865_v6, 0.0  ;;  %v899_v1 = vmul.f32 %v2975_v40, %v2977_v57  ;;  %v944_v7 = vld [vmem:[#allocation8 + $0xf0] sm:$0x3f] }
  0xc5   :  { %v911_v58 = vmul.f32 %v2981_v30, %v2977_v57  ;;  %v982_v59 = vadd.f32 %v980_v52, %v950_v13  ;;  %v992_v16 = vsel %vm516_vm10, %v990_v26, %v991_v49  ;;  %v923_v63 = vmul.f32 %v2983_v3, %v2977_v57  ;;  %v881_v36 = vld [vmem:[#allocation8 + $0x98] sm:$0x3f] }
  0xc6   :  { %v925_v34 = vmul.f32 %v921_v45, %v2987_v8  ;;  %v903_v25 = vadd.f32 %v899_v1, %v875_v37  ;;  %v935_v33 = vmul.f32 %v3169_v20, %v2890_v60  ;;  %v947_v47 = vmul.f32 %v3169_v20, %v2899_v9  ;;  %v909_v1 = vld [vmem:[#allocation8 + $0x38] sm:$0x3f] }
  0xc7   :  { %v915_v15 = vadd.f32 %v911_v58, %v883_v21  ;;  %v1002_v44 = vadd.f32 %v992_v16, %v982_v59  ;;  %v927_v22 = vadd.f32 %v923_v63, %v891_v18  ;;  %v959_v57 = vmul.f32 %v3169_v20, %v2901_v12  ;;  %v897_v21 = vld [vmem:[#allocation8 + $0x18] sm:$0x3f] }
  0xc8   :  { %v929_v29 = vadd.f32 %v925_v34, %v893_v46  ;;  %v3191_v14 = vadd.f32 %v935_v33, %v903_v25  ;;  %v961_v0 = vmul.f32 %v957_v42, %v3175_v17  ;;  %v876_v60 = vmul.f32 %v872_v50, %v3045_v32  ;;  %v933_v18 = vld [vmem:[#allocation8 + $0xd8] sm:$0x3f]  ;;  %v1013_v33 = vld [vmem:[#allocation2 + $0xb0] sm:$0x3f] }
  0xc9   :  { %v951_v10 = vadd.f32 %v947_v47, %v915_v15  ;;  %1007 = vst [vmem:[#allocation10 + $0x60] sm:$0xff] %v1002_v44  ;;  %v963_v9 = vadd.f32 %v959_v57, %v927_v22  ;;  %v884_v13 = vmul.f32 %v880_v62, %v3045_v32  ;;  %v900_v28 = vmul.f32 %v896_v39, %v2946_v61  ;;  %v945_v58 = vld [vmem:[#allocation8 + $0xf8] sm:$0x3f]  ;;  %v3206_v47 = vld [vmem:[#allocation8 + $0x60] sm:$0xff] }
  0xca   :  { %v912_v23 = vmul.f32 %v908_v41, %v2946_v61  ;;  %v965_v12 = vadd.f32 %v961_v0, %v929_v29  ;;  %v971_v24 = vrot.slane %v3191_v14, 7  ;;  %v936_v37 = vmul.f32 %v932_v56, %v3142_v35  ;;  %v1011_v15 = vld [vmem:[#allocation2 + $0xa0] sm:$0xff] }
  0xcb   :  { %v948_v6 = vmul.f32 %v944_v7, %v3142_v35  ;;  %v993_v45 = vrot.slane %v963_v9, 1  ;;  %v904_v26 = vadd.f32 %v900_v28, %v876_v60  ;;  %v1000_v52 = vsel %vm527_vm11, %v991_v49, 0.0  ;;  %v3212_v44 = vld [vmem:[#allocation8 + $0x80] sm:$0xff]  ;;  %v1045_v60 = vld [vmem:[#allocation8 + $0xb0] sm:$0x3f] }
  0xcc   :  { %v916_v46 = vadd.f32 %v912_v23, %v884_v13  ;;  %v981_v61 = vsel %vm379_vm9, 0.0, %v971_v24  ;;  %v994_v59 = vrot.slane %v965_v12, 1  ;;  %v877_v16 = vmul.f32 %v873_v51, %v3085_v31  ;;  %v3214_v22 = vld [vmem:[#allocation8 + $0xa0] sm:$0xff] }
  0xcd   :  { %v885_v63 = vmul.f32 %v881_v36, %v3085_v31  ;;  %v983_v34 = vadd.f32 %v981_v61, %v951_v10  ;;  %v940_v42 = vadd.f32 %v936_v37, %v904_v26  ;;  %v901_v25 = vmul.f32 %v897_v21, %v2987_v8  ;;  %v3238_v26 = vld [vmem:[#allocation8 + $0xe0] sm:$0xff] }
  0xce   :  { %v952_v50 = vadd.f32 %v948_v6, %v916_v46  ;;  %v995_v49 = vsel %vm516_vm10, %v993_v45, %v994_v59  ;;  %v913_v62 = vmul.f32 %v909_v1, %v2987_v8  ;;  %v937_v39 = vmul.f32 %v933_v18, %v3175_v17  ;;  %v1077_v6 = vld [vmem:[#allocation8 + $0x50] sm:$0x3f]  ;;  %v3236_v45 = vld [vmem:[#allocation8 + $0xc0] sm:$0xff] }
  0xcf   :  { %v949_v41 = vmul.f32 %v945_v58, %v3175_v17  ;;  %v1003_v29 = vadd.f32 %v995_v49, %v983_v34  ;;  %v972_v57 = vrot.slane %v940_v42, 7  ;;  %v905_v56 = vadd.f32 %v901_v25, %v877_v16  ;;  %v1113_v16 = vld [vmem:[#allocation8 + $0x110] sm:$0x3f] }
  0xd0   :  { %v1001_v7 = vsel %vm527_vm11, %v994_v59, 0.0  ;;  %v917_v14 = vadd.f32 %v913_v62, %v885_v63  ;;  %v1015_v10 = vmul.f32 %v1011_v15, %v2794_v4  ;;  %v1017_v0 = vmul.f32 %v1013_v33, %v2794_v4  ;;  %v3246_v59 = vld [vmem:[#allocation8 + $0x100] sm:$0xff] }
  0xd1   :  { %v1031_v8 = vmul.f32 %v3206_v47, %v3140_v43  ;;  %1008 = vst.msk [vmem:[#allocation10 + $0x68] sm:$0xff] %vm315_vm1, %v1003_v29  ;;  %v973_v9 = vsel %vm379_vm9, %v970_v38, %v972_v57  ;;  %v941_v13 = vadd.f32 %v937_v39, %v905_v56  ;;  %v1039_v28 = vmul.f32 %v3212_v44, %v3140_v43  ;;  %v1012_v63 = vld [vmem:[#allocation2 + $0xa8] sm:$0xff] }
  0xd2   :  { %v1047_v23 = vmul.f32 %v3214_v22, %v3140_v43  ;;  %v984_v51 = vadd.f32 %v973_v9, %v952_v50  ;;  %v953_v36 = vadd.f32 %v949_v41, %v917_v14  ;;  %v1019_v12 = vadd.f32 %v1015_v10, %v2817_v2  ;;  %v1014_v50 = vld [vmem:[#allocation2 + $0xb8] sm:$0x3f]  ;;  %v3260_v39 = vld [vmem:[#allocation8 + $0x88] sm:$0xff] }
  0xd3   :  { %v1021_v37 = vadd.f32 %v1017_v0, %v2817_v2  ;;  %v974_v21 = vrot.slane %v941_v13, 7  ;;  %v1049_v18 = vmul.f32 %v1045_v60, %v3142_v35  ;;  %v1055_v19 = vmul.f32 %v3043_v11, %v2938_v53  ;;  %v3262_v41 = vld [vmem:[#allocation8 + $0xa8] sm:$0xff]  ;;  %v1046_v10 = vld [vmem:[#allocation8 + $0xb8] sm:$0x3f] }
  0xd4   :  { %v1067_v38 = vmul.f32 %v3043_v11, %v2940_v54  ;;  %v1004_v46 = vadd.f32 %v1000_v52, %v984_v51  ;;  %v3240_v1 = vmax.f32 %v1019_v12, 0.0  ;;  %v1079_v61 = vmul.f32 %v3043_v11, %v2942_v55  ;;  %v3254_v11 = vld [vmem:[#allocation8 + $0x68] sm:$0xff]  ;;  %v1078_v51 = vld [vmem:[#allocation8 + $0x58] sm:$0x3f] }
  0xd5   :  { %v3242_v58 = vmax.f32 %v1021_v37, 0.0  ;;  %v975_v53 = vsel %vm379_vm9, %v971_v24, %v974_v21  ;;  %v1059_v34 = vadd.f32 %v1055_v19, %v1031_v8  ;;  %v1081_v42 = vmul.f32 %v1077_v6, %v3045_v32  ;;  %v3280_v21 = vld [vmem:[#allocation8 + $0xc8] sm:$0xff] }
  0xd6   :  { %v1071_v54 = vadd.f32 %v1067_v38, %v1039_v28  ;;  %1009 = vst [vmem:[#allocation10 + $0x70] sm:$0x3f] %v1004_v46  ;;  %v985_v52 = vadd.f32 %v975_v53, %v953_v36  ;;  %v1083_v25 = vadd.f32 %v1079_v61, %v1047_v23  ;;  %v1091_v15 = vmul.f32 %v3236_v45, %v3240_v1 }
  0xd7   :  { %v1103_v55 = vmul.f32 %v3238_v26, %v3240_v1  ;;  %v1085_v33 = vadd.f32 %v1081_v42, %v1049_v18  ;;  %v1115_v24 = vmul.f32 %v3246_v59, %v3240_v1  ;;  %v1117_v49 = vmul.f32 %v1113_v16, %v3242_v58  ;;  %v3282_v18 = vld [vmem:[#allocation8 + $0xe8] sm:$0xff]  ;;  %v1114_v42 = vld [vmem:[#allocation8 + $0x118] sm:$0x3f] }
  0xd8   :  { %v1016_v62 = vmul.f32 %v1012_v63, %v2796_v5  ;;  %v1005_v29 = vadd.f32 %v1001_v7, %v985_v52  ;;  %v3264_v57 = vadd.f32 %v1091_v15, %v1059_v34  ;;  %v1018_v14 = vmul.f32 %v1014_v50, %v2796_v5  ;;  %v3293_v16 = vld [vmem:[#allocation8 + $0x108] sm:$0xff]  ;;  %v1029_v50 = vld [vmem:[#allocation8 + $0x70] sm:$0x3f] }
  0xd9   :  { %v1107_v56 = vadd.f32 %v1103_v55, %v1071_v54  ;;  %v1119_v0 = vadd.f32 %v1115_v24, %v1083_v25  ;;  %v1121_v8 = vadd.f32 %v1117_v49, %v1085_v33  ;;  %v1032_v9 = vmul.f32 %v3254_v11, %v3169_v20  ;;  %v1037_v15 = vld [vmem:[#allocation8 + $0x90] sm:$0x3f] }
  0xda   :  { %v1020_v60 = vadd.f32 %v1016_v62, %v2819_v27  ;;  %1010 = vst.msk [vmem:[#allocation10 + $0x78] sm:$0x3f] %vm317_vm2, %v1005_v29  ;;  %v1127_v13 = vrot.slane %v3264_v57, 7  ;;  %v1022_v28 = vadd.f32 %v1018_v14, %v2819_v27  ;;  %v1040_v7 = vmul.f32 %v3260_v39, %v3169_v20  ;;  %v1053_v55 = vld [vmem:[#allocation8 + $0x10] sm:$0x3f] }
  0xdb   :  { %v1048_v23 = vmul.f32 %v3262_v41, %v3169_v20  ;;  %v1147_v36 = vrot.slane %v1119_v0, 1  ;;  %v1148_v12 = vrot.slane %v1121_v8, 1  ;;  %v1050_v6 = vmul.f32 %v1046_v10, %v3175_v17  ;;  %v1065_v33 = vld [vmem:[#allocation8 + $0x30] sm:$0x3f] }
  0xdc   :  { %v3277_v37 = vmax.f32 %v1020_v60, 0.0  ;;  %v1137_v19 = vsel %vm379_vm9, 0.0, %v1127_v13  ;;  %v3287_v38 = vmax.f32 %v1022_v28, 0.0  ;;  %v1056_v46 = vmul.f32 %v3083_v48, %v2975_v40  ;;  %v1101_v29 = vld [vmem:[#allocation8 + $0xf0] sm:$0x3f] }
  0xdd   :  { %v1068_v61 = vmul.f32 %v3083_v48, %v2981_v30  ;;  %v1139_v63 = vadd.f32 %v1137_v19, %v1107_v56  ;;  %v1149_v53 = vsel %vm516_vm10, %v1147_v36, %v1148_v12  ;;  %v1080_v34 = vmul.f32 %v3083_v48, %v2983_v3  ;;  %v1089_v48 = vld [vmem:[#allocation8 + $0xd0] sm:$0x3f] }
  0xde   :  { %v1082_v54 = vmul.f32 %v1078_v51, %v3085_v31  ;;  %v1060_v52 = vadd.f32 %v1056_v46, %v1032_v9  ;;  %v1092_v40 = vmul.f32 %v3280_v21, %v3277_v37  ;;  %v1104_v30 = vmul.f32 %v3282_v18, %v3277_v37  ;;  %v1054_v46 = vld [vmem:[#allocation8 + $0x18] sm:$0x3f] }
  0xdf   :  { %v1072_v25 = vadd.f32 %v1068_v61, %v1040_v7  ;;  %v1159_v24 = vadd.f32 %v1149_v53, %v1139_v63  ;;  %v1084_v49 = vadd.f32 %v1080_v34, %v1048_v23  ;;  %v1116_v3 = vmul.f32 %v3293_v16, %v3277_v37  ;;  %v1030_v7 = vld [vmem:[#allocation8 + $0x78] sm:$0x3f] }
  0xe0   :  { %v1086_v62 = vadd.f32 %v1082_v54, %v1050_v6  ;;  %v3305_v56 = vadd.f32 %v1092_v40, %v1060_v52  ;;  %v1118_v10 = vmul.f32 %v1114_v42, %v3287_v38  ;;  %v1033_v0 = vmul.f32 %v1029_v50, %v3142_v35  ;;  %v1038_v23 = vld [vmem:[#allocation8 + $0x98] sm:$0x3f] }
  0xe1   :  { %v1108_v14 = vadd.f32 %v1104_v30, %v1072_v25  ;;  %1164 = vst [vmem:[#allocation10 + $0x80] sm:$0xff] %v1159_v24  ;;  %v1120_v8 = vadd.f32 %v1116_v3, %v1084_v49  ;;  %v1041_v60 = vmul.f32 %v1037_v15, %v3142_v35  ;;  %v1057_v9 = vmul.f32 %v1053_v55, %v3045_v32  ;;  %v1090_v61 = vld [vmem:[#allocation8 + $0xd8] sm:$0x3f]  ;;  %v1170_v49 = vld [vmem:[#allocation2 + $0xd0] sm:$0x3f] }
  0xe2   :  { %v1069_v28 = vmul.f32 %v1065_v33, %v3045_v32  ;;  %v1122_v51 = vadd.f32 %v1118_v10, %v1086_v62  ;;  %v1128_v36 = vrot.slane %v3305_v56, 7  ;;  %v1093_v6 = vmul.f32 %v1089_v48, %v3242_v58  ;;  %v1066_v42 = vld [vmem:[#allocation8 + $0x38] sm:$0x3f] }
  0xe3   :  { %v1105_v19 = vmul.f32 %v1101_v29, %v3242_v58  ;;  %v1150_v63 = vrot.slane %v1120_v8, 1  ;;  %v1061_v53 = vadd.f32 %v1057_v9, %v1033_v0  ;;  %v1157_v54 = vsel %vm527_vm11, %v1148_v12, 0.0  ;;  %v1102_v50 = vld [vmem:[#allocation8 + $0xf8] sm:$0x3f] }
  0xe4   :  { %v1073_v34 = vadd.f32 %v1069_v28, %v1041_v60  ;;  %v1138_v32 = vsel %vm379_vm9, 0.0, %v1128_v36  ;;  %v1151_v52 = vrot.slane %v1122_v51, 1  ;;  %v1034_v25 = vmul.f32 %v1030_v7, %v3175_v17  ;;  %v1168_v24 = vld [vmem:[#allocation2 + $0xc0] sm:$0xff]  ;;  %v1202_v28 = vld [vmem:[#allocation8 + $0xb0] sm:$0x3f] }
  0xe5   :  { %v1042_v40 = vmul.f32 %v1038_v23, %v3175_v17  ;;  %v1140_v30 = vadd.f32 %v1138_v32, %v1108_v14  ;;  %v1097_v15 = vadd.f32 %v1093_v6, %v1061_v53  ;;  %v1058_v33 = vmul.f32 %v1054_v46, %v3085_v31  ;;  %v3329_v7 = vld [vmem:[#allocation8] sm:$0xff] }
  0xe6   :  { %v1109_v55 = vadd.f32 %v1105_v19, %v1073_v34  ;;  %v1152_v62 = vsel %vm516_vm10, %v1150_v63, %v1151_v52  ;;  %v1070_v12 = vmul.f32 %v1066_v42, %v3085_v31  ;;  %v1094_v3 = vmul.f32 %v1090_v61, %v3287_v38  ;;  %v3331_v31 = vld [vmem:[#allocation8 + $0x20] sm:$0xff]  ;;  %v1234_v42 = vld [vmem:[#allocation8 + $0x50] sm:$0x3f] }
  0xe7   :  { %v1106_v48 = vmul.f32 %v1102_v50, %v3287_v38  ;;  %v1160_v29 = vadd.f32 %v1152_v62, %v1140_v30  ;;  %v1129_v56 = vrot.slane %v1097_v15, 7  ;;  %v1062_v10 = vadd.f32 %v1058_v33, %v1034_v25  ;;  %v3341_v46 = vld [vmem:[#allocation8 + $0x40] sm:$0xff]  ;;  %v1270_v15 = vld [vmem:[#allocation8 + $0x110] sm:$0x3f] }
  0xe8   :  { %v1158_v0 = vsel %vm527_vm11, %v1151_v52, 0.0  ;;  %v1074_v14 = vadd.f32 %v1070_v12, %v1042_v40  ;;  %v1172_v8 = vmul.f32 %v1168_v24, %v2794_v4  ;;  %v1174_v60 = vmul.f32 %v1170_v49, %v2794_v4  ;;  %v1171_v12 = vld [vmem:[#allocation2 + $0xd8] sm:$0x3f] }
  0xe9   :  { %v1188_v9 = vmul.f32 %v3206_v47, %v3240_v1  ;;  %1165 = vst.msk [vmem:[#allocation10 + $0x88] sm:$0xff] %vm315_vm1, %v1160_v29  ;;  %v1130_v23 = vsel %vm379_vm9, %v1127_v13, %v1129_v56  ;;  %v1098_v51 = vadd.f32 %v1094_v3, %v1062_v10  ;;  %v1196_v6 = vmul.f32 %v3212_v44, %v3240_v1 }
  0xea   :  { %v1204_v19 = vmul.f32 %v3214_v22, %v3240_v1  ;;  %v1141_v61 = vadd.f32 %v1130_v23, %v1109_v55  ;;  %v1110_v63 = vadd.f32 %v1106_v48, %v1074_v14  ;;  %v1176_v53 = vadd.f32 %v1172_v8, %v2817_v2  ;;  %v1169_v55 = vld [vmem:[#allocation2 + $0xc8] sm:$0xff] }
  0xeb   :  { %v1178_v34 = vadd.f32 %v1174_v60, %v2817_v2  ;;  %v1131_v50 = vrot.slane %v1098_v51, 7  ;;  %v1206_v57 = vmul.f32 %v1202_v28, %v3242_v58  ;;  %v1212_v13 = vmul.f32 %v3329_v7, %v3140_v43  ;;  %v1203_v28 = vld [vmem:[#allocation8 + $0xb8] sm:$0x3f] }
  0xec   :  { %v1224_v32 = vmul.f32 %v3331_v31, %v3140_v43  ;;  %v1161_v52 = vadd.f32 %v1157_v54, %v1141_v61  ;;  %v3350_v25 = vmax.f32 %v1176_v53, 0.0  ;;  %v1236_v30 = vmul.f32 %v3341_v46, %v3140_v43  ;;  %v3372_v61 = vld [vmem:[#allocation8 + $0x8] sm:$0xff] }
  0xed   :  { %v3352_v40 = vmax.f32 %v1178_v34, 0.0  ;;  %v1132_v33 = vsel %vm379_vm9, %v1128_v36, %v1131_v50  ;;  %v1216_v24 = vadd.f32 %v1212_v13, %v1188_v9  ;;  %v1238_v62 = vmul.f32 %v1234_v42, %v3142_v35  ;;  %v3383_v50 = vld [vmem:[#allocation8 + $0x48] sm:$0xff] }
  0xee   :  { %v1228_v49 = vadd.f32 %v1224_v32, %v1196_v6  ;;  %1166 = vst [vmem:[#allocation10 + $0x90] sm:$0x3f] %v1161_v52  ;;  %v1142_v3 = vadd.f32 %v1132_v33, %v1110_v63  ;;  %v1240_v48 = vadd.f32 %v1236_v30, %v1204_v19  ;;  %v1248_v54 = vmul.f32 %v3350_v25, %v3236_v45  ;;  %v3374_v63 = vld [vmem:[#allocation8 + $0x28] sm:$0xff] }
  0xef   :  { %v1260_v29 = vmul.f32 %v3350_v25, %v3238_v26  ;;  %v1242_v56 = vadd.f32 %v1238_v62, %v1206_v57  ;;  %v1272_v43 = vmul.f32 %v3350_v25, %v3246_v59  ;;  %v1274_v36 = vmul.f32 %v1270_v15, %v3352_v40  ;;  %v1235_v57 = vld [vmem:[#allocation8 + $0x58] sm:$0x3f] }
  0xf0   :  { %v1173_v10 = vmul.f32 %v1169_v55, %v2796_v5  ;;  %v1162_v14 = vadd.f32 %v1158_v0, %v1142_v3  ;;  %v3366_v8 = vadd.f32 %v1248_v54, %v1216_v24  ;;  %v1175_v9 = vmul.f32 %v1171_v12, %v2796_v5  ;;  %v1186_v54 = vld [vmem:[#allocation8 + $0x70] sm:$0x3f] }
  0xf1   :  { %v1264_v60 = vadd.f32 %v1260_v29, %v1228_v49  ;;  %v1276_v23 = vadd.f32 %v1272_v43, %v1240_v48  ;;  %v1278_v51 = vadd.f32 %v1274_v36, %v1242_v56  ;;  %v1189_v19 = vmul.f32 %v3254_v11, %v3277_v37  ;;  %v1271_v48 = vld [vmem:[#allocation8 + $0x118] sm:$0x3f] }
  0xf2   :  { %v1177_v6 = vadd.f32 %v1173_v10, %v2819_v27  ;;  %1167 = vst.msk [vmem:[#allocation10 + $0x98] sm:$0x3f] %vm317_vm2, %v1162_v14  ;;  %v1284_v0 = vrot.slane %v3366_v8, 7  ;;  %v1179_v53 = vadd.f32 %v1175_v9, %v2819_v27  ;;  %v1197_v34 = vmul.f32 %v3260_v39, %v3277_v37  ;;  %v1194_v10 = vld [vmem:[#allocation8 + $0x90] sm:$0x3f] }
  0xf3   :  { %v1205_v42 = vmul.f32 %v3262_v41, %v3277_v37  ;;  %v1304_v13 = vrot.slane %v1276_v23, 1  ;;  %v1305_v32 = vrot.slane %v1278_v51, 1  ;;  %v1207_v30 = vmul.f32 %v1203_v28, %v3287_v38  ;;  %v1210_v14 = vld [vmem:[#allocation8 + $0x10] sm:$0x3f] }
  0xf4   :  { %v3385_v52 = vmax.f32 %v1177_v6, 0.0  ;;  %v1294_v15 = vsel %vm379_vm9, 0.0, %v1284_v0  ;;  %v3391_v55 = vmax.f32 %v1179_v53, 0.0  ;;  %v1213_v33 = vmul.f32 %v3372_v61, %v3169_v20  ;;  %v1246_v51 = vld [vmem:[#allocation8 + $0xd0] sm:$0x3f] }
  0xf5   :  { %v1225_v24 = vmul.f32 %v3374_v63, %v3169_v20  ;;  %v1296_v49 = vadd.f32 %v1294_v15, %v1264_v60  ;;  %v1306_v62 = vsel %vm516_vm10, %v1304_v13, %v1305_v32  ;;  %v1237_v12 = vmul.f32 %v3383_v50, %v3169_v20  ;;  %v1222_v60 = vld [vmem:[#allocation8 + $0x30] sm:$0x3f] }
  0xf6   :  { %v1239_v3 = vmul.f32 %v1235_v57, %v3175_v17  ;;  %v1217_v29 = vadd.f32 %v1213_v33, %v1189_v19  ;;  %v1249_v43 = vmul.f32 %v3385_v52, %v3280_v21  ;;  %v1261_v36 = vmul.f32 %v3385_v52, %v3282_v18  ;;  %v1258_v6 = vld [vmem:[#allocation8 + $0xf0] sm:$0x3f] }
  0xf7   :  { %v1229_v56 = vadd.f32 %v1225_v24, %v1197_v34  ;;  %v1316_v9 = vadd.f32 %v1306_v62, %v1296_v49  ;;  %v1241_v28 = vadd.f32 %v1237_v12, %v1205_v42  ;;  %v1273_v20 = vmul.f32 %v3385_v52, %v3293_v16  ;;  %v1195_v24 = vld [vmem:[#allocation8 + $0x98] sm:$0x3f] }
  0xf8   :  { %v1243_v23 = vadd.f32 %v1239_v3, %v1207_v30  ;;  %v3407_v53 = vadd.f32 %v1249_v43, %v1217_v29  ;;  %v1275_v34 = vmul.f32 %v1271_v48, %v3391_v55  ;;  %v1190_v57 = vmul.f32 %v1186_v54, %v3242_v58  ;;  %v1187_v30 = vld [vmem:[#allocation8 + $0x78] sm:$0x3f] }
  0xf9   :  { %v1265_v19 = vadd.f32 %v1261_v36, %v1229_v56  ;;  %1321 = vst [vmem:[#allocation10 + $0xa0] sm:$0xff] %v1316_v9  ;;  %v1277_v13 = vadd.f32 %v1273_v20, %v1241_v28  ;;  %v1198_v15 = vmul.f32 %v1194_v10, %v3242_v58  ;;  %v1214_v33 = vmul.f32 %v1210_v14, %v3142_v35  ;;  %v1211_v48 = vld [vmem:[#allocation8 + $0x18] sm:$0x3f] }
  0xfa   :  { %v1226_v42 = vmul.f32 %v1222_v60, %v3142_v35  ;;  %v1279_v49 = vadd.f32 %v1275_v34, %v1243_v23  ;;  %v1285_v62 = vrot.slane %v3407_v53, 7  ;;  %v1250_v12 = vmul.f32 %v1246_v51, %v3352_v40  ;;  %v1247_v29 = vld [vmem:[#allocation8 + $0xd8] sm:$0x3f]  ;;  %v1327_v34 = vld [vmem:[#allocation2 + $0xf0] sm:$0x3f] }
  0xfb   :  { %v1262_v3 = vmul.f32 %v1258_v6, %v3352_v40  ;;  %v1307_v54 = vrot.slane %v1277_v13, 1  ;;  %v1218_v56 = vadd.f32 %v1214_v33, %v1190_v57  ;;  %v1314_v36 = vsel %vm527_vm11, %v1305_v32, 0.0  ;;  %v1223_v10 = vld [vmem:[#allocation8 + $0x38] sm:$0x3f] }
  0xfc   :  { %v1230_v43 = vadd.f32 %v1226_v42, %v1198_v15  ;;  %v1259_v14 = vld [vmem:[#allocation8 + $0xf8] sm:$0x3f]  ;;  %v1295_v35 = vsel %vm379_vm9, 0.0, %v1285_v62  ;;  %v1308_v60 = vrot.slane %v1279_v49, 1  ;;  %v1191_v9 = vmul.f32 %v1187_v30, %v3287_v38 }
  0xfd   :  { %v1199_v28 = vmul.f32 %v1195_v24, %v3287_v38  ;;  %v1297_v23 = vadd.f32 %v1295_v35, %v1265_v19  ;;  %v1254_v20 = vadd.f32 %v1250_v12, %v1218_v56  ;;  %v1215_v6 = vmul.f32 %v1211_v48, %v3175_v17  ;;  %v1325_v53 = vld [vmem:[#allocation2 + $0xe0] sm:$0xff]  ;;  %v1359_v48 = vld [vmem:[#allocation8 + $0xb0] sm:$0x3f] }
  0xfe   :  { %v1266_v51 = vadd.f32 %v1262_v3, %v1230_v43  ;;  %v1309_v57 = vsel %vm516_vm10, %v1307_v54, %v1308_v60  ;;  %v1227_v32 = vmul.f32 %v1223_v10, %v3175_v17  ;;  %v1251_v13 = vmul.f32 %v1247_v29, %v3391_v55 }
  0xff   :  { %v1263_v15 = vmul.f32 %v1259_v14, %v3391_v55  ;;  %v1317_v33 = vadd.f32 %v1309_v57, %v1297_v23  ;;  %v1286_v42 = vrot.slane %v1254_v20, 7  ;;  %v1219_v30 = vadd.f32 %v1215_v6, %v1191_v9 }
 0x100   :  { %v1315_v24 = vsel %vm527_vm11, %v1308_v60, 0.0  ;;  %v1231_v19 = vadd.f32 %v1227_v32, %v1199_v28  ;;  %v1329_v49 = vmul.f32 %v1325_v53, %v2794_v4  ;;  %v1331_v12 = vmul.f32 %v1327_v34, %v2794_v4  ;;  %v1391_v60 = vld [vmem:[#allocation8 + $0x50] sm:$0x3f]  ;;  %v1326_v34 = vld [vmem:[#allocation2 + $0xe8] sm:$0xff] }
 0x101   :  { %v1345_v3 = vmul.f32 %v3350_v25, %v3206_v47  ;;  %1322 = vst.msk [vmem:[#allocation10 + $0xa8] sm:$0xff] %vm315_vm1, %v1317_v33  ;;  %v1287_v17 = vsel %vm379_vm9, %v1284_v0, %v1286_v42  ;;  %v1255_v29 = vadd.f32 %v1251_v13, %v1219_v30  ;;  %v1353_v54 = vmul.f32 %v3350_v25, %v3212_v44  ;;  %v1427_v53 = vld [vmem:[#allocation8 + $0x110] sm:$0x3f] }
 0x102   :  { %v1361_v56 = vmul.f32 %v3350_v25, %v3214_v22  ;;  %v1298_v43 = vadd.f32 %v1287_v17, %v1266_v51  ;;  %v1267_v10 = vadd.f32 %v1263_v15, %v1231_v19  ;;  %v1333_v14 = vadd.f32 %v1329_v49, %v2817_v2  ;;  %v1328_v33 = vld [vmem:[#allocation2 + $0xf8] sm:$0x3f] }
 0x103   :  { %v1335_v35 = vadd.f32 %v1331_v12, %v2817_v2  ;;  %v1288_v9 = vrot.slane %v1255_v29, 7  ;;  %v1363_v28 = vmul.f32 %v1359_v48, %v3352_v40  ;;  %v1369_v8 = vmul.f32 %v3329_v7, %v3240_v1 }
 0x104   :  { %v1381_v0 = vmul.f32 %v3331_v31, %v3240_v1  ;;  %v1318_v23 = vadd.f32 %v1314_v36, %v1298_v43  ;;  %v3446_v20 = vmax.f32 %v1333_v14, 0.0  ;;  %v1393_v51 = vmul.f32 %v3341_v46, %v3240_v1 }
 0x105   :  { %v3448_v6 = vmax.f32 %v1335_v35, 0.0  ;;  %v1289_v57 = vsel %vm379_vm9, %v1285_v62, %v1288_v9  ;;  %v1373_v32 = vadd.f32 %v1369_v8, %v1345_v3  ;;  %v1395_v15 = vmul.f32 %v1391_v60, %v3242_v58 }
 0x106   :  { %v1385_v13 = vadd.f32 %v1381_v0, %v1353_v54  ;;  %1323 = vst [vmem:[#allocation10 + $0xb0] sm:$0x3f] %v1318_v23  ;;  %v1299_v42 = vadd.f32 %v1289_v57, %v1267_v10  ;;  %v1397_v30 = vadd.f32 %v1393_v51, %v1361_v56  ;;  %v1405_v36 = vmul.f32 %v3446_v20, %v3236_v45  ;;  %v1360_v54 = vld [vmem:[#allocation8 + $0xb8] sm:$0x3f] }
 0x107   :  { %v1417_v19 = vmul.f32 %v3446_v20, %v3238_v26  ;;  %v1399_v49 = vadd.f32 %v1395_v15, %v1363_v28  ;;  %v1429_v1 = vmul.f32 %v3446_v20, %v3246_v59  ;;  %v1431_v62 = vmul.f32 %v1427_v53, %v3448_v6  ;;  %v1392_v28 = vld [vmem:[#allocation8 + $0x58] sm:$0x3f] }
 0x108   :  { %v1330_v12 = vmul.f32 %v1326_v34, %v2796_v5  ;;  %v1319_v3 = vadd.f32 %v1315_v24, %v1299_v42  ;;  %v3462_v48 = vadd.f32 %v1405_v36, %v1373_v32  ;;  %v1332_v29 = vmul.f32 %v1328_v33, %v2796_v5  ;;  %v1343_v36 = vld [vmem:[#allocation8 + $0x70] sm:$0x3f] }
 0x109   :  { %v1421_v17 = vadd.f32 %v1417_v19, %v1385_v13  ;;  %v1433_v56 = vadd.f32 %v1429_v1, %v1397_v30  ;;  %v1435_v43 = vadd.f32 %v1431_v62, %v1399_v49  ;;  %v1346_v14 = vmul.f32 %v3385_v52, %v3254_v11  ;;  %v1428_v30 = vld [vmem:[#allocation8 + $0x118] sm:$0x3f] }
 0x10a   :  { %v1334_v10 = vadd.f32 %v1330_v12, %v2819_v27  ;;  %1324 = vst.msk [vmem:[#allocation10 + $0xb8] sm:$0x3f] %vm317_vm2, %v1319_v3  ;;  %v1441_v35 = vrot.slane %v3462_v48, 7  ;;  %v1336_v60 = vadd.f32 %v1332_v29, %v2819_v27  ;;  %v1354_v24 = vmul.f32 %v3385_v52, %v3260_v39  ;;  %v1351_v12 = vld [vmem:[#allocation8 + $0x90] sm:$0x3f] }
 0x10b   :  { %v1362_v9 = vmul.f32 %v3385_v52, %v3262_v41  ;;  %v1461_v8 = vrot.slane %v1433_v56, 1  ;;  %v1462_v0 = vrot.slane %v1435_v43, 1  ;;  %v1364_v51 = vmul.f32 %v1360_v54, %v3391_v55  ;;  %v1367_v3 = vld [vmem:[#allocation8 + $0x10] sm:$0x3f] }
 0x10c   :  { %v3475_v23 = vmax.f32 %v1334_v10, 0.0  ;;  %v1451_v53 = vsel %vm379_vm9, 0.0, %v1441_v35  ;;  %v3481_v34 = vmax.f32 %v1336_v60, 0.0  ;;  %v1370_v57 = vmul.f32 %v3372_v61, %v3277_v37  ;;  %v1403_v43 = vld [vmem:[#allocation8 + $0xd0] sm:$0x3f] }
 0x10d   :  { %v1382_v32 = vmul.f32 %v3374_v63, %v3277_v37  ;;  %v1453_v13 = vadd.f32 %v1451_v53, %v1421_v17  ;;  %v1463_v15 = vsel %vm516_vm10, %v1461_v8, %v1462_v0  ;;  %v1394_v33 = vmul.f32 %v3383_v50, %v3277_v37  ;;  %v1379_v17 = vld [vmem:[#allocation8 + $0x30] sm:$0x3f] }
 0x10e   :  { %v1396_v42 = vmul.f32 %v1392_v28, %v3287_v38  ;;  %v1374_v19 = vadd.f32 %v1370_v57, %v1346_v14  ;;  %v1406_v1 = vmul.f32 %v3475_v23, %v3280_v21  ;;  %v1418_v62 = vmul.f32 %v3475_v23, %v3282_v18  ;;  %v1415_v10 = vld [vmem:[#allocation8 + $0xf0] sm:$0x3f] }
 0x10f   :  { %v1386_v49 = vadd.f32 %v1382_v32, %v1354_v24  ;;  %v1473_v29 = vadd.f32 %v1463_v15, %v1453_v13  ;;  %v1398_v54 = vadd.f32 %v1394_v33, %v1362_v9  ;;  %v1430_v37 = vmul.f32 %v3475_v23, %v3293_v16  ;;  %v1352_v32 = vld [vmem:[#allocation8 + $0x98] sm:$0x3f] }
 0x110   :  { %v1400_v56 = vadd.f32 %v1396_v42, %v1364_v51  ;;  %v3497_v60 = vadd.f32 %v1406_v1, %v1374_v19  ;;  %v1432_v24 = vmul.f32 %v1428_v30, %v3481_v34  ;;  %v1347_v28 = vmul.f32 %v1343_v36, %v3352_v40  ;;  %v1344_v51 = vld [vmem:[#allocation8 + $0x78] sm:$0x3f] }
 0x111   :  { %v1422_v14 = vadd.f32 %v1418_v62, %v1386_v49  ;;  %1478 = vst [vmem:[#allocation10 + $0xc0] sm:$0xff] %v1473_v29  ;;  %v1434_v8 = vadd.f32 %v1430_v37, %v1398_v54  ;;  %v1355_v53 = vmul.f32 %v1351_v12, %v3352_v40  ;;  %v1371_v57 = vmul.f32 %v1367_v3, %v3242_v58  ;;  %v1368_v30 = vld [vmem:[#allocation8 + $0x18] sm:$0x3f] }
 0x112   :  { %v1383_v9 = vmul.f32 %v1379_v17, %v3242_v58  ;;  %v1436_v13 = vadd.f32 %v1432_v24, %v1400_v56  ;;  %v1442_v15 = vrot.slane %v3497_v60, 7  ;;  %v1407_v33 = vmul.f32 %v1403_v43, %v3448_v6  ;;  %v1404_v19 = vld [vmem:[#allocation8 + $0xd8] sm:$0x3f]  ;;  %v1484_v24 = vld [vmem:[#allocation2 + $0x110] sm:$0x3f] }
 0x113   :  { %v1419_v42 = vmul.f32 %v1415_v10, %v3448_v6  ;;  %v1464_v36 = vrot.slane %v1434_v8, 1  ;;  %v1375_v49 = vadd.f32 %v1371_v57, %v1347_v28  ;;  %v1471_v62 = vsel %vm527_vm11, %v1462_v0, 0.0  ;;  %v1380_v12 = vld [vmem:[#allocation8 + $0x38] sm:$0x3f] }
 0x114   :  { %v1387_v1 = vadd.f32 %v1383_v9, %v1355_v53  ;;  %v1416_v3 = vld [vmem:[#allocation8 + $0xf8] sm:$0x3f]  ;;  %v1452_v58 = vsel %vm379_vm9, 0.0, %v1442_v15  ;;  %v1465_v17 = vrot.slane %v1436_v13, 1  ;;  %v1348_v29 = vmul.f32 %v1344_v51, %v3391_v55 }
 0x115   :  { %v1356_v54 = vmul.f32 %v1352_v32, %v3391_v55  ;;  %v1454_v56 = vadd.f32 %v1452_v58, %v1422_v14  ;;  %v1411_v37 = vadd.f32 %v1407_v33, %v1375_v49  ;;  %v1372_v10 = vmul.f32 %v1368_v30, %v3287_v38  ;;  %v1482_v60 = vld [vmem:[#allocation2 + $0x100] sm:$0xff]  ;;  %v1516_v30 = vld [vmem:[#allocation8 + $0xb0] sm:$0x3f] }
 0x116   :  { %v1423_v43 = vadd.f32 %v1419_v42, %v1387_v1  ;;  %v1466_v28 = vsel %vm516_vm10, %v1464_v36, %v1465_v17  ;;  %v1384_v0 = vmul.f32 %v1380_v12, %v3287_v38  ;;  %v1408_v8 = vmul.f32 %v1404_v19, %v3481_v34  ;;  %v1548_v58 = vld [vmem:[#allocation8 + $0x50] sm:$0x3f] }
 0x117   :  { %v1420_v53 = vmul.f32 %v1416_v3, %v3481_v34  ;;  %v1474_v57 = vadd.f32 %v1466_v28, %v1454_v56  ;;  %v1443_v9 = vrot.slane %v1411_v37, 7  ;;  %v1376_v51 = vadd.f32 %v1372_v10, %v1348_v29  ;;  %v1584_v37 = vld [vmem:[#allocation8 + $0x110] sm:$0x3f] }
 0x118   :  { %v1472_v32 = vsel %vm527_vm11, %v1465_v17, 0.0  ;;  %v1388_v14 = vadd.f32 %v1384_v0, %v1356_v54  ;;  %v1486_v13 = vmul.f32 %v1482_v60, %v2794_v4  ;;  %v1488_v33 = vmul.f32 %v1484_v24, %v2794_v4  ;;  %v1485_v0 = vld [vmem:[#allocation2 + $0x118] sm:$0x3f] }
 0x119   :  { %v1502_v42 = vmul.f32 %v3446_v20, %v3206_v47  ;;  %1479 = vst.msk [vmem:[#allocation10 + $0xc8] sm:$0xff] %vm315_vm1, %v1474_v57  ;;  %v1444_v38 = vsel %vm379_vm9, %v1441_v35, %v1443_v9  ;;  %v1412_v19 = vadd.f32 %v1408_v8, %v1376_v51  ;;  %v1510_v36 = vmul.f32 %v3446_v20, %v3212_v44 }
 0x11a   :  { %v1518_v49 = vmul.f32 %v3446_v20, %v3214_v22  ;;  %v1455_v1 = vadd.f32 %v1444_v38, %v1423_v43  ;;  %v1424_v12 = vadd.f32 %v1420_v53, %v1388_v14  ;;  %v1490_v3 = vadd.f32 %v1486_v13, %v2817_v2  ;;  %v1483_v43 = vld [vmem:[#allocation2 + $0x108] sm:$0xff] }
 0x11b   :  { %v1492_v47 = vadd.f32 %v1488_v33, %v2817_v2  ;;  %v1445_v17 = vrot.slane %v1412_v19, 7  ;;  %v1520_v29 = vmul.f32 %v1516_v30, %v3448_v6  ;;  %v1526_v48 = vmul.f32 %v3329_v7, %v3350_v25  ;;  %v1517_v30 = vld [vmem:[#allocation8 + $0xb8] sm:$0x3f] }
 0x11c   :  { %v1538_v35 = vmul.f32 %v3331_v31, %v3350_v25  ;;  %v1475_v44 = vadd.f32 %v1471_v62, %v1455_v1  ;;  %v3536_v54 = vmax.f32 %v1490_v3, 0.0  ;;  %v1550_v56 = vmul.f32 %v3341_v46, %v3350_v25  ;;  %v1549_v1 = vld [vmem:[#allocation8 + $0x58] sm:$0x3f] }
 0x11d   :  { %v3538_v22 = vmax.f32 %v1492_v47, 0.0  ;;  %v1446_v10 = vsel %vm379_vm9, %v1442_v15, %v1445_v17  ;;  %v1530_v60 = vadd.f32 %v1526_v48, %v1502_v42  ;;  %v1552_v28 = vmul.f32 %v1548_v58, %v3352_v40 }
 0x11e   :  { %v1542_v24 = vadd.f32 %v1538_v35, %v1510_v36  ;;  %1480 = vst [vmem:[#allocation10 + $0xd0] sm:$0x3f] %v1475_v44  ;;  %v1456_v8 = vadd.f32 %v1446_v10, %v1424_v12  ;;  %v1554_v53 = vadd.f32 %v1550_v56, %v1518_v49  ;;  %v1562_v62 = vmul.f32 %v3536_v54, %v3236_v45  ;;  %v1585_v56 = vld [vmem:[#allocation8 + $0x118] sm:$0x3f] }
 0x11f   :  { %v1574_v57 = vmul.f32 %v3536_v54, %v3238_v26  ;;  %v1556_v9 = vadd.f32 %v1552_v28, %v1520_v29  ;;  %v1586_v25 = vmul.f32 %v3536_v54, %v3246_v59  ;;  %v1588_v15 = vmul.f32 %v1584_v37, %v3538_v22  ;;  %v1500_v37 = vld [vmem:[#allocation8 + $0x70] sm:$0x3f] }
 0x120   :  { %v1487_v51 = vmul.f32 %v1483_v43, %v2796_v5  ;;  %v1476_v14 = vadd.f32 %v1472_v32, %v1456_v8  ;;  %v3552_v13 = vadd.f32 %v1562_v62, %v1530_v60  ;;  %v1489_v42 = vmul.f32 %v1485_v0, %v2796_v5  ;;  %v1508_v28 = vld [vmem:[#allocation8 + $0x90] sm:$0x3f] }
 0x121   :  { %v1578_v33 = vadd.f32 %v1574_v57, %v1542_v24  ;;  %v1590_v38 = vadd.f32 %v1586_v25, %v1554_v53  ;;  %v1592_v45 = vadd.f32 %v1588_v15, %v1556_v9  ;;  %v1503_v26 = vmul.f32 %v3475_v23, %v3254_v11  ;;  %v1524_v0 = vld [vmem:[#allocation8 + $0x10] sm:$0x3f] }
 0x122   :  { %v1491_v19 = vadd.f32 %v1487_v51, %v2819_v27  ;;  %1481 = vst.msk [vmem:[#allocation10 + $0xd8] sm:$0x3f] %vm317_vm2, %v1476_v14  ;;  %v1598_v59 = vrot.slane %v3552_v13, 7  ;;  %v1493_v36 = vadd.f32 %v1489_v42, %v2819_v27  ;;  %v1511_v32 = vmul.f32 %v3475_v23, %v3260_v39  ;;  %v1536_v8 = vld [vmem:[#allocation8 + $0x30] sm:$0x3f] }
 0x123   :  { %v1519_v49 = vmul.f32 %v3475_v23, %v3262_v41  ;;  %v1618_v12 = vrot.slane %v1590_v38, 1  ;;  %v1619_v3 = vrot.slane %v1592_v45, 1  ;;  %v1521_v58 = vmul.f32 %v1517_v30, %v3481_v34  ;;  %v1560_v9 = vld [vmem:[#allocation8 + $0xd0] sm:$0x3f]  ;;  %v1501_v38 = vld [vmem:[#allocation8 + $0x78] sm:$0x3f] }
 0x124   :  { %v3565_v47 = vmax.f32 %v1491_v19, 0.0  ;;  %v1608_v11 = vsel %vm379_vm9, 0.0, %v1598_v59  ;;  %v3571_v17 = vmax.f32 %v1493_v36, 0.0  ;;  %v1527_v29 = vmul.f32 %v3372_v61, %v3385_v52  ;;  %v1572_v25 = vld [vmem:[#allocation8 + $0xf0] sm:$0x3f] }
 0x125   :  { %v1539_v39 = vmul.f32 %v3374_v63, %v3385_v52  ;;  %v1610_v41 = vadd.f32 %v1608_v11, %v1578_v33  ;;  %v1620_v48 = vsel %vm516_vm10, %v1618_v12, %v1619_v3  ;;  %v1551_v35 = vmul.f32 %v3383_v50, %v3385_v52  ;;  %v1509_v45 = vld [vmem:[#allocation8 + $0x98] sm:$0x3f] }
 0x126   :  { %v1553_v44 = vmul.f32 %v1549_v1, %v3391_v55  ;;  %v1531_v43 = vadd.f32 %v1527_v29, %v1503_v26  ;;  %v1563_v60 = vmul.f32 %v3565_v47, %v3280_v21  ;;  %v1575_v24 = vmul.f32 %v3565_v47, %v3282_v18  ;;  %v1537_v29 = vld [vmem:[#allocation8 + $0x38] sm:$0x3f] }
 0x127   :  { %v1543_v10 = vadd.f32 %v1539_v39, %v1511_v32  ;;  %v1630_v53 = vadd.f32 %v1620_v48, %v1610_v41  ;;  %v1555_v62 = vadd.f32 %v1551_v35, %v1519_v49  ;;  %v1587_v52 = vmul.f32 %v3565_v47, %v3293_v16  ;;  %v1525_v32 = vld [vmem:[#allocation8 + $0x18] sm:$0x3f] }
 0x128   :  { %v1557_v57 = vadd.f32 %v1553_v44, %v1521_v58  ;;  %v3587_v15 = vadd.f32 %v1563_v60, %v1531_v43  ;;  %v1589_v14 = vmul.f32 %v1585_v56, %v3571_v17  ;;  %v1504_v21 = vmul.f32 %v1500_v37, %v3448_v6  ;;  %v1561_v49 = vld [vmem:[#allocation8 + $0xd8] sm:$0x3f]  ;;  %v1641_v60 = vld [vmem:[#allocation2 + $0x130] sm:$0x3f] }
 0x129   :  { %v1579_v51 = vadd.f32 %v1575_v24, %v1543_v10  ;;  %1635 = vst [vmem:[#allocation10 + $0xe0] sm:$0xff] %v1630_v53  ;;  %v1591_v18 = vadd.f32 %v1587_v52, %v1555_v62  ;;  %v1512_v33 = vmul.f32 %v1508_v28, %v3448_v6  ;;  %v1528_v42 = vmul.f32 %v1524_v0, %v3352_v40  ;;  %v1573_v39 = vld [vmem:[#allocation8 + $0xf8] sm:$0x3f]  ;;  %v3602_v24 = vld [vmem:[#allocation8 + $0x60] sm:$0xff] }
 0x12a   :  { %v1540_v30 = vmul.f32 %v1536_v8, %v3352_v40  ;;  %v1593_v16 = vadd.f32 %v1589_v14, %v1557_v57  ;;  %v1599_v19 = vrot.slane %v3587_v15, 7  ;;  %v1564_v26 = vmul.f32 %v1560_v9, %v3538_v22  ;;  %v1639_v10 = vld [vmem:[#allocation2 + $0x120] sm:$0xff] }
 0x12b   :  { %v1576_v36 = vmul.f32 %v1572_v25, %v3538_v22  ;;  %v1621_v1 = vrot.slane %v1591_v18, 1  ;;  %v1532_v12 = vadd.f32 %v1528_v42, %v1504_v21  ;;  %v1628_v11 = vsel %vm527_vm11, %v1619_v3, 0.0  ;;  %v3608_v53 = vld [vmem:[#allocation8 + $0x80] sm:$0xff]  ;;  %v1673_v21 = vld [vmem:[#allocation8 + $0xb0] sm:$0x3f] }
 0x12c   :  { %v1544_v58 = vadd.f32 %v1540_v30, %v1512_v33  ;;  %v1609_v40 = vsel %vm379_vm9, 0.0, %v1599_v19  ;;  %v1622_v41 = vrot.slane %v1593_v16, 1  ;;  %v1505_v48 = vmul.f32 %v1501_v38, %v3481_v34  ;;  %v3610_v62 = vld [vmem:[#allocation8 + $0xa0] sm:$0xff] }
 0x12d   :  { %v1513_v35 = vmul.f32 %v1509_v45, %v3481_v34  ;;  %v1611_v44 = vadd.f32 %v1609_v40, %v1579_v51  ;;  %v1568_v56 = vadd.f32 %v1564_v26, %v1532_v12  ;;  %v1529_v43 = vmul.f32 %v1525_v32, %v3391_v55  ;;  %v3634_v12 = vld [vmem:[#allocation8 + $0xe0] sm:$0xff] }
 0x12e   :  { %v1580_v37 = vadd.f32 %v1576_v36, %v1544_v58  ;;  %v1623_v3 = vsel %vm516_vm10, %v1621_v1, %v1622_v41  ;;  %v1541_v28 = vmul.f32 %v1537_v29, %v3391_v55  ;;  %v1565_v0 = vmul.f32 %v1561_v49, %v3571_v17  ;;  %v1705_v36 = vld [vmem:[#allocation8 + $0x50] sm:$0x3f]  ;;  %v3632_v1 = vld [vmem:[#allocation8 + $0xc0] sm:$0xff] }
 0x12f   :  { %v1577_v8 = vmul.f32 %v1573_v39, %v3571_v17  ;;  %v1631_v57 = vadd.f32 %v1623_v3, %v1611_v44  ;;  %v1600_v52 = vrot.slane %v1568_v56, 7  ;;  %v1533_v9 = vadd.f32 %v1529_v43, %v1505_v48  ;;  %v1741_v48 = vld [vmem:[#allocation8 + $0x110] sm:$0x3f] }
 0x130   :  { %v1629_v25 = vsel %vm527_vm11, %v1622_v41, 0.0  ;;  %v1545_v15 = vadd.f32 %v1541_v28, %v1513_v35  ;;  %v1643_v51 = vmul.f32 %v1639_v10, %v2794_v4  ;;  %v1645_v14 = vmul.f32 %v1641_v60, %v2794_v4  ;;  %v3642_v41 = vld [vmem:[#allocation8 + $0x100] sm:$0xff] }
 0x131   :  { %v1659_v55 = vmul.f32 %v3602_v24, %v3536_v54  ;;  %1636 = vst.msk [vmem:[#allocation10 + $0xe8] sm:$0xff] %vm315_vm1, %v1631_v57  ;;  %v1601_v18 = vsel %vm379_vm9, %v1598_v59, %v1600_v52  ;;  %v1569_v33 = vadd.f32 %v1565_v0, %v1533_v9  ;;  %v1667_v42 = vmul.f32 %v3608_v53, %v3536_v54  ;;  %v1640_v35 = vld [vmem:[#allocation2 + $0x128] sm:$0xff] }
 0x132   :  { %v1675_v30 = vmul.f32 %v3610_v62, %v3536_v54  ;;  %v1612_v38 = vadd.f32 %v1601_v18, %v1580_v37  ;;  %v1581_v45 = vadd.f32 %v1577_v8, %v1545_v15  ;;  %v1647_v16 = vadd.f32 %v1643_v51, %v2817_v2  ;;  %v1642_v37 = vld [vmem:[#allocation2 + $0x138] sm:$0x3f]  ;;  %v3656_v0 = vld [vmem:[#allocation8 + $0x88] sm:$0xff] }
 0x133   :  { %v1649_v26 = vadd.f32 %v1645_v14, %v2817_v2  ;;  %v1602_v32 = vrot.slane %v1569_v33, 7  ;;  %v1677_v49 = vmul.f32 %v1673_v21, %v3538_v22  ;;  %v1683_v13 = vmul.f32 %v3446_v20, %v3329_v7  ;;  %v3658_v8 = vld [vmem:[#allocation8 + $0xa8] sm:$0xff]  ;;  %v1674_v51 = vld [vmem:[#allocation8 + $0xb8] sm:$0x3f] }
 0x134   :  { %v1695_v59 = vmul.f32 %v3446_v20, %v3331_v31  ;;  %v1632_v58 = vadd.f32 %v1628_v11, %v1612_v38  ;;  %v3636_v29 = vmax.f32 %v1647_v16, 0.0  ;;  %v1707_v40 = vmul.f32 %v3446_v20, %v3341_v46  ;;  %v3650_v20 = vld [vmem:[#allocation8 + $0x68] sm:$0xff]  ;;  %v1706_v38 = vld [vmem:[#allocation8 + $0x58] sm:$0x3f] }
 0x135   :  { %v3638_v39 = vmax.f32 %v1649_v26, 0.0  ;;  %v1603_v7 = vsel %vm379_vm9, %v1599_v19, %v1602_v32  ;;  %v1687_v44 = vadd.f32 %v1683_v13, %v1659_v55  ;;  %v1709_v56 = vmul.f32 %v1705_v36, %v3448_v6  ;;  %v3676_v32 = vld [vmem:[#allocation8 + $0xc8] sm:$0xff] }
 0x136   :  { %v1699_v31 = vadd.f32 %v1695_v59, %v1667_v42  ;;  %1637 = vst [vmem:[#allocation10 + $0xf0] sm:$0x3f] %v1632_v58  ;;  %v1613_v11 = vadd.f32 %v1603_v7, %v1581_v45  ;;  %v1711_v43 = vadd.f32 %v1707_v40, %v1675_v30  ;;  %v1719_v10 = vmul.f32 %v3632_v1, %v3636_v29 }
 0x137   :  { %v1731_v46 = vmul.f32 %v3634_v12, %v3636_v29  ;;  %v1713_v60 = vadd.f32 %v1709_v56, %v1677_v49  ;;  %v1743_v19 = vmul.f32 %v3642_v41, %v3636_v29  ;;  %v1745_v3 = vmul.f32 %v1741_v48, %v3638_v39  ;;  %v3678_v49 = vld [vmem:[#allocation8 + $0xe8] sm:$0xff]  ;;  %v1742_v56 = vld [vmem:[#allocation8 + $0x118] sm:$0x3f] }
 0x138   :  { %v1644_v28 = vmul.f32 %v1640_v35, %v2796_v5  ;;  %v1633_v57 = vadd.f32 %v1629_v25, %v1613_v11  ;;  %v3660_v52 = vadd.f32 %v1719_v10, %v1687_v44  ;;  %v1646_v15 = vmul.f32 %v1642_v37, %v2796_v5  ;;  %v3689_v48 = vld [vmem:[#allocation8 + $0x108] sm:$0xff]  ;;  %v1657_v37 = vld [vmem:[#allocation8 + $0x70] sm:$0x3f] }
 0x139   :  { %v1735_v9 = vadd.f32 %v1731_v46, %v1699_v31  ;;  %v1747_v14 = vadd.f32 %v1743_v19, %v1711_v43  ;;  %v1749_v55 = vadd.f32 %v1745_v3, %v1713_v60  ;;  %v1660_v18 = vmul.f32 %v3650_v20, %v3565_v47  ;;  %v1665_v10 = vld [vmem:[#allocation8 + $0x90] sm:$0x3f] }
 0x13a   :  { %v1648_v21 = vadd.f32 %v1644_v28, %v2819_v27  ;;  %1638 = vst.msk [vmem:[#allocation10 + $0xf8] sm:$0x3f] %vm317_vm2, %v1633_v57  ;;  %v1755_v33 = vrot.slane %v3660_v52, 7  ;;  %v1650_v42 = vadd.f32 %v1646_v15, %v2819_v27  ;;  %v1668_v25 = vmul.f32 %v3656_v0, %v3565_v47  ;;  %v1681_v46 = vld [vmem:[#allocation8 + $0x10] sm:$0x3f] }
 0x13b   :  { %v1676_v30 = vmul.f32 %v3658_v8, %v3565_v47  ;;  %v1775_v45 = vrot.slane %v1747_v14, 1  ;;  %v1776_v16 = vrot.slane %v1749_v55, 1  ;;  %v1678_v36 = vmul.f32 %v1674_v51, %v3571_v17  ;;  %v1693_v60 = vld [vmem:[#allocation8 + $0x30] sm:$0x3f] }
 0x13c   :  { %v3673_v26 = vmax.f32 %v1648_v21, 0.0  ;;  %v1765_v13 = vsel %vm379_vm9, 0.0, %v1755_v33  ;;  %v3683_v59 = vmax.f32 %v1650_v42, 0.0  ;;  %v1684_v58 = vmul.f32 %v3475_v23, %v3372_v61  ;;  %v1729_v57 = vld [vmem:[#allocation8 + $0xf0] sm:$0x3f] }
 0x13d   :  { %v1696_v40 = vmul.f32 %v3475_v23, %v3374_v63  ;;  %v1767_v35 = vadd.f32 %v1765_v13, %v1735_v9  ;;  %v1777_v7 = vsel %vm516_vm10, %v1775_v45, %v1776_v16  ;;  %v1708_v44 = vmul.f32 %v3475_v23, %v3383_v50  ;;  %v1717_v23 = vld [vmem:[#allocation8 + $0xd0] sm:$0x3f] }
 0x13e   :  { %v1710_v31 = vmul.f32 %v1706_v38, %v3481_v34  ;;  %v1688_v11 = vadd.f32 %v1684_v58, %v1660_v18  ;;  %v1720_v61 = vmul.f32 %v3676_v32, %v3673_v26  ;;  %v1732_v63 = vmul.f32 %v3678_v49, %v3673_v26  ;;  %v1682_v58 = vld [vmem:[#allocation8 + $0x18] sm:$0x3f] }
 0x13f   :  { %v1700_v43 = vadd.f32 %v1696_v40, %v1668_v25  ;;  %v1787_v19 = vadd.f32 %v1777_v7, %v1767_v35  ;;  %v1712_v3 = vadd.f32 %v1708_v44, %v1676_v30  ;;  %v1744_v50 = vmul.f32 %v3689_v48, %v3673_v26  ;;  %v1658_v25 = vld [vmem:[#allocation8 + $0x78] sm:$0x3f] }
 0x140   :  { %v1714_v28 = vadd.f32 %v1710_v31, %v1678_v36  ;;  %v3701_v9 = vadd.f32 %v1720_v61, %v1688_v11  ;;  %v1746_v51 = vmul.f32 %v1742_v56, %v3683_v59  ;;  %v1661_v14 = vmul.f32 %v1657_v37, %v3538_v22  ;;  %v1666_v30 = vld [vmem:[#allocation8 + $0x98] sm:$0x3f] }
 0x141   :  { %v1736_v15 = vadd.f32 %v1732_v63, %v1700_v43  ;;  %1792 = vst [vmem:[#allocation10 + $0x100] sm:$0xff] %v1787_v19  ;;  %v1748_v55 = vadd.f32 %v1744_v50, %v1712_v3  ;;  %v1669_v21 = vmul.f32 %v1665_v10, %v3538_v22  ;;  %v1685_v18 = vmul.f32 %v1681_v46, %v3448_v6  ;;  %v1718_v40 = vld [vmem:[#allocation8 + $0xd8] sm:$0x3f]  ;;  %v1798_v3 = vld [vmem:[#allocation2 + $0x150] sm:$0x3f] }
 0x142   :  { %v1697_v42 = vmul.f32 %v1693_v60, %v3448_v6  ;;  %v1750_v38 = vadd.f32 %v1746_v51, %v1714_v28  ;;  %v1756_v45 = vrot.slane %v3701_v9, 7  ;;  %v1721_v36 = vmul.f32 %v1717_v23, %v3638_v39  ;;  %v1694_v56 = vld [vmem:[#allocation8 + $0x38] sm:$0x3f] }
 0x143   :  { %v1733_v13 = vmul.f32 %v1729_v57, %v3638_v39  ;;  %v1778_v35 = vrot.slane %v1748_v55, 1  ;;  %v1689_v7 = vadd.f32 %v1685_v18, %v1661_v14  ;;  %v1785_v31 = vsel %vm527_vm11, %v1776_v16, 0.0  ;;  %v1730_v37 = vld [vmem:[#allocation8 + $0xf8] sm:$0x3f] }
 0x144   :  { %v1701_v44 = vadd.f32 %v1697_v42, %v1669_v21  ;;  %v1766_v6 = vsel %vm379_vm9, 0.0, %v1756_v45  ;;  %v1779_v11 = vrot.slane %v1750_v38, 1  ;;  %v1662_v43 = vmul.f32 %v1658_v25, %v3571_v17  ;;  %v1796_v19 = vld [vmem:[#allocation2 + $0x140] sm:$0xff]  ;;  %v1830_v42 = vld [vmem:[#allocation8 + $0xb0] sm:$0x3f] }
 0x145   :  { %v1670_v61 = vmul.f32 %v1666_v30, %v3571_v17  ;;  %v1768_v63 = vadd.f32 %v1766_v6, %v1736_v15  ;;  %v1725_v10 = vadd.f32 %v1721_v36, %v1689_v7  ;;  %v1686_v60 = vmul.f32 %v1682_v58, %v3481_v34  ;;  %v3725_v25 = vld [vmem:[#allocation8] sm:$0xff] }
 0x146   :  { %v1737_v46 = vadd.f32 %v1733_v13, %v1701_v44  ;;  %v1780_v28 = vsel %vm516_vm10, %v1778_v35, %v1779_v11  ;;  %v1698_v16 = vmul.f32 %v1694_v56, %v3481_v34  ;;  %v1722_v50 = vmul.f32 %v1718_v40, %v3683_v59  ;;  %v3727_v34 = vld [vmem:[#allocation8 + $0x20] sm:$0xff]  ;;  %v1862_v56 = vld [vmem:[#allocation8 + $0x50] sm:$0x3f] }
 0x147   :  { %v1734_v23 = vmul.f32 %v1730_v37, %v3683_v59  ;;  %v1788_v57 = vadd.f32 %v1780_v28, %v1768_v63  ;;  %v1757_v9 = vrot.slane %v1725_v10, 7  ;;  %v1690_v51 = vadd.f32 %v1686_v60, %v1662_v43  ;;  %v3737_v58 = vld [vmem:[#allocation8 + $0x40] sm:$0xff]  ;;  %v1898_v10 = vld [vmem:[#allocation8 + $0x110] sm:$0x3f] }
 0x148   :  { %v1786_v14 = vsel %vm527_vm11, %v1779_v11, 0.0  ;;  %v1702_v15 = vadd.f32 %v1698_v16, %v1670_v61  ;;  %v1800_v55 = vmul.f32 %v1796_v19, %v2794_v4  ;;  %v1802_v21 = vmul.f32 %v1798_v3, %v2794_v4  ;;  %v1799_v16 = vld [vmem:[#allocation2 + $0x158] sm:$0x3f] }
 0x149   :  { %v1816_v18 = vmul.f32 %v3602_v24, %v3636_v29  ;;  %1793 = vst.msk [vmem:[#allocation10 + $0x108] sm:$0xff] %vm315_vm1, %v1788_v57  ;;  %v1758_v30 = vsel %vm379_vm9, %v1755_v33, %v1757_v9  ;;  %v1726_v38 = vadd.f32 %v1722_v50, %v1690_v51  ;;  %v1824_v36 = vmul.f32 %v3608_v53, %v3636_v29 }
 0x14a   :  { %v1832_v13 = vmul.f32 %v3610_v62, %v3636_v29  ;;  %v1769_v40 = vadd.f32 %v1758_v30, %v1737_v46  ;;  %v1738_v35 = vadd.f32 %v1734_v23, %v1702_v15  ;;  %v1804_v7 = vadd.f32 %v1800_v55, %v2817_v2  ;;  %v1797_v46 = vld [vmem:[#allocation2 + $0x148] sm:$0xff] }
 0x14b   :  { %v1806_v44 = vadd.f32 %v1802_v21, %v2817_v2  ;;  %v1759_v37 = vrot.slane %v1726_v38, 7  ;;  %v1834_v52 = vmul.f32 %v1830_v42, %v3638_v39  ;;  %v1840_v33 = vmul.f32 %v3725_v25, %v3536_v54  ;;  %v1831_v42 = vld [vmem:[#allocation8 + $0xb8] sm:$0x3f] }
 0x14c   :  { %v1852_v6 = vmul.f32 %v3727_v34, %v3536_v54  ;;  %v1789_v11 = vadd.f32 %v1785_v31, %v1769_v40  ;;  %v3746_v43 = vmax.f32 %v1804_v7, 0.0  ;;  %v1864_v63 = vmul.f32 %v3737_v58, %v3536_v54  ;;  %v3768_v40 = vld [vmem:[#allocation8 + $0x8] sm:$0xff] }
 0x14d   :  { %v3748_v61 = vmax.f32 %v1806_v44, 0.0  ;;  %v1760_v60 = vsel %vm379_vm9, %v1756_v45, %v1759_v37  ;;  %v1844_v19 = vadd.f32 %v1840_v33, %v1816_v18  ;;  %v1866_v28 = vmul.f32 %v1862_v56, %v3538_v22  ;;  %v3779_v37 = vld [vmem:[#allocation8 + $0x48] sm:$0xff] }
 0x14e   :  { %v1856_v3 = vadd.f32 %v1852_v6, %v1824_v36  ;;  %1794 = vst [vmem:[#allocation10 + $0x110] sm:$0x3f] %v1789_v11  ;;  %v1770_v50 = vadd.f32 %v1760_v60, %v1738_v35  ;;  %v1868_v23 = vadd.f32 %v1864_v63, %v1832_v13  ;;  %v1876_v31 = vmul.f32 %v3746_v43, %v3632_v1  ;;  %v3770_v35 = vld [vmem:[#allocation8 + $0x28] sm:$0xff] }
 0x14f   :  { %v1888_v57 = vmul.f32 %v3746_v43, %v3634_v12  ;;  %v1870_v9 = vadd.f32 %v1866_v28, %v1834_v52  ;;  %v1900_v54 = vmul.f32 %v3746_v43, %v3642_v41  ;;  %v1902_v45 = vmul.f32 %v1898_v10, %v3748_v61  ;;  %v1863_v52 = vld [vmem:[#allocation8 + $0x58] sm:$0x3f] }
 0x150   :  { %v1801_v51 = vmul.f32 %v1797_v46, %v2796_v5  ;;  %v1790_v15 = vadd.f32 %v1786_v14, %v1770_v50  ;;  %v3762_v55 = vadd.f32 %v1876_v31, %v1844_v19  ;;  %v1803_v18 = vmul.f32 %v1799_v16, %v2796_v5  ;;  %v1814_v31 = vld [vmem:[#allocation8 + $0x70] sm:$0x3f] }
 0x151   :  { %v1892_v21 = vadd.f32 %v1888_v57, %v1856_v3  ;;  %v1904_v30 = vadd.f32 %v1900_v54, %v1868_v23  ;;  %v1906_v38 = vadd.f32 %v1902_v45, %v1870_v9  ;;  %v1817_v13 = vmul.f32 %v3650_v20, %v3673_v26  ;;  %v1899_v23 = vld [vmem:[#allocation8 + $0x118] sm:$0x3f] }
 0x152   :  { %v1805_v36 = vadd.f32 %v1801_v51, %v2819_v27  ;;  %1795 = vst.msk [vmem:[#allocation10 + $0x118] sm:$0x3f] %vm317_vm2, %v1790_v15  ;;  %v1912_v14 = vrot.slane %v3762_v55, 7  ;;  %v1807_v7 = vadd.f32 %v1803_v18, %v2819_v27  ;;  %v1825_v44 = vmul.f32 %v3656_v0, %v3673_v26  ;;  %v1822_v51 = vld [vmem:[#allocation8 + $0x90] sm:$0x3f] }
 0x153   :  { %v1833_v56 = vmul.f32 %v3658_v8, %v3673_v26  ;;  %v1932_v33 = vrot.slane %v1904_v30, 1  ;;  %v1933_v6 = vrot.slane %v1906_v38, 1  ;;  %v1835_v63 = vmul.f32 %v1831_v42, %v3683_v59  ;;  %v1838_v15 = vld [vmem:[#allocation8 + $0x10] sm:$0x3f] }
 0x154   :  { %v3781_v11 = vmax.f32 %v1805_v36, 0.0  ;;  %v1922_v10 = vsel %vm379_vm9, 0.0, %v1912_v14  ;;  %v3787_v46 = vmax.f32 %v1807_v7, 0.0  ;;  %v1841_v60 = vmul.f32 %v3768_v40, %v3565_v47  ;;  %v1874_v38 = vld [vmem:[#allocation8 + $0xd0] sm:$0x3f] }
 0x155   :  { %v1853_v19 = vmul.f32 %v3770_v35, %v3565_v47  ;;  %v1924_v3 = vadd.f32 %v1922_v10, %v1892_v21  ;;  %v1934_v28 = vsel %vm516_vm10, %v1932_v33, %v1933_v6  ;;  %v1865_v16 = vmul.f32 %v3779_v37, %v3565_v47  ;;  %v1850_v21 = vld [vmem:[#allocation8 + $0x30] sm:$0x3f] }
 0x156   :  { %v1867_v50 = vmul.f32 %v1863_v52, %v3571_v17  ;;  %v1845_v57 = vadd.f32 %v1841_v60, %v1817_v13  ;;  %v1877_v54 = vmul.f32 %v3781_v11, %v3676_v32  ;;  %v1889_v45 = vmul.f32 %v3781_v11, %v3678_v49  ;;  %v1886_v36 = vld [vmem:[#allocation8 + $0xf0] sm:$0x3f] }
 0x157   :  { %v1857_v9 = vadd.f32 %v1853_v19, %v1825_v44  ;;  %v1944_v18 = vadd.f32 %v1934_v28, %v1924_v3  ;;  %v1869_v42 = vadd.f32 %v1865_v16, %v1833_v56  ;;  %v1901_v47 = vmul.f32 %v3781_v11, %v3689_v48  ;;  %v1823_v19 = vld [vmem:[#allocation8 + $0x98] sm:$0x3f] }
 0x158   :  { %v1871_v30 = vadd.f32 %v1867_v50, %v1835_v63  ;;  %v3803_v7 = vadd.f32 %v1877_v54, %v1845_v57  ;;  %v1903_v44 = vmul.f32 %v1899_v23, %v3787_v46  ;;  %v1818_v52 = vmul.f32 %v1814_v31, %v3638_v39  ;;  %v1815_v63 = vld [vmem:[#allocation8 + $0x78] sm:$0x3f] }
 0x159   :  { %v1893_v13 = vadd.f32 %v1889_v45, %v1857_v9  ;;  %1949 = vst [vmem:[#allocation10 + $0x120] sm:$0xff] %v1944_v18  ;;  %v1905_v33 = vadd.f32 %v1901_v47, %v1869_v42  ;;  %v1826_v10 = vmul.f32 %v1822_v51, %v3638_v39  ;;  %v1842_v60 = vmul.f32 %v1838_v15, %v3538_v22  ;;  %v1839_v23 = vld [vmem:[#allocation8 + $0x18] sm:$0x3f] }
 0x15a   :  { %v1854_v56 = vmul.f32 %v1850_v21, %v3538_v22  ;;  %v1907_v3 = vadd.f32 %v1903_v44, %v1871_v30  ;;  %v1913_v28 = vrot.slane %v3803_v7, 7  ;;  %v1878_v16 = vmul.f32 %v1874_v38, %v3748_v61  ;;  %v1875_v57 = vld [vmem:[#allocation8 + $0xd8] sm:$0x3f]  ;;  %v1955_v44 = vld [vmem:[#allocation2 + $0x170] sm:$0x3f] }
 0x15b   :  { %v1890_v50 = vmul.f32 %v1886_v36, %v3748_v61  ;;  %v1935_v31 = vrot.slane %v1905_v33, 1  ;;  %v1846_v9 = vadd.f32 %v1842_v60, %v1818_v52  ;;  %v1942_v45 = vsel %vm527_vm11, %v1933_v6, 0.0  ;;  %v1851_v51 = vld [vmem:[#allocation8 + $0x38] sm:$0x3f] }
 0x15c   :  { %v1858_v54 = vadd.f32 %v1854_v56, %v1826_v10  ;;  %v1887_v15 = vld [vmem:[#allocation8 + $0xf8] sm:$0x3f]  ;;  %v1923_v22 = vsel %vm379_vm9, 0.0, %v1913_v28  ;;  %v1936_v21 = vrot.slane %v1907_v3, 1  ;;  %v1819_v18 = vmul.f32 %v1815_v63, %v3683_v59 }
 0x15d   :  { %v1827_v42 = vmul.f32 %v1823_v19, %v3683_v59  ;;  %v1925_v30 = vadd.f32 %v1923_v22, %v1893_v13  ;;  %v1882_v47 = vadd.f32 %v1878_v16, %v1846_v9  ;;  %v1843_v36 = vmul.f32 %v1839_v23, %v3571_v17  ;;  %v1953_v7 = vld [vmem:[#allocation2 + $0x160] sm:$0xff]  ;;  %v1987_v23 = vld [vmem:[#allocation8 + $0xb0] sm:$0x3f] }
 0x15e   :  { %v1894_v38 = vadd.f32 %v1890_v50, %v1858_v54  ;;  %v1937_v52 = vsel %vm516_vm10, %v1935_v31, %v1936_v21  ;;  %v1855_v6 = vmul.f32 %v1851_v51, %v3571_v17  ;;  %v1879_v33 = vmul.f32 %v1875_v57, %v3787_v46 }
 0x15f   :  { %v1891_v10 = vmul.f32 %v1887_v15, %v3787_v46  ;;  %v1945_v60 = vadd.f32 %v1937_v52, %v1925_v30  ;;  %v1914_v56 = vrot.slane %v1882_v47, 7  ;;  %v1847_v63 = vadd.f32 %v1843_v36, %v1819_v18 }
 0x160   :  { %v1943_v19 = vsel %vm527_vm11, %v1936_v21, 0.0  ;;  %v1859_v13 = vadd.f32 %v1855_v6, %v1827_v42  ;;  %v1957_v3 = vmul.f32 %v1953_v7, %v2794_v4  ;;  %v1959_v16 = vmul.f32 %v1955_v44, %v2794_v4  ;;  %v2019_v21 = vld [vmem:[#allocation8 + $0x50] sm:$0x3f]  ;;  %v1954_v44 = vld [vmem:[#allocation2 + $0x168] sm:$0xff] }
 0x161   :  { %v1973_v50 = vmul.f32 %v3746_v43, %v3602_v24  ;;  %1950 = vst.msk [vmem:[#allocation10 + $0x128] sm:$0xff] %vm315_vm1, %v1945_v60  ;;  %v1915_v17 = vsel %vm379_vm9, %v1912_v14, %v1914_v56  ;;  %v1883_v57 = vadd.f32 %v1879_v33, %v1847_v63  ;;  %v1981_v31 = vmul.f32 %v3746_v43, %v3608_v53  ;;  %v2055_v7 = vld [vmem:[#allocation8 + $0x110] sm:$0x3f] }
 0x162   :  { %v1989_v9 = vmul.f32 %v3746_v43, %v3610_v62  ;;  %v1926_v54 = vadd.f32 %v1915_v17, %v1894_v38  ;;  %v1895_v51 = vadd.f32 %v1891_v10, %v1859_v13  ;;  %v1961_v15 = vadd.f32 %v1957_v3, %v2817_v2  ;;  %v1956_v60 = vld [vmem:[#allocation2 + $0x178] sm:$0x3f] }
 0x163   :  { %v1963_v22 = vadd.f32 %v1959_v16, %v2817_v2  ;;  %v1916_v18 = vrot.slane %v1883_v57, 7  ;;  %v1991_v42 = vmul.f32 %v1987_v23, %v3748_v61  ;;  %v1997_v55 = vmul.f32 %v3725_v25, %v3636_v29 }
 0x164   :  { %v2009_v14 = vmul.f32 %v3727_v34, %v3636_v29  ;;  %v1946_v30 = vadd.f32 %v1942_v45, %v1926_v54  ;;  %v3842_v47 = vmax.f32 %v1961_v15, 0.0  ;;  %v2021_v38 = vmul.f32 %v3737_v58, %v3636_v29 }
 0x165   :  { %v3844_v36 = vmax.f32 %v1963_v22, 0.0  ;;  %v1917_v52 = vsel %vm379_vm9, %v1913_v28, %v1916_v18  ;;  %v2001_v6 = vadd.f32 %v1997_v55, %v1973_v50  ;;  %v2023_v10 = vmul.f32 %v2019_v21, %v3638_v39 }
 0x166   :  { %v2013_v33 = vadd.f32 %v2009_v14, %v1981_v31  ;;  %1951 = vst [vmem:[#allocation10 + $0x130] sm:$0x3f] %v1946_v30  ;;  %v1927_v56 = vadd.f32 %v1917_v52, %v1895_v51  ;;  %v2025_v63 = vadd.f32 %v2021_v38, %v1989_v9  ;;  %v2033_v45 = vmul.f32 %v3842_v47, %v3632_v1  ;;  %v1988_v31 = vld [vmem:[#allocation8 + $0xb8] sm:$0x3f] }
 0x167   :  { %v2045_v13 = vmul.f32 %v3842_v47, %v3634_v12  ;;  %v2027_v3 = vadd.f32 %v2023_v10, %v1991_v42  ;;  %v2057_v29 = vmul.f32 %v3842_v47, %v3642_v41  ;;  %v2059_v28 = vmul.f32 %v2055_v7, %v3844_v36  ;;  %v2020_v42 = vld [vmem:[#allocation8 + $0x58] sm:$0x3f] }
 0x168   :  { %v1958_v16 = vmul.f32 %v1954_v44, %v2796_v5  ;;  %v1947_v50 = vadd.f32 %v1943_v19, %v1927_v56  ;;  %v3858_v23 = vadd.f32 %v2033_v45, %v2001_v6  ;;  %v1960_v57 = vmul.f32 %v1956_v60, %v2796_v5  ;;  %v1971_v45 = vld [vmem:[#allocation8 + $0x70] sm:$0x3f] }
 0x169   :  { %v2049_v17 = vadd.f32 %v2045_v13, %v2013_v33  ;;  %v2061_v9 = vadd.f32 %v2057_v29, %v2025_v63  ;;  %v2063_v54 = vadd.f32 %v2059_v28, %v2027_v3  ;;  %v1974_v15 = vmul.f32 %v3781_v11, %v3650_v20  ;;  %v2056_v63 = vld [vmem:[#allocation8 + $0x118] sm:$0x3f] }
 0x16a   :  { %v1962_v51 = vadd.f32 %v1958_v16, %v2819_v27  ;;  %1952 = vst.msk [vmem:[#allocation10 + $0x138] sm:$0x3f] %vm317_vm2, %v1947_v50  ;;  %v2069_v22 = vrot.slane %v3858_v23, 7  ;;  %v1964_v21 = vadd.f32 %v1960_v57, %v2819_v27  ;;  %v1982_v19 = vmul.f32 %v3781_v11, %v3656_v0  ;;  %v1979_v16 = vld [vmem:[#allocation8 + $0x90] sm:$0x3f] }
 0x16b   :  { %v1990_v18 = vmul.f32 %v3781_v11, %v3658_v8  ;;  %v2089_v55 = vrot.slane %v2061_v9, 1  ;;  %v2090_v14 = vrot.slane %v2063_v54, 1  ;;  %v1992_v38 = vmul.f32 %v1988_v31, %v3787_v46  ;;  %v1995_v50 = vld [vmem:[#allocation8 + $0x10] sm:$0x3f] }
 0x16c   :  { %v3871_v30 = vmax.f32 %v1962_v51, 0.0  ;;  %v2079_v7 = vsel %vm379_vm9, 0.0, %v2069_v22  ;;  %v3877_v44 = vmax.f32 %v1964_v21, 0.0  ;;  %v1998_v52 = vmul.f32 %v3768_v40, %v3673_v26  ;;  %v2031_v54 = vld [vmem:[#allocation8 + $0xd0] sm:$0x3f] }
 0x16d   :  { %v2010_v6 = vmul.f32 %v3770_v35, %v3673_v26  ;;  %v2081_v33 = vadd.f32 %v2079_v7, %v2049_v17  ;;  %v2091_v10 = vsel %vm516_vm10, %v2089_v55, %v2090_v14  ;;  %v2022_v60 = vmul.f32 %v3779_v37, %v3673_v26  ;;  %v2007_v17 = vld [vmem:[#allocation8 + $0x30] sm:$0x3f] }
 0x16e   :  { %v2024_v56 = vmul.f32 %v2020_v42, %v3683_v59  ;;  %v2002_v13 = vadd.f32 %v1998_v52, %v1974_v15  ;;  %v2034_v29 = vmul.f32 %v3871_v30, %v3676_v32  ;;  %v2046_v28 = vmul.f32 %v3871_v30, %v3678_v49  ;;  %v2043_v51 = vld [vmem:[#allocation8 + $0xf0] sm:$0x3f] }
 0x16f   :  { %v2014_v3 = vadd.f32 %v2010_v6, %v1982_v19  ;;  %v2101_v57 = vadd.f32 %v2091_v10, %v2081_v33  ;;  %v2026_v31 = vadd.f32 %v2022_v60, %v1990_v18  ;;  %v2058_v26 = vmul.f32 %v3871_v30, %v3689_v48  ;;  %v1980_v6 = vld [vmem:[#allocation8 + $0x98] sm:$0x3f] }
 0x170   :  { %v2028_v9 = vadd.f32 %v2024_v56, %v1992_v38  ;;  %v3893_v21 = vadd.f32 %v2034_v29, %v2002_v13  ;;  %v2060_v19 = vmul.f32 %v2056_v63, %v3877_v44  ;;  %v1975_v42 = vmul.f32 %v1971_v45, %v3748_v61  ;;  %v1972_v38 = vld [vmem:[#allocation8 + $0x78] sm:$0x3f] }
 0x171   :  { %v2050_v15 = vadd.f32 %v2046_v28, %v2014_v3  ;;  %2106 = vst [vmem:[#allocation10 + $0x140] sm:$0xff] %v2101_v57  ;;  %v2062_v55 = vadd.f32 %v2058_v26, %v2026_v31  ;;  %v1983_v7 = vmul.f32 %v1979_v16, %v3748_v61  ;;  %v1999_v52 = vmul.f32 %v1995_v50, %v3638_v39  ;;  %v1996_v63 = vld [vmem:[#allocation8 + $0x18] sm:$0x3f] }
 0x172   :  { %v2011_v18 = vmul.f32 %v2007_v17, %v3638_v39  ;;  %v2064_v33 = vadd.f32 %v2060_v19, %v2028_v9  ;;  %v2070_v10 = vrot.slane %v3893_v21, 7  ;;  %v2035_v60 = vmul.f32 %v2031_v54, %v3844_v36  ;;  %v2032_v13 = vld [vmem:[#allocation8 + $0xd8] sm:$0x3f]  ;;  %v2112_v19 = vld [vmem:[#allocation2 + $0x190] sm:$0x3f] }
 0x173   :  { %v2047_v56 = vmul.f32 %v2043_v51, %v3844_v36  ;;  %v2092_v45 = vrot.slane %v2062_v55, 1  ;;  %v2003_v3 = vadd.f32 %v1999_v52, %v1975_v42  ;;  %v2099_v28 = vsel %vm527_vm11, %v2090_v14, 0.0  ;;  %v2008_v16 = vld [vmem:[#allocation8 + $0x38] sm:$0x3f] }
 0x174   :  { %v2015_v29 = vadd.f32 %v2011_v18, %v1983_v7  ;;  %v2044_v50 = vld [vmem:[#allocation8 + $0xf8] sm:$0x3f]  ;;  %v2080_v39 = vsel %vm379_vm9, 0.0, %v2070_v10  ;;  %v2093_v17 = vrot.slane %v2064_v33, 1  ;;  %v1976_v57 = vmul.f32 %v1972_v38, %v3787_v46 }
 0x175   :  { %v1984_v31 = vmul.f32 %v1980_v6, %v3787_v46  ;;  %v2082_v9 = vadd.f32 %v2080_v39, %v2050_v15  ;;  %v2039_v26 = vadd.f32 %v2035_v60, %v2003_v3  ;;  %v2000_v51 = vmul.f32 %v1996_v63, %v3683_v59  ;;  %v2110_v21 = vld [vmem:[#allocation2 + $0x180] sm:$0xff]  ;;  %v2144_v63 = vld [vmem:[#allocation8 + $0xb0] sm:$0x3f] }
 0x176   :  { %v2051_v54 = vadd.f32 %v2047_v56, %v2015_v29  ;;  %v2094_v42 = vsel %vm516_vm10, %v2092_v45, %v2093_v17  ;;  %v2012_v14 = vmul.f32 %v2008_v16, %v3683_v59  ;;  %v2036_v55 = vmul.f32 %v2032_v13, %v3877_v44  ;;  %v2176_v39 = vld [vmem:[#allocation8 + $0x50] sm:$0x3f] }
 0x177   :  { %v2048_v7 = vmul.f32 %v2044_v50, %v3877_v44  ;;  %v2102_v52 = vadd.f32 %v2094_v42, %v2082_v9  ;;  %v2071_v18 = vrot.slane %v2039_v26, 7  ;;  %v2004_v38 = vadd.f32 %v2000_v51, %v1976_v57  ;;  %v2212_v26 = vld [vmem:[#allocation8 + $0x110] sm:$0x3f] }
 0x178   :  { %v2100_v6 = vsel %vm527_vm11, %v2093_v17, 0.0  ;;  %v2016_v15 = vadd.f32 %v2012_v14, %v1984_v31  ;;  %v2114_v33 = vmul.f32 %v2110_v21, %v2794_v4  ;;  %v2116_v60 = vmul.f32 %v2112_v19, %v2794_v4  ;;  %v2113_v14 = vld [vmem:[#allocation2 + $0x198] sm:$0x3f] }
 0x179   :  { %v2130_v56 = vmul.f32 %v3842_v47, %v3602_v24  ;;  %2107 = vst.msk [vmem:[#allocation10 + $0x148] sm:$0xff] %vm315_vm1, %v2102_v52  ;;  %v2072_v59 = vsel %vm379_vm9, %v2069_v22, %v2071_v18  ;;  %v2040_v13 = vadd.f32 %v2036_v55, %v2004_v38  ;;  %v2138_v45 = vmul.f32 %v3842_v47, %v3608_v53 }
 0x17a   :  { %v2146_v3 = vmul.f32 %v3842_v47, %v3610_v62  ;;  %v2083_v29 = vadd.f32 %v2072_v59, %v2051_v54  ;;  %v2052_v16 = vadd.f32 %v2048_v7, %v2016_v15  ;;  %v2118_v50 = vadd.f32 %v2114_v33, %v2817_v2  ;;  %v2111_v54 = vld [vmem:[#allocation2 + $0x188] sm:$0xff] }
 0x17b   :  { %v2120_v24 = vadd.f32 %v2116_v60, %v2817_v2  ;;  %v2073_v17 = vrot.slane %v2040_v13, 7  ;;  %v2148_v57 = vmul.f32 %v2144_v63, %v3844_v36  ;;  %v2154_v23 = vmul.f32 %v3725_v25, %v3746_v43  ;;  %v2145_v63 = vld [vmem:[#allocation8 + $0xb8] sm:$0x3f] }
 0x17c   :  { %v2166_v22 = vmul.f32 %v3727_v34, %v3746_v43  ;;  %v2103_v53 = vadd.f32 %v2099_v28, %v2083_v29  ;;  %v3932_v31 = vmax.f32 %v2118_v50, 0.0  ;;  %v2178_v9 = vmul.f32 %v3737_v58, %v3746_v43  ;;  %v2177_v29 = vld [vmem:[#allocation8 + $0x58] sm:$0x3f] }
 0x17d   :  { %v3934_v62 = vmax.f32 %v2120_v24, 0.0  ;;  %v2074_v51 = vsel %vm379_vm9, %v2070_v10, %v2073_v17  ;;  %v2158_v21 = vadd.f32 %v2154_v23, %v2130_v56  ;;  %v2180_v42 = vmul.f32 %v2176_v39, %v3748_v61 }
 0x17e   :  { %v2170_v19 = vadd.f32 %v2166_v22, %v2138_v45  ;;  %2108 = vst [vmem:[#allocation10 + $0x150] sm:$0x3f] %v2103_v53  ;;  %v2084_v55 = vadd.f32 %v2074_v51, %v2052_v16  ;;  %v2182_v7 = vadd.f32 %v2178_v9, %v2146_v3  ;;  %v2190_v28 = vmul.f32 %v3932_v31, %v3632_v1  ;;  %v2213_v9 = vld [vmem:[#allocation8 + $0x118] sm:$0x3f] }
 0x17f   :  { %v2202_v52 = vmul.f32 %v3932_v31, %v3634_v12  ;;  %v2184_v18 = vadd.f32 %v2180_v42, %v2148_v57  ;;  %v2214_v43 = vmul.f32 %v3932_v31, %v3642_v41  ;;  %v2216_v10 = vmul.f32 %v2212_v26, %v3934_v62  ;;  %v2128_v26 = vld [vmem:[#allocation8 + $0x70] sm:$0x3f] }
 0x180   :  { %v2115_v38 = vmul.f32 %v2111_v54, %v2796_v5  ;;  %v2104_v15 = vadd.f32 %v2100_v6, %v2084_v55  ;;  %v3948_v33 = vadd.f32 %v2190_v28, %v2158_v21  ;;  %v2117_v56 = vmul.f32 %v2113_v14, %v2796_v5  ;;  %v2136_v42 = vld [vmem:[#allocation8 + $0x90] sm:$0x3f] }
 0x181   :  { %v2206_v60 = vadd.f32 %v2202_v52, %v2170_v19  ;;  %v2218_v59 = vadd.f32 %v2214_v43, %v2182_v7  ;;  %v2220_v1 = vadd.f32 %v2216_v10, %v2184_v18  ;;  %v2131_v12 = vmul.f32 %v3871_v30, %v3650_v20  ;;  %v2152_v14 = vld [vmem:[#allocation8 + $0x10] sm:$0x3f] }
 0x182   :  { %v2119_v13 = vadd.f32 %v2115_v38, %v2819_v27  ;;  %2109 = vst.msk [vmem:[#allocation10 + $0x158] sm:$0x3f] %vm317_vm2, %v2104_v15  ;;  %v2226_v41 = vrot.slane %v3948_v33, 7  ;;  %v2121_v45 = vadd.f32 %v2117_v56, %v2819_v27  ;;  %v2139_v6 = vmul.f32 %v3871_v30, %v3656_v0  ;;  %v2164_v55 = vld [vmem:[#allocation8 + $0x30] sm:$0x3f] }
 0x183   :  { %v2147_v3 = vmul.f32 %v3871_v30, %v3658_v8  ;;  %v2246_v16 = vrot.slane %v2218_v59, 1  ;;  %v2247_v50 = vrot.slane %v2220_v1, 1  ;;  %v2149_v39 = vmul.f32 %v2145_v63, %v3877_v44  ;;  %v2188_v18 = vld [vmem:[#allocation8 + $0xd0] sm:$0x3f]  ;;  %v2129_v59 = vld [vmem:[#allocation8 + $0x78] sm:$0x3f] }
 0x184   :  { %v3961_v24 = vmax.f32 %v2119_v13, 0.0  ;;  %v2236_v20 = vsel %vm379_vm9, 0.0, %v2226_v41  ;;  %v3967_v17 = vmax.f32 %v2121_v45, 0.0  ;;  %v2155_v57 = vmul.f32 %v3768_v40, %v3781_v11  ;;  %v2200_v43 = vld [vmem:[#allocation8 + $0xf0] sm:$0x3f] }
 0x185   :  { %v2167_v0 = vmul.f32 %v3770_v35, %v3781_v11  ;;  %v2238_v8 = vadd.f32 %v2236_v20, %v2206_v60  ;;  %v2248_v23 = vsel %vm516_vm10, %v2246_v16, %v2247_v50  ;;  %v2179_v22 = vmul.f32 %v3779_v37, %v3781_v11  ;;  %v2137_v1 = vld [vmem:[#allocation8 + $0x98] sm:$0x3f] }
 0x186   :  { %v2181_v53 = vmul.f32 %v2177_v29, %v3787_v46  ;;  %v2159_v54 = vadd.f32 %v2155_v57, %v2131_v12  ;;  %v2191_v21 = vmul.f32 %v3961_v24, %v3676_v32  ;;  %v2203_v19 = vmul.f32 %v3961_v24, %v3678_v49  ;;  %v2165_v57 = vld [vmem:[#allocation8 + $0x38] sm:$0x3f] }
 0x187   :  { %v2171_v51 = vadd.f32 %v2167_v0, %v2139_v6  ;;  %v2258_v7 = vadd.f32 %v2248_v23, %v2238_v8  ;;  %v2183_v28 = vadd.f32 %v2179_v22, %v2147_v3  ;;  %v2215_v11 = vmul.f32 %v3961_v24, %v3689_v48  ;;  %v2153_v6 = vld [vmem:[#allocation8 + $0x18] sm:$0x3f] }
 0x188   :  { %v2185_v52 = vadd.f32 %v2181_v53, %v2149_v39  ;;  %v3983_v10 = vadd.f32 %v2191_v21, %v2159_v54  ;;  %v2217_v15 = vmul.f32 %v2213_v9, %v3967_v17  ;;  %v2132_v32 = vmul.f32 %v2128_v26, %v3844_v36  ;;  %v2189_v3 = vld [vmem:[#allocation8 + $0xd8] sm:$0x3f]  ;;  %v2269_v21 = vld [vmem:[#allocation2 + $0x1b0] sm:$0x3f] }
 0x189   :  { %v2207_v38 = vadd.f32 %v2203_v19, %v2171_v51  ;;  %2263 = vst [vmem:[#allocation10 + $0x160] sm:$0xff] %v2258_v7  ;;  %v2219_v49 = vadd.f32 %v2215_v11, %v2183_v28  ;;  %v2140_v60 = vmul.f32 %v2136_v42, %v3844_v36  ;;  %v2156_v56 = vmul.f32 %v2152_v14, %v3748_v61  ;;  %v2201_v0 = vld [vmem:[#allocation8 + $0xf8] sm:$0x3f]  ;;  %v3998_v19 = vld [vmem:[#allocation8 + $0x60] sm:$0xff] }
 0x18a   :  { %v2168_v63 = vmul.f32 %v2164_v55, %v3748_v61  ;;  %v2221_v48 = vadd.f32 %v2217_v15, %v2185_v52  ;;  %v2227_v13 = vrot.slane %v3983_v10, 7  ;;  %v2192_v12 = vmul.f32 %v2188_v18, %v3934_v62  ;;  %v2267_v51 = vld [vmem:[#allocation2 + $0x1a0] sm:$0xff] }
 0x18b   :  { %v2204_v45 = vmul.f32 %v2200_v43, %v3934_v62  ;;  %v2249_v29 = vrot.slane %v2219_v49, 1  ;;  %v2160_v16 = vadd.f32 %v2156_v56, %v2132_v32  ;;  %v2256_v20 = vsel %vm527_vm11, %v2247_v50, 0.0  ;;  %v4004_v7 = vld [vmem:[#allocation8 + $0x80] sm:$0xff]  ;;  %v2301_v32 = vld [vmem:[#allocation8 + $0xb0] sm:$0x3f] }
 0x18c   :  { %v2172_v39 = vadd.f32 %v2168_v63, %v2140_v60  ;;  %v2237_v61 = vsel %vm379_vm9, 0.0, %v2227_v13  ;;  %v2250_v8 = vrot.slane %v2221_v48, 1  ;;  %v2133_v23 = vmul.f32 %v2129_v59, %v3877_v44  ;;  %v4006_v28 = vld [vmem:[#allocation8 + $0xa0] sm:$0xff] }
 0x18d   :  { %v2141_v22 = vmul.f32 %v2137_v1, %v3877_v44  ;;  %v2239_v53 = vadd.f32 %v2237_v61, %v2207_v38  ;;  %v2196_v9 = vadd.f32 %v2192_v12, %v2160_v16  ;;  %v2157_v54 = vmul.f32 %v2153_v6, %v3787_v46  ;;  %v2333_v12 = vld [vmem:[#allocation8 + $0x50] sm:$0x3f] }
 0x18e   :  { %v2208_v26 = vadd.f32 %v2204_v45, %v2172_v39  ;;  %v2251_v50 = vsel %vm516_vm10, %v2249_v29, %v2250_v8  ;;  %v2169_v42 = vmul.f32 %v2165_v57, %v3787_v46  ;;  %v2193_v14 = vmul.f32 %v2189_v3, %v3967_v17  ;;  %v2343_v3 = vld [vmem:[#allocation8 + $0xc0] sm:$0xff]  ;;  %v2369_v61 = vld [vmem:[#allocation8 + $0x110] sm:$0x3f] }
 0x18f   :  { %v2205_v55 = vmul.f32 %v2201_v0, %v3967_v17  ;;  %v2259_v52 = vadd.f32 %v2251_v50, %v2239_v53  ;;  %v2228_v11 = vrot.slane %v2196_v9, 7  ;;  %v2161_v18 = vadd.f32 %v2157_v54, %v2133_v23  ;;  %v2355_v29 = vld [vmem:[#allocation8 + $0xe0] sm:$0xff]  ;;  %v4043_v50 = vld [vmem:[#allocation8 + $0x88] sm:$0xff] }
 0x190   :  { %v2257_v43 = vsel %vm527_vm11, %v2250_v8, 0.0  ;;  %v2173_v10 = vadd.f32 %v2169_v42, %v2141_v22  ;;  %v2271_v38 = vmul.f32 %v2267_v51, %v2794_v4  ;;  %v2273_v15 = vmul.f32 %v2269_v21, %v2794_v4  ;;  %v2367_v0 = vld [vmem:[#allocation8 + $0x100] sm:$0xff]  ;;  %v4038_v51 = vld [vmem:[#allocation8 + $0x68] sm:$0xff] }
 0x191   :  { %v2287_v46 = vmul.f32 %v3998_v19, %v3932_v31  ;;  %2264 = vst.msk [vmem:[#allocation10 + $0x168] sm:$0xff] %vm315_vm1, %v2259_v52  ;;  %v2229_v49 = vsel %vm379_vm9, %v2226_v41, %v2228_v11  ;;  %v2197_v60 = vadd.f32 %v2193_v14, %v2161_v18  ;;  %v2295_v56 = vmul.f32 %v4004_v7, %v3932_v31  ;;  %v2268_v8 = vld [vmem:[#allocation2 + $0x1a8] sm:$0xff]  ;;  %v2302_v18 = vld [vmem:[#allocation8 + $0xb8] sm:$0x3f] }
 0x192   :  { %v2303_v63 = vmul.f32 %v4006_v28, %v3932_v31  ;;  %v2240_v59 = vadd.f32 %v2229_v49, %v2208_v26  ;;  %v2209_v1 = vadd.f32 %v2205_v55, %v2173_v10  ;;  %v2275_v4 = vadd.f32 %v2271_v38, %v2817_v2  ;;  %v4045_v42 = vld [vmem:[#allocation8 + $0xa8] sm:$0xff] }
 0x193   :  { %v2277_v48 = vadd.f32 %v2273_v15, %v2817_v2  ;;  %v2230_v45 = vrot.slane %v2197_v60, 7  ;;  %v2305_v6 = vmul.f32 %v2301_v32, %v3934_v62  ;;  %v2311_v33 = vmul.f32 %v3842_v47, %v3725_v25  ;;  %v2334_v60 = vld [vmem:[#allocation8 + $0x58] sm:$0x3f] }
 0x194   :  { %v2323_v41 = vmul.f32 %v3842_v47, %v3727_v34  ;;  %v2260_v16 = vadd.f32 %v2256_v20, %v2240_v59  ;;  %v4028_v39 = vmax.f32 %v2275_v4, 0.0  ;;  %v2335_v2 = vmul.f32 %v3842_v47, %v3737_v58  ;;  %v2270_v34 = vld [vmem:[#allocation2 + $0x1b8] sm:$0x3f]  ;;  %v2344_v4 = vld [vmem:[#allocation8 + $0xc8] sm:$0xff] }
 0x195   :  { %v4030_v57 = vmax.f32 %v2277_v48, 0.0  ;;  %v2231_v23 = vsel %vm379_vm9, %v2227_v13, %v2230_v45  ;;  %v2315_v22 = vadd.f32 %v2311_v33, %v2287_v46  ;;  %v2337_v53 = vmul.f32 %v2333_v12, %v3844_v36  ;;  %v2356_v48 = vld [vmem:[#allocation8 + $0xe8] sm:$0xff] }
 0x196   :  { %v2327_v25 = vadd.f32 %v2323_v41, %v2295_v56  ;;  %2265 = vst [vmem:[#allocation10 + $0x170] sm:$0x3f] %v2260_v16  ;;  %v2241_v9 = vadd.f32 %v2231_v23, %v2209_v1  ;;  %v2339_v20 = vadd.f32 %v2335_v2, %v2303_v63  ;;  %v2347_v26 = vmul.f32 %v2343_v3, %v4028_v39  ;;  %v2368_v33 = vld [vmem:[#allocation8 + $0x108] sm:$0xff]  ;;  %v2370_v2 = vld [vmem:[#allocation8 + $0x118] sm:$0x3f] }
 0x197   :  { %v2359_v54 = vmul.f32 %v2355_v29, %v4028_v39  ;;  %v2341_v58 = vadd.f32 %v2337_v53, %v2305_v6  ;;  %v2371_v47 = vmul.f32 %v2367_v0, %v4028_v39  ;;  %v2373_v21 = vmul.f32 %v2369_v61, %v4030_v57  ;;  %v2285_v0 = vld [vmem:[#allocation8 + $0x70] sm:$0x3f] }
 0x198   :  { %v2272_v13 = vmul.f32 %v2268_v8, %v2796_v5  ;;  %v2261_v14 = vadd.f32 %v2257_v43, %v2241_v9  ;;  %v4047_v55 = vadd.f32 %v2347_v26, %v2315_v22  ;;  %v2274_v11 = vmul.f32 %v2270_v34, %v2796_v5  ;;  %v2293_v22 = vld [vmem:[#allocation8 + $0x90] sm:$0x3f] }
 0x199   :  { %v2363_v52 = vadd.f32 %v2359_v54, %v2327_v25  ;;  %v2375_v10 = vadd.f32 %v2371_v47, %v2339_v20  ;;  %v2377_v38 = vadd.f32 %v2373_v21, %v2341_v58  ;;  %v2288_v46 = vmul.f32 %v4038_v51, %v3961_v24  ;;  %v2309_v25 = vld [vmem:[#allocation8 + $0x10] sm:$0x3f] }
 0x19a   :  { %v2276_v15 = vadd.f32 %v2272_v13, %v2819_v27  ;;  %2266 = vst.msk [vmem:[#allocation10 + $0x178] sm:$0x3f] %vm317_vm2, %v2261_v14  ;;  %v2383_v32 = vrot.slane %v4047_v55, 7  ;;  %v2278_v49 = vadd.f32 %v2274_v11, %v2819_v27  ;;  %v2296_v43 = vmul.f32 %v4043_v50, %v3961_v24  ;;  %v2345_v26 = vld [vmem:[#allocation8 + $0xd0] sm:$0x3f] }
 0x19b   :  { %v2304_v5 = vmul.f32 %v4045_v42, %v3961_v24  ;;  %v2403_v56 = vrot.slane %v2375_v10, 1  ;;  %v2404_v63 = vrot.slane %v2377_v38, 1  ;;  %v2306_v1 = vmul.f32 %v2302_v18, %v3967_v17  ;;  %v2286_v11 = vld [vmem:[#allocation8 + $0x78] sm:$0x3f] }
 0x19c   :  { %v4060_v59 = vmax.f32 %v2276_v15, 0.0  ;;  %v2393_v12 = vsel %vm379_vm9, 0.0, %v2383_v32  ;;  %v4066_v27 = vmax.f32 %v2278_v49, 0.0  ;;  %v2312_v45 = vmul.f32 %v3871_v30, %v3768_v40  ;;  %v2294_v18 = vld [vmem:[#allocation8 + $0x98] sm:$0x3f] }
 0x19d   :  { %v2324_v6 = vmul.f32 %v3871_v30, %v3770_v35  ;;  %v2395_v41 = vadd.f32 %v2393_v12, %v2363_v52  ;;  %v2405_v3 = vsel %vm516_vm10, %v2403_v56, %v2404_v63  ;;  %v2336_v29 = vmul.f32 %v3871_v30, %v3779_v37  ;;  %v2321_v35 = vld [vmem:[#allocation8 + $0x30] sm:$0x3f]  ;;  %v2310_v49 = vld [vmem:[#allocation8 + $0x18] sm:$0x3f] }
 0x19e   :  { %v2338_v16 = vmul.f32 %v2334_v60, %v3877_v44  ;;  %v2316_v61 = vadd.f32 %v2312_v45, %v2288_v46  ;;  %v2348_v23 = vmul.f32 %v2344_v4, %v4060_v59  ;;  %v2360_v40 = vmul.f32 %v2356_v48, %v4060_v59  ;;  %v2357_v37 = vld [vmem:[#allocation8 + $0xf0] sm:$0x3f]  ;;  %v2322_v4 = vld [vmem:[#allocation8 + $0x38] sm:$0x3f] }
 0x19f   :  { %v2328_v8 = vadd.f32 %v2324_v6, %v2296_v43  ;;  %v2415_v53 = vadd.f32 %v2405_v3, %v2395_v41  ;;  %v2340_v34 = vadd.f32 %v2336_v29, %v2304_v5  ;;  %v2372_v20 = vmul.f32 %v2368_v33, %v4060_v59  ;;  %v2346_v43 = vld [vmem:[#allocation8 + $0xd8] sm:$0x3f] }
 0x1a0   :  { %v2342_v9 = vadd.f32 %v2338_v16, %v2306_v1  ;;  %v4079_v30 = vadd.f32 %v2348_v23, %v2316_v61  ;;  %v2374_v58 = vmul.f32 %v2370_v2, %v4066_v27  ;;  %v2289_v47 = vmul.f32 %v2285_v0, %v3934_v62  ;;  %v2358_v48 = vld [vmem:[#allocation8 + $0xf8] sm:$0x3f]  ;;  %v2442_v61 = vld [vmem:[#allocation8 + $0xb0] sm:$0x3f] }
 0x1a1   :  { %v2364_v54 = vadd.f32 %v2360_v40, %v2328_v8  ;;  %2420 = vst [vmem:[#allocation10 + $0x180] sm:$0xff] %v2415_v53  ;;  %v2376_v21 = vadd.f32 %v2372_v20, %v2340_v34  ;;  %v2297_v13 = vmul.f32 %v2293_v22, %v3934_v62  ;;  %v2313_v14 = vmul.f32 %v2309_v25, %v3844_v36  ;;  %v2448_v8 = vld [vmem:[#allocation8] sm:$0xff] }
 0x1a2   :  { %v2325_v52 = vmul.f32 %v2321_v35, %v3844_v36  ;;  %v2378_v10 = vadd.f32 %v2374_v58, %v2342_v9  ;;  %v2384_v38 = vrot.slane %v4079_v30, 7  ;;  %v2349_v15 = vmul.f32 %v2345_v26, %v4030_v57  ;;  %v2460_v35 = vld [vmem:[#allocation8 + $0x20] sm:$0xff]  ;;  %v2474_v26 = vld [vmem:[#allocation8 + $0x50] sm:$0x3f] }
 0x1a3   :  { %v2361_v46 = vmul.f32 %v2357_v37, %v4030_v57  ;;  %v2406_v5 = vrot.slane %v2376_v21, 1  ;;  %v2317_v60 = vadd.f32 %v2313_v14, %v2289_v47  ;;  %v2413_v1 = vsel %vm527_vm11, %v2404_v63, 0.0  ;;  %v2472_v53 = vld [vmem:[#allocation8 + $0x40] sm:$0xff]  ;;  %v2449_v14 = vld [vmem:[#allocation8 + $0x8] sm:$0xff] }
 0x1a4   :  { %v2329_v56 = vadd.f32 %v2325_v52, %v2297_v13  ;;  %v2394_v36 = vsel %vm379_vm9, 0.0, %v2384_v38  ;;  %v2407_v12 = vrot.slane %v2378_v10, 1  ;;  %v2290_v45 = vmul.f32 %v2286_v11, %v3967_v17 }
 0x1a5   :  { %v2298_v6 = vmul.f32 %v2294_v18, %v3967_v17  ;;  %v2396_v33 = vadd.f32 %v2394_v36, %v2364_v54  ;;  %v2353_v41 = vadd.f32 %v2349_v15, %v2317_v60  ;;  %v2314_v29 = vmul.f32 %v2310_v49, %v3877_v44  ;;  %v2461_v15 = vld [vmem:[#allocation8 + $0x28] sm:$0xff]  ;;  %v2475_v60 = vld [vmem:[#allocation8 + $0x58] sm:$0x3f] }
 0x1a6   :  { %v2365_v3 = vadd.f32 %v2361_v46, %v2329_v56  ;;  %v2408_v16 = vsel %vm516_vm10, %v2406_v5, %v2407_v12  ;;  %v2326_v2 = vmul.f32 %v2322_v4, %v3877_v44  ;;  %v2350_v63 = vmul.f32 %v2346_v43, %v4066_v27  ;;  %v2473_v46 = vld [vmem:[#allocation8 + $0x48] sm:$0xff] }
 0x1a7   :  { %v2362_v0 = vmul.f32 %v2358_v48, %v4066_v27  ;;  %v2416_v23 = vadd.f32 %v2408_v16, %v2396_v33  ;;  %v2385_v40 = vrot.slane %v2353_v41, 7  ;;  %v2318_v22 = vadd.f32 %v2314_v29, %v2290_v45  ;;  %v2426_v48 = vld [vmem:[#allocation8 + $0x70] sm:$0x3f] }
 0x1a8   :  { %v2414_v25 = vsel %vm527_vm11, %v2407_v12, 0.0  ;;  %v2330_v34 = vadd.f32 %v2326_v2, %v2298_v6  ;;  %v2428_v9 = vmul.f32 %v3998_v19, %v4028_v39  ;;  %v2436_v44 = vmul.f32 %v4004_v7, %v4028_v39  ;;  %v2434_v45 = vld [vmem:[#allocation8 + $0x90] sm:$0x3f] }
 0x1a9   :  { %v2444_v20 = vmul.f32 %v4006_v28, %v4028_v39  ;;  %2421 = vst.msk [vmem:[#allocation10 + $0x188] sm:$0xff] %vm315_vm1, %v2416_v23  ;;  %v2386_v37 = vsel %vm379_vm9, %v2383_v32, %v2385_v40  ;;  %v2354_v30 = vadd.f32 %v2350_v63, %v2318_v22  ;;  %v2446_v54 = vmul.f32 %v2442_v61, %v4030_v57  ;;  %v2443_v32 = vld [vmem:[#allocation8 + $0xb8] sm:$0x3f]  ;;  %v2450_v41 = vld [vmem:[#allocation8 + $0x10] sm:$0x3f] }
 0x1aa   :  { %v2452_v58 = vmul.f32 %v2448_v8, %v3932_v31  ;;  %v2397_v47 = vadd.f32 %v2386_v37, %v2365_v3  ;;  %v2366_v19 = vadd.f32 %v2362_v0, %v2330_v34  ;;  %v2464_v21 = vmul.f32 %v2460_v35, %v3932_v31  ;;  %v2462_v3 = vld [vmem:[#allocation8 + $0x30] sm:$0x3f]  ;;  %v2427_v0 = vld [vmem:[#allocation8 + $0x78] sm:$0x3f] }
 0x1ab   :  { %v2476_v7 = vmul.f32 %v2472_v53, %v3932_v31  ;;  %v2387_v13 = vrot.slane %v2354_v30, 7  ;;  %v2478_v39 = vmul.f32 %v2474_v26, %v3934_v62  ;;  %v2429_v55 = vmul.f32 %v4038_v51, %v4060_v59  ;;  %v2435_v61 = vld [vmem:[#allocation8 + $0x98] sm:$0x3f] }
 0x1ac   :  { %v4113_v28 = vadd.f32 %v2452_v58, %v2428_v9  ;;  %v2417_v52 = vadd.f32 %v2413_v1, %v2397_v47  ;;  %v2468_v11 = vadd.f32 %v2464_v21, %v2436_v44  ;;  %v2437_v10 = vmul.f32 %v4043_v50, %v4060_v59  ;;  %v2451_v22 = vld [vmem:[#allocation8 + $0x18] sm:$0x3f] }
 0x1ad   :  { %v2480_v18 = vadd.f32 %v2476_v7, %v2444_v20  ;;  %v2388_v31 = vsel %vm379_vm9, %v2384_v38, %v2387_v13  ;;  %v2482_v49 = vadd.f32 %v2478_v39, %v2446_v54  ;;  %v2445_v5 = vmul.f32 %v4045_v42, %v4060_v59  ;;  %v2463_v34 = vld [vmem:[#allocation8 + $0x38] sm:$0x3f] }
 0x1ae   :  { %v2488_v43 = vrot.slane %v4113_v28, 7  ;;  %2422 = vst [vmem:[#allocation10 + $0x190] sm:$0x3f] %v2417_v52  ;;  %v2398_v51 = vadd.f32 %v2388_v31, %v2366_v19  ;;  %v2447_v1 = vmul.f32 %v2443_v32, %v4066_v27  ;;  %v2453_v4 = vmul.f32 %v2449_v14, %v3961_v24 }
 0x1af   :  { %v2508_v56 = vrot.slane %v2480_v18, 1  ;;  %v2509_v36 = vrot.slane %v2482_v49, 1  ;;  %v2465_v38 = vmul.f32 %v2461_v15, %v3961_v24  ;;  %v2477_v12 = vmul.f32 %v2473_v46, %v3961_v24 }
 0x1b0   :  { %v2498_v50 = vsel %vm379_vm9, 0.0, %v2488_v43  ;;  %v2418_v6 = vadd.f32 %v2414_v25, %v2398_v51  ;;  %v2457_v42 = vadd.f32 %v2453_v4, %v2429_v55  ;;  %v2479_v59 = vmul.f32 %v2475_v60, %v3967_v17 }
 0x1b1   :  { %v2500_v33 = vadd.f32 %v2498_v50, %v2468_v11  ;;  %v2510_v29 = vsel %vm516_vm10, %v2508_v56, %v2509_v36  ;;  %v2469_v16 = vadd.f32 %v2465_v38, %v2437_v10  ;;  %v2481_v2 = vadd.f32 %v2477_v12, %v2445_v5 }
 0x1b2   :  { %v2430_v63 = vmul.f32 %v2426_v48, %v4030_v57  ;;  %2423 = vst.msk [vmem:[#allocation10 + $0x198] sm:$0x3f] %vm317_vm2, %v2418_v6  ;;  %v2483_v24 = vadd.f32 %v2479_v59, %v2447_v1  ;;  %v2489_v23 = vrot.slane %v2457_v42, 7  ;;  %v2438_v40 = vmul.f32 %v2434_v45, %v4030_v57 }
 0x1b3   :  { %v2520_v8 = vadd.f32 %v2510_v29, %v2500_v33  ;;  %v2511_v25 = vrot.slane %v2481_v2, 1  ;;  %v2454_v35 = vmul.f32 %v2450_v41, %v3934_v62  ;;  %v2466_v53 = vmul.f32 %v2462_v3, %v3934_v62 }
 0x1b4   :  { %v2499_v9 = vsel %vm379_vm9, 0.0, %v2489_v23  ;;  %v2512_v44 = vrot.slane %v2483_v24, 1  ;;  %v2431_v20 = vmul.f32 %v2427_v0, %v4066_v27  ;;  %v2439_v26 = vmul.f32 %v2435_v61, %v4066_v27 }
 0x1b5   :  { %2525 = vst [vmem:[#allocation10 + $0x1a0] sm:$0xff] %v2520_v8  ;;  %v2501_v37 = vadd.f32 %v2499_v9, %v2469_v16  ;;  %v2458_v30 = vadd.f32 %v2454_v35, %v2430_v63  ;;  %v2455_v54 = vmul.f32 %v2451_v22, %v3967_v17  ;;  %v2470_v58 = vadd.f32 %v2466_v53, %v2438_v40 }
 0x1b6   :  { %v2513_v57 = vsel %vm516_vm10, %v2511_v25, %v2512_v44  ;;  %v2467_v47 = vmul.f32 %v2463_v34, %v3967_v17  ;;  %v2518_v28 = vsel %vm527_vm11, %v2509_v36, 0.0  ;;  %v2519_v32 = vsel %vm527_vm11, %v2512_v44, 0.0 }
 0x1b7   :  { %v2521_v19 = vadd.f32 %v2513_v57, %v2501_v37  ;;  %v2490_v62 = vrot.slane %v2458_v30, 7  ;;  %v2459_v21 = vadd.f32 %v2455_v54, %v2431_v20 }
 0x1b8   :  { %v2471_v7 = vadd.f32 %v2467_v47, %v2439_v26 }
 0x1b9   :  { %2526 = vst.msk [vmem:[#allocation10 + $0x1a8] sm:$0xff] %vm315_vm1, %v2521_v19  ;;  %v2491_v13 = vsel %vm379_vm9, %v2488_v43, %v2490_v62  ;;  %v2492_v27 = vrot.slane %v2459_v21, 7 }
 0x1ba   :  { %v2502_v39 = vadd.f32 %v2491_v13, %v2470_v58 }
 0x1bb   :  { %v2493_v55 = vsel %vm379_vm9, %v2489_v23, %v2492_v27 }
 0x1bc   :  { %v2522_v17 = vadd.f32 %v2518_v28, %v2502_v39  ;;  %v2503_v14 = vadd.f32 %v2493_v55, %v2471_v7 }
 0x1be   :  { %2527 = vst [vmem:[#allocation10 + $0x1b0] sm:$0x3f] %v2522_v17  ;;  %v2523_v52 = vadd.f32 %v2519_v32, %v2503_v14 }
 0x1c0   :  { %2528 = vst.msk [vmem:[#allocation10 + $0x1b8] sm:$0x3f] %vm317_vm2, %v2523_v52 }
 0x1c1   :  { %2541 = dma.vmem_to_hbm [thread:$0]  %s2534_s3, 7168, %s2536_s11, [#allocation4], %s2691_s25, %s2691_s25, %s2692_s26  }
 0x1c2   :  { %2687 = dma.done.wait [#allocation4], 7168  }
 0x1c3   :  { %2688 = vsyncadd [#allocation4], 4294960128 }
 0x1c4   :  { %2546 = vsyncpa [#allocation3], 1 }
 0x1c5   :  { %2547 = vsyncpa [#allocation6], 1 }
 0x1c6   :  { %2548 = vsyncpa [#allocation9], 1 }
 0x1c7   :  { %2549 = vsyncpa [#allocation4], 1 }

</bundles_post_ra>
